<compile_context>
chip_gen: v7x
topology: tpu7x:2x2x1
jax: 0.10.0
libtpu: 0.0.40
codegen_flags: <defaults>
</compile_context>

<pallas_src>
import functools

import jax
import jax.numpy as jnp
from jax import lax
from jax.experimental import pallas as pl
from jax.experimental.pallas import tpu as pltpu


# ----------------------------- shared math helpers (work in & out of kernels) ----------

def _layernorm(x, gamma, beta, eps=1e-5):
    # PyTorch nn.LayerNorm: biased variance over last dim, eps=1e-5, affine. f32 stats.
    x = x.astype(jnp.float32)
    mean = jnp.mean(x, axis=-1, keepdims=True)
    var = jnp.mean((x - mean) ** 2, axis=-1, keepdims=True)
    return (x - mean) * lax.rsqrt(var + eps) * gamma + beta


def _gelu_exact(x):
    # PyTorch nn.GELU() default: exact erf-based GELU (kept in f32).
    return 0.5 * x * (1.0 + lax.erf(x * 0.7071067811865476))


def posemb_sincos_2d(h, w, dim, temperature=10000, dtype=jnp.float32):
    y, x = jnp.meshgrid(jnp.arange(h), jnp.arange(w), indexing="ij")
    assert dim % 4 == 0, "feature dimension must be multiple of 4 for sincos emb"
    omega = jnp.arange(dim // 4) / (dim // 4 - 1)
    omega = 1.0 / (temperature ** omega)
    y = y.flatten()[:, None] * omega[None, :]
    x = x.flatten()[:, None] * omega[None, :]
    pe = jnp.concatenate((jnp.sin(x), jnp.cos(x), jnp.sin(y), jnp.cos(y)), axis=1)
    return pe.astype(dtype)


def _patchify(img, patch):
    # 'b c (h p1) (w p2) -> b (h w) (p1 p2 c)'  (pure layout, done in the wrapper)
    B, C, H, W = img.shape
    gh, gw = H // patch, W // patch
    x = img.reshape(B, C, gh, patch, gw, patch)
    x = x.transpose(0, 2, 4, 3, 5, 1)
    return x.reshape(B, gh * gw, patch * patch * C)


# ----------------------------- fused SimpleViT kernel -----------------------------------

def _vit_kernel(
    # inputs ----------------------------------------------------------------
    patches_ref, pos_ref,
    eg1_ref, eb1_ref, wemb_ref, bemb_ref, eg2_ref, eb2_ref,
    ag_ref, ab_ref, wq_ref, wk_ref, wv_ref, wo_ref,
    fg_ref, fb_ref, w1_ref, b1_ref, w2_ref, b2_ref,
    ng_ref, nb_ref, wh_ref, bh_ref,
    # outputs / scratch -----------------------------------------------------
    o_ref, x_scr,
    *, heads, dim_head, depth, batch_tile, n_tok, compute_dtype):
    """Grid = (batch_tiles, depth).  Residual stream (BT*N, D) carried in VMEM scratch."""
    layer = pl.program_id(1)
    cdt = compute_dtype
    f32 = jnp.float32
    BT, N, dh = batch_tile, n_tok, dim_head
    scale = dh ** -0.5

    # ---- patch embedding (runs once per batch tile, at the first layer step) ----------
    @pl.when(layer == 0)
    def _embed():
        pn = _layernorm(patches_ref[...], eg1_ref[...], eb1_ref[...])        # (M, Pd) f32
        emb = jnp.dot(pn.astype(cdt), wemb_ref[...],
                      preferred_element_type=f32) + bemb_ref[...]            # (M, D)
        emb = _layernorm(emb, eg2_ref[...], eb2_ref[...])
        x_scr[...] = emb + pos_ref[...]           # pos already tiled to (M, D) in wrapper

    x = x_scr[...]                                # (M, D) f32 residual stream

    # ------------------- attention + residual ------------------------------------------
    xn = _layernorm(x, ag_ref[0], ab_ref[0]).astype(cdt)                     # (M, D)
    # Lane-dense 2-D projections over the whole batch tile (inner = heads*dim_head).
    q = jnp.dot(xn, wq_ref[0], preferred_element_type=f32)                   # (M, inner)
    k = jnp.dot(xn, wk_ref[0], preferred_element_type=f32)
    v = jnp.dot(xn, wv_ref[0], preferred_element_type=f32)
    qc = (q * scale).astype(cdt)      # fold softmax scale into q (N*inner vs heads*N*N)
    kc = k.astype(cdt)
    vc = v.astype(cdt)

    # Per-(image, head) softmax attention on static slices of the fused projections.
    img_out = []
    for b in range(BT):
        r = b * N
        qb, kb, vb = qc[r:r + N], kc[r:r + N], vc[r:r + N]                   # (N, inner)
        head_out = []
        for h in range(heads):
            c = h * dh
            qh, kh, vh = qb[:, c:c + dh], kb[:, c:c + dh], vb[:, c:c + dh]   # (N, dh)
            s = lax.dot_general(qh, kh, (((1,), (1,)), ((), ())),            # q @ k^T
                                preferred_element_type=f32)                  # (N, N) f32
            s = s - jnp.max(s, axis=-1, keepdims=True)
            e = jnp.exp(s)
            p = e * pl.reciprocal(jnp.sum(e, axis=-1, keepdims=True), approx=True)
            head_out.append(jnp.dot(p.astype(cdt), vh,
                                    preferred_element_type=f32))             # (N, dh)
        img_out.append(jnp.concatenate(head_out, axis=-1))                   # (N, inner)
    attn_out = jnp.concatenate(img_out, axis=0)                              # (M, inner)

    # Fused output projection over all heads at once (no per-head proj / head-sum).
    x = x + jnp.dot(attn_out.astype(cdt), wo_ref[0], preferred_element_type=f32)

    # ------------------- feed-forward + residual ----------------------------------------
    xn = _layernorm(x, fg_ref[0], fb_ref[0]).astype(cdt)
    h1 = jnp.dot(xn, w1_ref[0], preferred_element_type=f32) + b1_ref[0]
    h1 = _gelu_exact(h1)
    y = jnp.dot(h1.astype(cdt), w2_ref[0], preferred_element_type=f32) + b2_ref[0]
    x = x + y
    x_scr[...] = x                                # carry to next layer step

    # ---- final LayerNorm + mean pool + classifier head (last layer step) ---------------
    @pl.when(layer == depth - 1)
    def _head():
        xf = _layernorm(x, ng_ref[...], nb_ref[...])                         # (M, D)
        pooled = jnp.concatenate(
            [jnp.mean(xf[b * N:(b + 1) * N], axis=0, keepdims=True) for b in range(BT)],
            axis=0)                                                          # (BT, D)
        logits = jnp.dot(pooled.astype(cdt), wh_ref[...],
                         preferred_element_type=f32) + bh_ref[...]           # (BT, C)
        o_ref[0] = logits.astype(o_ref.dtype)


# ----------------------------- pallas_call wrapper ---------------------------------------

def vit_forward(img, params, *, patch_size, heads, dim_head, batch_tile=2,
                compute_dtype=jnp.bfloat16):
    B, C, H, W = img.shape
    gh, gw = H // patch_size, W // patch_size
    N = gh * gw
    Pd = C * patch_size * patch_size
    BT = batch_tile
    assert B % BT == 0, "batch must be divisible by the batch tile"
    Bt = B // BT
    M = BT * N

    # Patches flattened to (B*N, Pd) and cast to bf16 so the layer-resident embed buffer
    # (only consumed at layer step 0) is halved.  Pos-emb pre-tiled to the batch tile.
    patches = _patchify(img, patch_size).reshape(B * N, Pd).astype(compute_dtype)
    pos = params["pos"]                                        # (N, D) f32
    pos_t = jnp.tile(pos, (BT, 1))                             # (M, D)

    D = pos.shape[-1]
    depth = params["wq"].shape[0]
    inner = heads * dim_head
    Hm = params["w1"].shape[-1]
    Cn = params["w_head"].shape[-1]

    batch_map2 = lambda b, l: (b, 0)        # resident across the layer axis
    const_map2 = lambda b, l: (0, 0)        # fully resident
    layer_map3 = lambda b, l: (l, 0, 0)     # streamed per layer (double-buffered)

    in_specs = [
        pl.BlockSpec((M, Pd), batch_map2),                 # patches (batch tile)
        pl.BlockSpec((M, D), const_map2),                  # pos-emb (tiled to batch tile)
        pl.BlockSpec((1, Pd), const_map2),                 # embed LN1 gamma
        pl.BlockSpec((1, Pd), const_map2),                 # embed LN1 beta
        pl.BlockSpec((Pd, D), const_map2),                 # w_emb
        pl.BlockSpec((1, D), const_map2),                  # b_emb
        pl.BlockSpec((1, D), const_map2),                  # embed LN2 gamma
        pl.BlockSpec((1, D), const_map2),                  # embed LN2 beta
        pl.BlockSpec((1, 1, D), layer_map3),               # attn LN gamma
        pl.BlockSpec((1, 1, D), layer_map3),               # attn LN beta
        pl.BlockSpec((1, D, inner), layer_map3),           # wq (flat, lane-dense)
        pl.BlockSpec((1, D, inner), layer_map3),           # wk
        pl.BlockSpec((1, D, inner), layer_map3),           # wv
        pl.BlockSpec((1, inner, D), layer_map3),           # wo (flat)
        pl.BlockSpec((1, 1, D), layer_map3),               # ff LN gamma
        pl.BlockSpec((1, 1, D), layer_map3),               # ff LN beta
        pl.BlockSpec((1, D, Hm), layer_map3),              # w1
        pl.BlockSpec((1, 1, Hm), layer_map3),              # b1
        pl.BlockSpec((1, Hm, D), layer_map3),              # w2
        pl.BlockSpec((1, 1, D), layer_map3),               # b2
        pl.BlockSpec((1, D), const_map2),                  # final LN gamma
        pl.BlockSpec((1, D), const_map2),                  # final LN beta
        pl.BlockSpec((D, Cn), const_map2),                 # classifier weight
        pl.BlockSpec((1, Cn), const_map2),                 # classifier bias
    ]
    out_spec = pl.BlockSpec((1, BT, Cn), lambda b, l: (b, 0, 0))

    kernel = functools.partial(_vit_kernel, heads=heads, dim_head=dim_head, depth=depth,
                               batch_tile=BT, n_tok=N, compute_dtype=compute_dtype)

    # Advisory cost estimate (weight bytes counted once per batch tile, as re-streamed).
    flops_layer = B * (3 * 2 * N * D * inner + 4 * heads * N * N * dim_head
                       + 2 * N * inner * D + 4 * N * D * Hm)
    flops = 2 * B * N * Pd * D + depth * flops_layer + 2 * B * D * Cn
    transcendentals = B * depth * (heads * N * N + N * Hm)
    streamed = sum(params[k].size * params[k].dtype.itemsize
                   for k in ("ag", "ab", "wq", "wk", "wv", "wo",
                             "fg", "fb", "w1", "b1", "w2", "b2"))
    resident = sum(params[k].size * params[k].dtype.itemsize
                   for k in ("pos", "emb_g1", "emb_b1", "w_emb", "b_emb", "emb_g2",
                             "emb_b2", "ng", "nb", "w_head", "b_head"))
    bytes_accessed = int(patches.size * patches.dtype.itemsize
                         + Bt * streamed + resident + B * Cn * 4)

    logits = pl.pallas_call(
        kernel,
        out_shape=jax.ShapeDtypeStruct((Bt, BT, Cn), jnp.float32),
        grid=(Bt, depth),
        in_specs=in_specs,
        out_specs=out_spec,
        scratch_shapes=[pltpu.VMEM((M, D), jnp.float32)],  # residual stream x (BT*N, D)
        compiler_params=pltpu.CompilerParams(
            dimension_semantics=("parallel", "arbitrary"),
            # 48 MiB fits under v7x's 64 MiB physical VMEM; on v5e/v6e (128 MiB) this
            # could be raised (and w1/w2 given pl.Buffered(3)) if weight DMA is exposed.
            vmem_limit_bytes=48 * 1024 * 1024),
        cost_estimate=pl.CostEstimate(flops=int(flops),
                                      transcendentals=int(transcendentals),
                                      bytes_accessed=bytes_accessed),
    )(patches, pos_t,
      params["emb_g1"], params["emb_b1"], params["w_emb"], params["b_emb"],
      params["emb_g2"], params["emb_b2"],
      params["ag"], params["ab"], params["wq"], params["wk"], params["wv"], params["wo"],
      params["fg"], params["fb"], params["w1"], params["b1"], params["w2"], params["b2"],
      params["ng"], params["nb"], params["w_head"], params["b_head"])

    return logits.reshape(B, Cn)


# ----------------------------- pure-JAX reference (mirrors kernel numerics) --------------

def _ref_forward(img, params, *, patch_size, heads, dim_head, compute_dtype=jnp.bfloat16):
    cdt, f32 = compute_dtype, jnp.float32
    patches = _patchify(img, patch_size).astype(cdt)          # mirror kernel bf16 patches
    inner = heads * dim_head

    x = _layernorm(patches, params["emb_g1"], params["emb_b1"])
    x = jnp.einsum("bnp,pd->bnd", x.astype(cdt), params["w_emb"],
                   preferred_element_type=f32) + params["b_emb"]
    x = _layernorm(x, params["emb_g2"], params["emb_b2"])
    x = x + params["pos"]

    B, N, D = x.shape
    depth = params["wq"].shape[0]
    scale = dim_head ** -0.5
    for i in range(depth):
        xn = _layernorm(x, params["ag"][i], params["ab"][i]).astype(cdt)
        q = jnp.einsum("bnd,dk->bnk", xn, params["wq"][i], preferred_element_type=f32)
        k = jnp.einsum("bnd,dk->bnk", xn, params["wk"][i], preferred_element_type=f32)
        v = jnp.einsum("bnd,dk->bnk", xn, params["wv"][i], preferred_element_type=f32)
        q = q * scale
        qh = q.reshape(B, N, heads, dim_head).transpose(0, 2, 1, 3)
        kh = k.reshape(B, N, heads, dim_head).transpose(0, 2, 1, 3)
        vh = v.reshape(B, N, heads, dim_head).transpose(0, 2, 1, 3)
        dots = jnp.einsum("bhnd,bhmd->bhnm", qh.astype(cdt), kh.astype(cdt),
                          preferred_element_type=f32)
        attn = jax.nn.softmax(dots, axis=-1)
        out = jnp.einsum("bhnm,bhmd->bhnd", attn.astype(cdt), vh.astype(cdt),
                         preferred_element_type=f32)
        out = out.transpose(0, 2, 1, 3).reshape(B, N, inner)
        proj = jnp.einsum("bnk,kd->bnd", out.astype(cdt), params["wo"][i],
                          preferred_element_type=f32)
        x = x + proj

        xn = _layernorm(x, params["fg"][i], params["fb"][i]).astype(cdt)
        h1 = jnp.einsum("bnd,dm->bnm", xn, params["w1"][i],
                        preferred_element_type=f32) + params["b1"][i]
        h1 = _gelu_exact(h1)
        y = jnp.einsum("bnm,md->bnd", h1.astype(cdt), params["w2"][i],
                       preferred_element_type=f32) + params["b2"][i]
        x = x + y

    x = _layernorm(x, params["ng"], params["nb"])
    pooled = jnp.mean(x, axis=1)
    return jnp.einsum("bd,dc->bc", pooled.astype(cdt), params["w_head"],
                      preferred_element_type=f32) + params["b_head"]


# ----------------------------- synthetic parameter init ----------------------------------

def init_params(key, *, patch_dim, dim, depth, heads, dim_head, mlp_dim,
                num_classes, grid_h, grid_w, compute_dtype=jnp.bfloat16):
    cdt = compute_dtype
    inner = heads * dim_head
    keys = iter(jax.random.split(key, 16 + 12 * depth))

    def rnd(shape, scale):
        return scale * jax.random.normal(next(keys), shape, jnp.float32)

    def ln_params(d):
        return 1.0 + rnd((1, d), 0.1), rnd((1, d), 0.1)

    eg1, eb1 = ln_params(patch_dim)
    eg2, eb2 = ln_params(dim)
    ng, nb = ln_params(dim)

    ag, ab, wq, wk, wv, wo = [], [], [], [], [], []
    fg, fb, w1, b1, w2, b2 = [], [], [], [], [], []
    for _ in range(depth):
        g, b = ln_params(dim)
        ag.append(g); ab.append(b)
        wq.append(rnd((dim, inner), dim ** -0.5))
        wk.append(rnd((dim, inner), dim ** -0.5))
        wv.append(rnd((dim, inner), dim ** -0.5))
        wo.append(rnd((inner, dim), inner ** -0.5))
        g, b = ln_params(dim)
        fg.append(g); fb.append(b)
        w1.append(rnd((dim, mlp_dim), dim ** -0.5))
        b1.append(rnd((1, mlp_dim), 0.02))
        w2.append(rnd((mlp_dim, dim), mlp_dim ** -0.5))
        b2.append(rnd((1, dim), 0.02))

    return {
        "pos": posemb_sincos_2d(grid_h, grid_w, dim),
        "emb_g1": eg1, "emb_b1": eb1,
        "w_emb": rnd((patch_dim, dim), patch_dim ** -0.5).astype(cdt),
        "b_emb": rnd((1, dim), 0.02),
        "emb_g2": eg2, "emb_b2": eb2,
        "ag": jnp.stack(ag), "ab": jnp.stack(ab),
        "wq": jnp.stack(wq).astype(cdt), "wk": jnp.stack(wk).astype(cdt),
        "wv": jnp.stack(wv).astype(cdt), "wo": jnp.stack(wo).astype(cdt),
        "fg": jnp.stack(fg), "fb": jnp.stack(fb),
        "w1": jnp.stack(w1).astype(cdt), "b1": jnp.stack(b1),
        "w2": jnp.stack(w2).astype(cdt), "b2": jnp.stack(b2),
        "ng": ng, "nb": nb,
        "w_head": rnd((dim, num_classes), dim ** -0.5).astype(cdt),
        "b_head": rnd((1, num_classes), 0.02),
    }


# ----------------------------- main -------------------------------------------------------

if __name__ == "__main__":
    # Small SimpleViT: 16x16 RGB image, 4x4 patches -> 16 tokens, patch_dim=48.
    # dim / inner / mlp_dim are multiples of 128 so every big matmul is lane-dense.
    B, C, IMG, PATCH = 4, 3, 16, 4
    dim, depth, heads, dim_head, mlp_dim, num_classes = 128, 2, 4, 32, 256, 10
    BT = 2                                    # batch tile: B//BT = 2 parallel grid steps

    key = jax.random.PRNGKey(0)
    k_img, k_par = jax.random.split(key)
    img = jax.random.normal(k_img, (B, C, IMG, IMG), jnp.float32)

    params = init_params(k_par, patch_dim=C * PATCH * PATCH, dim=dim, depth=depth,
                         heads=heads, dim_head=dim_head, mlp_dim=mlp_dim,
                         num_classes=num_classes,
                         grid_h=IMG // PATCH, grid_w=IMG // PATCH)

    fwd = jax.jit(functools.partial(vit_forward, patch_size=PATCH, heads=heads,
                                    dim_head=dim_head, batch_tile=BT))
    logits = jax.block_until_ready(fwd(img, params))

    ref = _ref_forward(img, params, patch_size=PATCH, heads=heads, dim_head=dim_head)
    assert logits.shape == (B, num_classes)
    max_err = float(jnp.max(jnp.abs(logits - ref)))
    assert jnp.allclose(logits, ref, atol=3e-2, rtol=3e-2), \
        f"mismatch vs reference, max abs err {max_err}"

    print("KERNEL_OK")
</pallas_src>

<mosaic_0001>
module attributes {stable_mosaic.version = 11 : i64} {
  func.func @_vit_kernel(%arg0: i32, %arg1: i32, %arg2: memref<32x48xbf16, #tpu.memory_space<vmem>>, %arg3: memref<32x128xf32, #tpu.memory_space<vmem>>, %arg4: memref<1x48xf32, #tpu.memory_space<vmem>>, %arg5: memref<1x48xf32, #tpu.memory_space<vmem>>, %arg6: memref<48x128xbf16, #tpu.memory_space<vmem>>, %arg7: memref<1x128xf32, #tpu.memory_space<vmem>>, %arg8: memref<1x128xf32, #tpu.memory_space<vmem>>, %arg9: memref<1x128xf32, #tpu.memory_space<vmem>>, %arg10: memref<1x1x128xf32, #tpu.memory_space<vmem>>, %arg11: memref<1x1x128xf32, #tpu.memory_space<vmem>>, %arg12: memref<1x128x128xbf16, #tpu.memory_space<vmem>>, %arg13: memref<1x128x128xbf16, #tpu.memory_space<vmem>>, %arg14: memref<1x128x128xbf16, #tpu.memory_space<vmem>>, %arg15: memref<1x128x128xbf16, #tpu.memory_space<vmem>>, %arg16: memref<1x1x128xf32, #tpu.memory_space<vmem>>, %arg17: memref<1x1x128xf32, #tpu.memory_space<vmem>>, %arg18: memref<1x128x256xbf16, #tpu.memory_space<vmem>>, %arg19: memref<1x1x256xf32, #tpu.memory_space<vmem>>, %arg20: memref<1x256x128xbf16, #tpu.memory_space<vmem>>, %arg21: memref<1x1x128xf32, #tpu.memory_space<vmem>>, %arg22: memref<1x128xf32, #tpu.memory_space<vmem>>, %arg23: memref<1x128xf32, #tpu.memory_space<vmem>>, %arg24: memref<128x10xbf16, #tpu.memory_space<vmem>>, %arg25: memref<1x10xf32, #tpu.memory_space<vmem>>, %arg26: memref<1x2x10xf32, #tpu.memory_space<vmem>>, %arg27: memref<32x128xf32, #tpu.memory_space<vmem>>) attributes {dimension_semantics = [#tpu.dimension_semantics<parallel>, #tpu.dimension_semantics<arbitrary>], iteration_bounds = array<i64: 2, 2>, scalar_prefetch = 0 : i64, scratch_operands = 1 : i64, tpu.core_type = #tpu.core_type<tc>, window_params = [{transform_indices = @transform_0, window_bounds = array<i64: 32, 48>}, {pipeline_mode = #tpu.pipeline_mode<synchronous>, transform_indices = @transform_1, window_bounds = array<i64: 32, 128>}, {pipeline_mode = #tpu.pipeline_mode<synchronous>, transform_indices = @transform_2, window_bounds = array<i64: 1, 48>}, {pipeline_mode = #tpu.pipeline_mode<synchronous>, transform_indices = @transform_3, window_bounds = array<i64: 1, 48>}, {pipeline_mode = #tpu.pipeline_mode<synchronous>, transform_indices = @transform_4, window_bounds = array<i64: 48, 128>}, {pipeline_mode = #tpu.pipeline_mode<synchronous>, transform_indices = @transform_5, window_bounds = array<i64: 1, 128>}, {pipeline_mode = #tpu.pipeline_mode<synchronous>, transform_indices = @transform_6, window_bounds = array<i64: 1, 128>}, {pipeline_mode = #tpu.pipeline_mode<synchronous>, transform_indices = @transform_7, window_bounds = array<i64: 1, 128>}, {transform_indices = @transform_8, window_bounds = array<i64: 1, 1, 128>}, {transform_indices = @transform_9, window_bounds = array<i64: 1, 1, 128>}, {transform_indices = @transform_10, window_bounds = array<i64: 1, 128, 128>}, {transform_indices = @transform_11, window_bounds = array<i64: 1, 128, 128>}, {transform_indices = @transform_12, window_bounds = array<i64: 1, 128, 128>}, {transform_indices = @transform_13, window_bounds = array<i64: 1, 128, 128>}, {transform_indices = @transform_14, window_bounds = array<i64: 1, 1, 128>}, {transform_indices = @transform_15, window_bounds = array<i64: 1, 1, 128>}, {transform_indices = @transform_16, window_bounds = array<i64: 1, 128, 256>}, {transform_indices = @transform_17, window_bounds = array<i64: 1, 1, 256>}, {transform_indices = @transform_18, window_bounds = array<i64: 1, 256, 128>}, {transform_indices = @transform_19, window_bounds = array<i64: 1, 1, 128>}, {pipeline_mode = #tpu.pipeline_mode<synchronous>, transform_indices = @transform_20, window_bounds = array<i64: 1, 128>}, {pipeline_mode = #tpu.pipeline_mode<synchronous>, transform_indices = @transform_21, window_bounds = array<i64: 1, 128>}, {pipeline_mode = #tpu.pipeline_mode<synchronous>, transform_indices = @transform_22, window_bounds = array<i64: 128, 10>}, {pipeline_mode = #tpu.pipeline_mode<synchronous>, transform_indices = @transform_23, window_bounds = array<i64: 1, 10>}, {transform_indices = @transform_24, window_bounds = array<i64: 1, 2, 10>}]} {
    %c0_i32 = arith.constant 0 : i32
    %0 = arith.cmpi eq, %arg1, %c0_i32 : i32
    %1 = arith.extui %0 : i1 to i32
    %c0_i32_0 = arith.constant 0 : i32
    %2 = arith.cmpi ne, %1, %c0_i32_0 : i32
    scf.if %2 {
      %c0_92 = arith.constant 0 : index
      %c0_93 = arith.constant 0 : index
      %242 = vector.load %arg2[%c0_92, %c0_93] : memref<32x48xbf16, #tpu.memory_space<vmem>>, vector<32x48xbf16>
      %c0_94 = arith.constant 0 : index
      %c0_95 = arith.constant 0 : index
      %243 = vector.load %arg4[%c0_94, %c0_95] : memref<1x48xf32, #tpu.memory_space<vmem>>, vector<1x48xf32>
      %c0_96 = arith.constant 0 : index
      %c0_97 = arith.constant 0 : index
      %244 = vector.load %arg5[%c0_96, %c0_97] : memref<1x48xf32, #tpu.memory_space<vmem>>, vector<1x48xf32>
      %245 = arith.extf %242 : vector<32x48xbf16> to vector<32x48xf32>
      %cst_98 = arith.constant dense<0.000000e+00> : vector<32xf32>
      %246 = vector.multi_reduction <add>, %245, %cst_98 [1] : vector<32x48xf32> to vector<32xf32>
      %247 = vector.shape_cast %246 : vector<32xf32> to vector<32x1xf32>
      %cst_99 = arith.constant 4.800000e+01 : f32
      %248 = vector.broadcast %cst_99 : f32 to vector<32x1xf32>
      %249 = arith.divf %247, %248 : vector<32x1xf32>
      %250 = vector.broadcast %249 : vector<32x1xf32> to vector<32x48xf32>
      %251 = arith.subf %245, %250 : vector<32x48xf32>
      %252 = arith.mulf %251, %251 : vector<32x48xf32>
      %cst_100 = arith.constant dense<0.000000e+00> : vector<32xf32>
      %253 = vector.multi_reduction <add>, %252, %cst_100 [1] : vector<32x48xf32> to vector<32xf32>
      %254 = vector.shape_cast %253 : vector<32xf32> to vector<32x1xf32>
      %cst_101 = arith.constant 4.800000e+01 : f32
      %255 = vector.broadcast %cst_101 : f32 to vector<32x1xf32>
      %256 = arith.divf %254, %255 : vector<32x1xf32>
      %257 = vector.broadcast %249 : vector<32x1xf32> to vector<32x48xf32>
      %258 = arith.subf %245, %257 : vector<32x48xf32>
      %cst_102 = arith.constant 9.99999974E-6 : f32
      %259 = vector.broadcast %cst_102 : f32 to vector<32x1xf32>
      %260 = arith.addf %256, %259 : vector<32x1xf32>
      %261 = math.rsqrt %260 : vector<32x1xf32>
      %262 = vector.broadcast %261 : vector<32x1xf32> to vector<32x48xf32>
      %263 = arith.mulf %258, %262 : vector<32x48xf32>
      %264 = vector.broadcast %243 : vector<1x48xf32> to vector<32x48xf32>
      %265 = arith.mulf %263, %264 : vector<32x48xf32>
      %266 = vector.broadcast %244 : vector<1x48xf32> to vector<32x48xf32>
      %267 = arith.addf %265, %266 : vector<32x48xf32>
      %268 = arith.truncf %267 : vector<32x48xf32> to vector<32x48xbf16>
      %c0_103 = arith.constant 0 : index
      %c0_104 = arith.constant 0 : index
      %269 = vector.load %arg6[%c0_103, %c0_104] : memref<48x128xbf16, #tpu.memory_space<vmem>>, vector<48x128xbf16>
      %cst_105 = arith.constant dense<0.000000e+00> : vector<32x128xf32>
      %270 = tpu.matmul %268, %269, %cst_105 {dimension_numbers = #tpu.dot_dimension_numbers<[1], [0], [0], [1], [0, 0, 1, 1], [], []>} : vector<32x48xbf16>, vector<48x128xbf16>, vector<32x128xf32> -> vector<32x128xf32>
      %c0_106 = arith.constant 0 : index
      %c0_107 = arith.constant 0 : index
      %271 = vector.load %arg7[%c0_106, %c0_107] : memref<1x128xf32, #tpu.memory_space<vmem>>, vector<1x128xf32>
      %272 = vector.broadcast %271 : vector<1x128xf32> to vector<32x128xf32>
      %273 = arith.addf %270, %272 : vector<32x128xf32>
      %c0_108 = arith.constant 0 : index
      %c0_109 = arith.constant 0 : index
      %274 = vector.load %arg8[%c0_108, %c0_109] : memref<1x128xf32, #tpu.memory_space<vmem>>, vector<1x128xf32>
      %c0_110 = arith.constant 0 : index
      %c0_111 = arith.constant 0 : index
      %275 = vector.load %arg9[%c0_110, %c0_111] : memref<1x128xf32, #tpu.memory_space<vmem>>, vector<1x128xf32>
      %cst_112 = arith.constant dense<0.000000e+00> : vector<32xf32>
      %276 = vector.multi_reduction <add>, %273, %cst_112 [1] : vector<32x128xf32> to vector<32xf32>
      %277 = vector.shape_cast %276 : vector<32xf32> to vector<32x1xf32>
      %cst_113 = arith.constant 1.280000e+02 : f32
      %278 = vector.broadcast %cst_113 : f32 to vector<32x1xf32>
      %279 = arith.divf %277, %278 : vector<32x1xf32>
      %280 = vector.broadcast %279 : vector<32x1xf32> to vector<32x128xf32>
      %281 = arith.subf %273, %280 : vector<32x128xf32>
      %282 = arith.mulf %281, %281 : vector<32x128xf32>
      %cst_114 = arith.constant dense<0.000000e+00> : vector<32xf32>
      %283 = vector.multi_reduction <add>, %282, %cst_114 [1] : vector<32x128xf32> to vector<32xf32>
      %284 = vector.shape_cast %283 : vector<32xf32> to vector<32x1xf32>
      %cst_115 = arith.constant 1.280000e+02 : f32
      %285 = vector.broadcast %cst_115 : f32 to vector<32x1xf32>
      %286 = arith.divf %284, %285 : vector<32x1xf32>
      %287 = vector.broadcast %279 : vector<32x1xf32> to vector<32x128xf32>
      %288 = arith.subf %273, %287 : vector<32x128xf32>
      %cst_116 = arith.constant 9.99999974E-6 : f32
      %289 = vector.broadcast %cst_116 : f32 to vector<32x1xf32>
      %290 = arith.addf %286, %289 : vector<32x1xf32>
      %291 = math.rsqrt %290 : vector<32x1xf32>
      %292 = vector.broadcast %291 : vector<32x1xf32> to vector<32x128xf32>
      %293 = arith.mulf %288, %292 : vector<32x128xf32>
      %294 = vector.broadcast %274 : vector<1x128xf32> to vector<32x128xf32>
      %295 = arith.mulf %293, %294 : vector<32x128xf32>
      %296 = vector.broadcast %275 : vector<1x128xf32> to vector<32x128xf32>
      %297 = arith.addf %295, %296 : vector<32x128xf32>
      %c0_117 = arith.constant 0 : index
      %c0_118 = arith.constant 0 : index
      %298 = vector.load %arg3[%c0_117, %c0_118] : memref<32x128xf32, #tpu.memory_space<vmem>>, vector<32x128xf32>
      %299 = arith.addf %297, %298 : vector<32x128xf32>
      %c0_119 = arith.constant 0 : index
      %c0_120 = arith.constant 0 : index
      %300 = vector.load %arg27[%c0_119, %c0_120] : memref<32x128xf32, #tpu.memory_space<vmem>>, vector<32x128xf32>
      tpu.vector_store %arg27[%c0_119, %c0_120], %299 {strides = array<i32>} : memref<32x128xf32, #tpu.memory_space<vmem>>, vector<32x128xf32>,
    } else {
    }
    %c0 = arith.constant 0 : index
    %c0_1 = arith.constant 0 : index
    %3 = vector.load %arg27[%c0, %c0_1] : memref<32x128xf32, #tpu.memory_space<vmem>>, vector<32x128xf32>
    %c0_2 = arith.constant 0 : index
    %c0_3 = arith.constant 0 : index
    %c0_4 = arith.constant 0 : index
    %4 = vector.load %arg10[%c0_2, %c0_3, %c0_4] : memref<1x1x128xf32, #tpu.memory_space<vmem>>, vector<1x1x128xf32>
    %5 = vector.shape_cast %4 : vector<1x1x128xf32> to vector<1x128xf32>
    %c0_5 = arith.constant 0 : index
    %c0_6 = arith.constant 0 : index
    %c0_7 = arith.constant 0 : index
    %6 = vector.load %arg11[%c0_5, %c0_6, %c0_7] : memref<1x1x128xf32, #tpu.memory_space<vmem>>, vector<1x1x128xf32>
    %7 = vector.shape_cast %6 : vector<1x1x128xf32> to vector<1x128xf32>
    %cst = arith.constant dense<0.000000e+00> : vector<32xf32>
    %8 = vector.multi_reduction <add>, %3, %cst [1] : vector<32x128xf32> to vector<32xf32>
    %9 = vector.shape_cast %8 : vector<32xf32> to vector<32x1xf32>
    %cst_8 = arith.constant 1.280000e+02 : f32
    %10 = vector.broadcast %cst_8 : f32 to vector<32x1xf32>
    %11 = arith.divf %9, %10 : vector<32x1xf32>
    %12 = vector.broadcast %11 : vector<32x1xf32> to vector<32x128xf32>
    %13 = arith.subf %3, %12 : vector<32x128xf32>
    %14 = arith.mulf %13, %13 : vector<32x128xf32>
    %cst_9 = arith.constant dense<0.000000e+00> : vector<32xf32>
    %15 = vector.multi_reduction <add>, %14, %cst_9 [1] : vector<32x128xf32> to vector<32xf32>
    %16 = vector.shape_cast %15 : vector<32xf32> to vector<32x1xf32>
    %cst_10 = arith.constant 1.280000e+02 : f32
    %17 = vector.broadcast %cst_10 : f32 to vector<32x1xf32>
    %18 = arith.divf %16, %17 : vector<32x1xf32>
    %19 = vector.broadcast %11 : vector<32x1xf32> to vector<32x128xf32>
    %20 = arith.subf %3, %19 : vector<32x128xf32>
    %cst_11 = arith.constant 9.99999974E-6 : f32
    %21 = vector.broadcast %cst_11 : f32 to vector<32x1xf32>
    %22 = arith.addf %18, %21 : vector<32x1xf32>
    %23 = math.rsqrt %22 : vector<32x1xf32>
    %24 = vector.broadcast %23 : vector<32x1xf32> to vector<32x128xf32>
    %25 = arith.mulf %20, %24 : vector<32x128xf32>
    %26 = vector.broadcast %5 : vector<1x128xf32> to vector<32x128xf32>
    %27 = arith.mulf %25, %26 : vector<32x128xf32>
    %28 = vector.broadcast %7 : vector<1x128xf32> to vector<32x128xf32>
    %29 = arith.addf %27, %28 : vector<32x128xf32>
    %30 = arith.truncf %29 : vector<32x128xf32> to vector<32x128xbf16>
    %c0_12 = arith.constant 0 : index
    %c0_13 = arith.constant 0 : index
    %c0_14 = arith.constant 0 : index
    %31 = vector.load %arg12[%c0_12, %c0_13, %c0_14] : memref<1x128x128xbf16, #tpu.memory_space<vmem>>, vector<1x128x128xbf16>
    %32 = vector.shape_cast %31 : vector<1x128x128xbf16> to vector<128x128xbf16>
    %cst_15 = arith.constant dense<0.000000e+00> : vector<32x128xf32>
    %33 = tpu.matmul %30, %32, %cst_15 {dimension_numbers = #tpu.dot_dimension_numbers<[1], [0], [0], [1], [0, 0, 1, 1], [], []>} : vector<32x128xbf16>, vector<128x128xbf16>, vector<32x128xf32> -> vector<32x128xf32>
    %c0_16 = arith.constant 0 : index
    %c0_17 = arith.constant 0 : index
    %c0_18 = arith.constant 0 : index
    %34 = vector.load %arg13[%c0_16, %c0_17, %c0_18] : memref<1x128x128xbf16, #tpu.memory_space<vmem>>, vector<1x128x128xbf16>
    %35 = vector.shape_cast %34 : vector<1x128x128xbf16> to vector<128x128xbf16>
    %cst_19 = arith.constant dense<0.000000e+00> : vector<32x128xf32>
    %36 = tpu.matmul %30, %35, %cst_19 {dimension_numbers = #tpu.dot_dimension_numbers<[1], [0], [0], [1], [0, 0, 1, 1], [], []>} : vector<32x128xbf16>, vector<128x128xbf16>, vector<32x128xf32> -> vector<32x128xf32>
    %c0_20 = arith.constant 0 : index
    %c0_21 = arith.constant 0 : index
    %c0_22 = arith.constant 0 : index
    %37 = vector.load %arg14[%c0_20, %c0_21, %c0_22] : memref<1x128x128xbf16, #tpu.memory_space<vmem>>, vector<1x128x128xbf16>
    %38 = vector.shape_cast %37 : vector<1x128x128xbf16> to vector<128x128xbf16>
    %cst_23 = arith.constant dense<0.000000e+00> : vector<32x128xf32>
    %39 = tpu.matmul %30, %38, %cst_23 {dimension_numbers = #tpu.dot_dimension_numbers<[1], [0], [0], [1], [0, 0, 1, 1], [], []>} : vector<32x128xbf16>, vector<128x128xbf16>, vector<32x128xf32> -> vector<32x128xf32>
    %cst_24 = arith.constant 0.176776692 : f32
    %40 = vector.broadcast %cst_24 : f32 to vector<32x128xf32>
    %41 = arith.mulf %33, %40 : vector<32x128xf32>
    %42 = arith.truncf %41 : vector<32x128xf32> to vector<32x128xbf16>
    %43 = arith.truncf %36 : vector<32x128xf32> to vector<32x128xbf16>
    %44 = arith.truncf %39 : vector<32x128xf32> to vector<32x128xbf16>
    %45 = vector.extract_strided_slice %42 {offsets = [0, 0], sizes = [16, 128], strides = [1, 1]} : vector<32x128xbf16> to vector<16x128xbf16>
    %46 = vector.extract_strided_slice %43 {offsets = [0, 0], sizes = [16, 128], strides = [1, 1]} : vector<32x128xbf16> to vector<16x128xbf16>
    %47 = vector.extract_strided_slice %44 {offsets = [0, 0], sizes = [16, 128], strides = [1, 1]} : vector<32x128xbf16> to vector<16x128xbf16>
    %48 = vector.extract_strided_slice %45 {offsets = [0, 0], sizes = [16, 32], strides = [1, 1]} : vector<16x128xbf16> to vector<16x32xbf16>
    %49 = vector.extract_strided_slice %46 {offsets = [0, 0], sizes = [16, 32], strides = [1, 1]} : vector<16x128xbf16> to vector<16x32xbf16>
    %50 = vector.extract_strided_slice %47 {offsets = [0, 0], sizes = [16, 32], strides = [1, 1]} : vector<16x128xbf16> to vector<16x32xbf16>
    %cst_25 = arith.constant dense<0.000000e+00> : vector<16x16xf32>
    %51 = tpu.matmul %48, %49, %cst_25 {dimension_numbers = #tpu.dot_dimension_numbers<[1], [1], [0], [0], [0, 0, 1, 0], [], []>} : vector<16x32xbf16>, vector<16x32xbf16>, vector<16x16xf32> -> vector<16x16xf32>
    %cst_26 = arith.constant dense<0xFF800000> : vector<16xf32>
    %52 = vector.multi_reduction <maximumf>, %51, %cst_26 [1] : vector<16x16xf32> to vector<16xf32>
    %53 = vector.shape_cast %52 : vector<16xf32> to vector<16x1xf32>
    %54 = vector.broadcast %53 : vector<16x1xf32> to vector<16x16xf32>
    %55 = arith.subf %51, %54 : vector<16x16xf32>
    %56 = math.exp %55 : vector<16x16xf32>
    %cst_27 = arith.constant dense<0.000000e+00> : vector<16xf32>
    %57 = vector.multi_reduction <add>, %56, %cst_27 [1] : vector<16x16xf32> to vector<16xf32>
    %58 = vector.shape_cast %57 : vector<16xf32> to vector<16x1xf32>
    %59 = tpu.reciprocal %58 {approx = true} : vector<16x1xf32> -> vector<16x1xf32>
    %60 = vector.broadcast %59 : vector<16x1xf32> to vector<16x16xf32>
    %61 = arith.mulf %56, %60 : vector<16x16xf32>
    %62 = arith.truncf %61 : vector<16x16xf32> to vector<16x16xbf16>
    %cst_28 = arith.constant dense<0.000000e+00> : vector<16x32xf32>
    %63 = tpu.matmul %62, %50, %cst_28 {dimension_numbers = #tpu.dot_dimension_numbers<[1], [0], [0], [1], [0, 0, 1, 1], [], []>} : vector<16x16xbf16>, vector<16x32xbf16>, vector<16x32xf32> -> vector<16x32xf32>
    %64 = vector.extract_strided_slice %45 {offsets = [0, 32], sizes = [16, 32], strides = [1, 1]} : vector<16x128xbf16> to vector<16x32xbf16>
    %65 = vector.extract_strided_slice %46 {offsets = [0, 32], sizes = [16, 32], strides = [1, 1]} : vector<16x128xbf16> to vector<16x32xbf16>
    %66 = vector.extract_strided_slice %47 {offsets = [0, 32], sizes = [16, 32], strides = [1, 1]} : vector<16x128xbf16> to vector<16x32xbf16>
    %cst_29 = arith.constant dense<0.000000e+00> : vector<16x16xf32>
    %67 = tpu.matmul %64, %65, %cst_29 {dimension_numbers = #tpu.dot_dimension_numbers<[1], [1], [0], [0], [0, 0, 1, 0], [], []>} : vector<16x32xbf16>, vector<16x32xbf16>, vector<16x16xf32> -> vector<16x16xf32>
    %cst_30 = arith.constant dense<0xFF800000> : vector<16xf32>
    %68 = vector.multi_reduction <maximumf>, %67, %cst_30 [1] : vector<16x16xf32> to vector<16xf32>
    %69 = vector.shape_cast %68 : vector<16xf32> to vector<16x1xf32>
    %70 = vector.broadcast %69 : vector<16x1xf32> to vector<16x16xf32>
    %71 = arith.subf %67, %70 : vector<16x16xf32>
    %72 = math.exp %71 : vector<16x16xf32>
    %cst_31 = arith.constant dense<0.000000e+00> : vector<16xf32>
    %73 = vector.multi_reduction <add>, %72, %cst_31 [1] : vector<16x16xf32> to vector<16xf32>
    %74 = vector.shape_cast %73 : vector<16xf32> to vector<16x1xf32>
    %75 = tpu.reciprocal %74 {approx = true} : vector<16x1xf32> -> vector<16x1xf32>
    %76 = vector.broadcast %75 : vector<16x1xf32> to vector<16x16xf32>
    %77 = arith.mulf %72, %76 : vector<16x16xf32>
    %78 = arith.truncf %77 : vector<16x16xf32> to vector<16x16xbf16>
    %cst_32 = arith.constant dense<0.000000e+00> : vector<16x32xf32>
    %79 = tpu.matmul %78, %66, %cst_32 {dimension_numbers = #tpu.dot_dimension_numbers<[1], [0], [0], [1], [0, 0, 1, 1], [], []>} : vector<16x16xbf16>, vector<16x32xbf16>, vector<16x32xf32> -> vector<16x32xf32>
    %80 = vector.extract_strided_slice %45 {offsets = [0, 64], sizes = [16, 32], strides = [1, 1]} : vector<16x128xbf16> to vector<16x32xbf16>
    %81 = vector.extract_strided_slice %46 {offsets = [0, 64], sizes = [16, 32], strides = [1, 1]} : vector<16x128xbf16> to vector<16x32xbf16>
    %82 = vector.extract_strided_slice %47 {offsets = [0, 64], sizes = [16, 32], strides = [1, 1]} : vector<16x128xbf16> to vector<16x32xbf16>
    %cst_33 = arith.constant dense<0.000000e+00> : vector<16x16xf32>
    %83 = tpu.matmul %80, %81, %cst_33 {dimension_numbers = #tpu.dot_dimension_numbers<[1], [1], [0], [0], [0, 0, 1, 0], [], []>} : vector<16x32xbf16>, vector<16x32xbf16>, vector<16x16xf32> -> vector<16x16xf32>
    %cst_34 = arith.constant dense<0xFF800000> : vector<16xf32>
    %84 = vector.multi_reduction <maximumf>, %83, %cst_34 [1] : vector<16x16xf32> to vector<16xf32>
    %85 = vector.shape_cast %84 : vector<16xf32> to vector<16x1xf32>
    %86 = vector.broadcast %85 : vector<16x1xf32> to vector<16x16xf32>
    %87 = arith.subf %83, %86 : vector<16x16xf32>
    %88 = math.exp %87 : vector<16x16xf32>
    %cst_35 = arith.constant dense<0.000000e+00> : vector<16xf32>
    %89 = vector.multi_reduction <add>, %88, %cst_35 [1] : vector<16x16xf32> to vector<16xf32>
    %90 = vector.shape_cast %89 : vector<16xf32> to vector<16x1xf32>
    %91 = tpu.reciprocal %90 {approx = true} : vector<16x1xf32> -> vector<16x1xf32>
    %92 = vector.broadcast %91 : vector<16x1xf32> to vector<16x16xf32>
    %93 = arith.mulf %88, %92 : vector<16x16xf32>
    %94 = arith.truncf %93 : vector<16x16xf32> to vector<16x16xbf16>
    %cst_36 = arith.constant dense<0.000000e+00> : vector<16x32xf32>
    %95 = tpu.matmul %94, %82, %cst_36 {dimension_numbers = #tpu.dot_dimension_numbers<[1], [0], [0], [1], [0, 0, 1, 1], [], []>} : vector<16x16xbf16>, vector<16x32xbf16>, vector<16x32xf32> -> vector<16x32xf32>
    %96 = vector.extract_strided_slice %45 {offsets = [0, 96], sizes = [16, 32], strides = [1, 1]} : vector<16x128xbf16> to vector<16x32xbf16>
    %97 = vector.extract_strided_slice %46 {offsets = [0, 96], sizes = [16, 32], strides = [1, 1]} : vector<16x128xbf16> to vector<16x32xbf16>
    %98 = vector.extract_strided_slice %47 {offsets = [0, 96], sizes = [16, 32], strides = [1, 1]} : vector<16x128xbf16> to vector<16x32xbf16>
    %cst_37 = arith.constant dense<0.000000e+00> : vector<16x16xf32>
    %99 = tpu.matmul %96, %97, %cst_37 {dimension_numbers = #tpu.dot_dimension_numbers<[1], [1], [0], [0], [0, 0, 1, 0], [], []>} : vector<16x32xbf16>, vector<16x32xbf16>, vector<16x16xf32> -> vector<16x16xf32>
    %cst_38 = arith.constant dense<0xFF800000> : vector<16xf32>
    %100 = vector.multi_reduction <maximumf>, %99, %cst_38 [1] : vector<16x16xf32> to vector<16xf32>
    %101 = vector.shape_cast %100 : vector<16xf32> to vector<16x1xf32>
    %102 = vector.broadcast %101 : vector<16x1xf32> to vector<16x16xf32>
    %103 = arith.subf %99, %102 : vector<16x16xf32>
    %104 = math.exp %103 : vector<16x16xf32>
    %cst_39 = arith.constant dense<0.000000e+00> : vector<16xf32>
    %105 = vector.multi_reduction <add>, %104, %cst_39 [1] : vector<16x16xf32> to vector<16xf32>
    %106 = vector.shape_cast %105 : vector<16xf32> to vector<16x1xf32>
    %107 = tpu.reciprocal %106 {approx = true} : vector<16x1xf32> -> vector<16x1xf32>
    %108 = vector.broadcast %107 : vector<16x1xf32> to vector<16x16xf32>
    %109 = arith.mulf %104, %108 : vector<16x16xf32>
    %110 = arith.truncf %109 : vector<16x16xf32> to vector<16x16xbf16>
    %cst_40 = arith.constant dense<0.000000e+00> : vector<16x32xf32>
    %111 = tpu.matmul %110, %98, %cst_40 {dimension_numbers = #tpu.dot_dimension_numbers<[1], [0], [0], [1], [0, 0, 1, 1], [], []>} : vector<16x16xbf16>, vector<16x32xbf16>, vector<16x32xf32> -> vector<16x32xf32>
    %112 = tpu.concatenate %63, %79, %95, %111 in 1 : vector<16x32xf32>, vector<16x32xf32>, vector<16x32xf32>, vector<16x32xf32> -> vector<16x128xf32>
    %113 = vector.extract_strided_slice %42 {offsets = [16, 0], sizes = [16, 128], strides = [1, 1]} : vector<32x128xbf16> to vector<16x128xbf16>
    %114 = vector.extract_strided_slice %43 {offsets = [16, 0], sizes = [16, 128], strides = [1, 1]} : vector<32x128xbf16> to vector<16x128xbf16>
    %115 = vector.extract_strided_slice %44 {offsets = [16, 0], sizes = [16, 128], strides = [1, 1]} : vector<32x128xbf16> to vector<16x128xbf16>
    %116 = vector.extract_strided_slice %113 {offsets = [0, 0], sizes = [16, 32], strides = [1, 1]} : vector<16x128xbf16> to vector<16x32xbf16>
    %117 = vector.extract_strided_slice %114 {offsets = [0, 0], sizes = [16, 32], strides = [1, 1]} : vector<16x128xbf16> to vector<16x32xbf16>
    %118 = vector.extract_strided_slice %115 {offsets = [0, 0], sizes = [16, 32], strides = [1, 1]} : vector<16x128xbf16> to vector<16x32xbf16>
    %cst_41 = arith.constant dense<0.000000e+00> : vector<16x16xf32>
    %119 = tpu.matmul %116, %117, %cst_41 {dimension_numbers = #tpu.dot_dimension_numbers<[1], [1], [0], [0], [0, 0, 1, 0], [], []>} : vector<16x32xbf16>, vector<16x32xbf16>, vector<16x16xf32> -> vector<16x16xf32>
    %cst_42 = arith.constant dense<0xFF800000> : vector<16xf32>
    %120 = vector.multi_reduction <maximumf>, %119, %cst_42 [1] : vector<16x16xf32> to vector<16xf32>
    %121 = vector.shape_cast %120 : vector<16xf32> to vector<16x1xf32>
    %122 = vector.broadcast %121 : vector<16x1xf32> to vector<16x16xf32>
    %123 = arith.subf %119, %122 : vector<16x16xf32>
    %124 = math.exp %123 : vector<16x16xf32>
    %cst_43 = arith.constant dense<0.000000e+00> : vector<16xf32>
    %125 = vector.multi_reduction <add>, %124, %cst_43 [1] : vector<16x16xf32> to vector<16xf32>
    %126 = vector.shape_cast %125 : vector<16xf32> to vector<16x1xf32>
    %127 = tpu.reciprocal %126 {approx = true} : vector<16x1xf32> -> vector<16x1xf32>
    %128 = vector.broadcast %127 : vector<16x1xf32> to vector<16x16xf32>
    %129 = arith.mulf %124, %128 : vector<16x16xf32>
    %130 = arith.truncf %129 : vector<16x16xf32> to vector<16x16xbf16>
    %cst_44 = arith.constant dense<0.000000e+00> : vector<16x32xf32>
    %131 = tpu.matmul %130, %118, %cst_44 {dimension_numbers = #tpu.dot_dimension_numbers<[1], [0], [0], [1], [0, 0, 1, 1], [], []>} : vector<16x16xbf16>, vector<16x32xbf16>, vector<16x32xf32> -> vector<16x32xf32>
    %132 = vector.extract_strided_slice %113 {offsets = [0, 32], sizes = [16, 32], strides = [1, 1]} : vector<16x128xbf16> to vector<16x32xbf16>
    %133 = vector.extract_strided_slice %114 {offsets = [0, 32], sizes = [16, 32], strides = [1, 1]} : vector<16x128xbf16> to vector<16x32xbf16>
    %134 = vector.extract_strided_slice %115 {offsets = [0, 32], sizes = [16, 32], strides = [1, 1]} : vector<16x128xbf16> to vector<16x32xbf16>
    %cst_45 = arith.constant dense<0.000000e+00> : vector<16x16xf32>
    %135 = tpu.matmul %132, %133, %cst_45 {dimension_numbers = #tpu.dot_dimension_numbers<[1], [1], [0], [0], [0, 0, 1, 0], [], []>} : vector<16x32xbf16>, vector<16x32xbf16>, vector<16x16xf32> -> vector<16x16xf32>
    %cst_46 = arith.constant dense<0xFF800000> : vector<16xf32>
    %136 = vector.multi_reduction <maximumf>, %135, %cst_46 [1] : vector<16x16xf32> to vector<16xf32>
    %137 = vector.shape_cast %136 : vector<16xf32> to vector<16x1xf32>
    %138 = vector.broadcast %137 : vector<16x1xf32> to vector<16x16xf32>
    %139 = arith.subf %135, %138 : vector<16x16xf32>
    %140 = math.exp %139 : vector<16x16xf32>
    %cst_47 = arith.constant dense<0.000000e+00> : vector<16xf32>
    %141 = vector.multi_reduction <add>, %140, %cst_47 [1] : vector<16x16xf32> to vector<16xf32>
    %142 = vector.shape_cast %141 : vector<16xf32> to vector<16x1xf32>
    %143 = tpu.reciprocal %142 {approx = true} : vector<16x1xf32> -> vector<16x1xf32>
    %144 = vector.broadcast %143 : vector<16x1xf32> to vector<16x16xf32>
    %145 = arith.mulf %140, %144 : vector<16x16xf32>
    %146 = arith.truncf %145 : vector<16x16xf32> to vector<16x16xbf16>
    %cst_48 = arith.constant dense<0.000000e+00> : vector<16x32xf32>
    %147 = tpu.matmul %146, %134, %cst_48 {dimension_numbers = #tpu.dot_dimension_numbers<[1], [0], [0], [1], [0, 0, 1, 1], [], []>} : vector<16x16xbf16>, vector<16x32xbf16>, vector<16x32xf32> -> vector<16x32xf32>
    %148 = vector.extract_strided_slice %113 {offsets = [0, 64], sizes = [16, 32], strides = [1, 1]} : vector<16x128xbf16> to vector<16x32xbf16>
    %149 = vector.extract_strided_slice %114 {offsets = [0, 64], sizes = [16, 32], strides = [1, 1]} : vector<16x128xbf16> to vector<16x32xbf16>
    %150 = vector.extract_strided_slice %115 {offsets = [0, 64], sizes = [16, 32], strides = [1, 1]} : vector<16x128xbf16> to vector<16x32xbf16>
    %cst_49 = arith.constant dense<0.000000e+00> : vector<16x16xf32>
    %151 = tpu.matmul %148, %149, %cst_49 {dimension_numbers = #tpu.dot_dimension_numbers<[1], [1], [0], [0], [0, 0, 1, 0], [], []>} : vector<16x32xbf16>, vector<16x32xbf16>, vector<16x16xf32> -> vector<16x16xf32>
    %cst_50 = arith.constant dense<0xFF800000> : vector<16xf32>
    %152 = vector.multi_reduction <maximumf>, %151, %cst_50 [1] : vector<16x16xf32> to vector<16xf32>
    %153 = vector.shape_cast %152 : vector<16xf32> to vector<16x1xf32>
    %154 = vector.broadcast %153 : vector<16x1xf32> to vector<16x16xf32>
    %155 = arith.subf %151, %154 : vector<16x16xf32>
    %156 = math.exp %155 : vector<16x16xf32>
    %cst_51 = arith.constant dense<0.000000e+00> : vector<16xf32>
    %157 = vector.multi_reduction <add>, %156, %cst_51 [1] : vector<16x16xf32> to vector<16xf32>
    %158 = vector.shape_cast %157 : vector<16xf32> to vector<16x1xf32>
    %159 = tpu.reciprocal %158 {approx = true} : vector<16x1xf32> -> vector<16x1xf32>
    %160 = vector.broadcast %159 : vector<16x1xf32> to vector<16x16xf32>
    %161 = arith.mulf %156, %160 : vector<16x16xf32>
    %162 = arith.truncf %161 : vector<16x16xf32> to vector<16x16xbf16>
    %cst_52 = arith.constant dense<0.000000e+00> : vector<16x32xf32>
    %163 = tpu.matmul %162, %150, %cst_52 {dimension_numbers = #tpu.dot_dimension_numbers<[1], [0], [0], [1], [0, 0, 1, 1], [], []>} : vector<16x16xbf16>, vector<16x32xbf16>, vector<16x32xf32> -> vector<16x32xf32>
    %164 = vector.extract_strided_slice %113 {offsets = [0, 96], sizes = [16, 32], strides = [1, 1]} : vector<16x128xbf16> to vector<16x32xbf16>
    %165 = vector.extract_strided_slice %114 {offsets = [0, 96], sizes = [16, 32], strides = [1, 1]} : vector<16x128xbf16> to vector<16x32xbf16>
    %166 = vector.extract_strided_slice %115 {offsets = [0, 96], sizes = [16, 32], strides = [1, 1]} : vector<16x128xbf16> to vector<16x32xbf16>
    %cst_53 = arith.constant dense<0.000000e+00> : vector<16x16xf32>
    %167 = tpu.matmul %164, %165, %cst_53 {dimension_numbers = #tpu.dot_dimension_numbers<[1], [1], [0], [0], [0, 0, 1, 0], [], []>} : vector<16x32xbf16>, vector<16x32xbf16>, vector<16x16xf32> -> vector<16x16xf32>
    %cst_54 = arith.constant dense<0xFF800000> : vector<16xf32>
    %168 = vector.multi_reduction <maximumf>, %167, %cst_54 [1] : vector<16x16xf32> to vector<16xf32>
    %169 = vector.shape_cast %168 : vector<16xf32> to vector<16x1xf32>
    %170 = vector.broadcast %169 : vector<16x1xf32> to vector<16x16xf32>
    %171 = arith.subf %167, %170 : vector<16x16xf32>
    %172 = math.exp %171 : vector<16x16xf32>
    %cst_55 = arith.constant dense<0.000000e+00> : vector<16xf32>
    %173 = vector.multi_reduction <add>, %172, %cst_55 [1] : vector<16x16xf32> to vector<16xf32>
    %174 = vector.shape_cast %173 : vector<16xf32> to vector<16x1xf32>
    %175 = tpu.reciprocal %174 {approx = true} : vector<16x1xf32> -> vector<16x1xf32>
    %176 = vector.broadcast %175 : vector<16x1xf32> to vector<16x16xf32>
    %177 = arith.mulf %172, %176 : vector<16x16xf32>
    %178 = arith.truncf %177 : vector<16x16xf32> to vector<16x16xbf16>
    %cst_56 = arith.constant dense<0.000000e+00> : vector<16x32xf32>
    %179 = tpu.matmul %178, %166, %cst_56 {dimension_numbers = #tpu.dot_dimension_numbers<[1], [0], [0], [1], [0, 0, 1, 1], [], []>} : vector<16x16xbf16>, vector<16x32xbf16>, vector<16x32xf32> -> vector<16x32xf32>
    %180 = tpu.concatenate %131, %147, %163, %179 in 1 : vector<16x32xf32>, vector<16x32xf32>, vector<16x32xf32>, vector<16x32xf32> -> vector<16x128xf32>
    %181 = tpu.concatenate %112, %180 in 0 : vector<16x128xf32>, vector<16x128xf32> -> vector<32x128xf32>
    %182 = arith.truncf %181 : vector<32x128xf32> to vector<32x128xbf16>
    %c0_57 = arith.constant 0 : index
    %c0_58 = arith.constant 0 : index
    %c0_59 = arith.constant 0 : index
    %183 = vector.load %arg15[%c0_57, %c0_58, %c0_59] : memref<1x128x128xbf16, #tpu.memory_space<vmem>>, vector<1x128x128xbf16>
    %184 = vector.shape_cast %183 : vector<1x128x128xbf16> to vector<128x128xbf16>
    %cst_60 = arith.constant dense<0.000000e+00> : vector<32x128xf32>
    %185 = tpu.matmul %182, %184, %cst_60 {dimension_numbers = #tpu.dot_dimension_numbers<[1], [0], [0], [1], [0, 0, 1, 1], [], []>} : vector<32x128xbf16>, vector<128x128xbf16>, vector<32x128xf32> -> vector<32x128xf32>
    %186 = arith.addf %3, %185 : vector<32x128xf32>
    %c0_61 = arith.constant 0 : index
    %c0_62 = arith.constant 0 : index
    %c0_63 = arith.constant 0 : index
    %187 = vector.load %arg16[%c0_61, %c0_62, %c0_63] : memref<1x1x128xf32, #tpu.memory_space<vmem>>, vector<1x1x128xf32>
    %188 = vector.shape_cast %187 : vector<1x1x128xf32> to vector<1x128xf32>
    %c0_64 = arith.constant 0 : index
    %c0_65 = arith.constant 0 : index
    %c0_66 = arith.constant 0 : index
    %189 = vector.load %arg17[%c0_64, %c0_65, %c0_66] : memref<1x1x128xf32, #tpu.memory_space<vmem>>, vector<1x1x128xf32>
    %190 = vector.shape_cast %189 : vector<1x1x128xf32> to vector<1x128xf32>
    %cst_67 = arith.constant dense<0.000000e+00> : vector<32xf32>
    %191 = vector.multi_reduction <add>, %186, %cst_67 [1] : vector<32x128xf32> to vector<32xf32>
    %192 = vector.shape_cast %191 : vector<32xf32> to vector<32x1xf32>
    %cst_68 = arith.constant 1.280000e+02 : f32
    %193 = vector.broadcast %cst_68 : f32 to vector<32x1xf32>
    %194 = arith.divf %192, %193 : vector<32x1xf32>
    %195 = vector.broadcast %194 : vector<32x1xf32> to vector<32x128xf32>
    %196 = arith.subf %186, %195 : vector<32x128xf32>
    %197 = arith.mulf %196, %196 : vector<32x128xf32>
    %cst_69 = arith.constant dense<0.000000e+00> : vector<32xf32>
    %198 = vector.multi_reduction <add>, %197, %cst_69 [1] : vector<32x128xf32> to vector<32xf32>
    %199 = vector.shape_cast %198 : vector<32xf32> to vector<32x1xf32>
    %cst_70 = arith.constant 1.280000e+02 : f32
    %200 = vector.broadcast %cst_70 : f32 to vector<32x1xf32>
    %201 = arith.divf %199, %200 : vector<32x1xf32>
    %202 = vector.broadcast %194 : vector<32x1xf32> to vector<32x128xf32>
    %203 = arith.subf %186, %202 : vector<32x128xf32>
    %cst_71 = arith.constant 9.99999974E-6 : f32
    %204 = vector.broadcast %cst_71 : f32 to vector<32x1xf32>
    %205 = arith.addf %201, %204 : vector<32x1xf32>
    %206 = math.rsqrt %205 : vector<32x1xf32>
    %207 = vector.broadcast %206 : vector<32x1xf32> to vector<32x128xf32>
    %208 = arith.mulf %203, %207 : vector<32x128xf32>
    %209 = vector.broadcast %188 : vector<1x128xf32> to vector<32x128xf32>
    %210 = arith.mulf %208, %209 : vector<32x128xf32>
    %211 = vector.broadcast %190 : vector<1x128xf32> to vector<32x128xf32>
    %212 = arith.addf %210, %211 : vector<32x128xf32>
    %213 = arith.truncf %212 : vector<32x128xf32> to vector<32x128xbf16>
    %c0_72 = arith.constant 0 : index
    %c0_73 = arith.constant 0 : index
    %c0_74 = arith.constant 0 : index
    %214 = vector.load %arg18[%c0_72, %c0_73, %c0_74] : memref<1x128x256xbf16, #tpu.memory_space<vmem>>, vector<1x128x256xbf16>
    %215 = vector.shape_cast %214 : vector<1x128x256xbf16> to vector<128x256xbf16>
    %cst_75 = arith.constant dense<0.000000e+00> : vector<32x256xf32>
    %216 = tpu.matmul %213, %215, %cst_75 {dimension_numbers = #tpu.dot_dimension_numbers<[1], [0], [0], [1], [0, 0, 1, 1], [], []>} : vector<32x128xbf16>, vector<128x256xbf16>, vector<32x256xf32> -> vector<32x256xf32>
    %c0_76 = arith.constant 0 : index
    %c0_77 = arith.constant 0 : index
    %c0_78 = arith.constant 0 : index
    %217 = vector.load %arg19[%c0_76, %c0_77, %c0_78] : memref<1x1x256xf32, #tpu.memory_space<vmem>>, vector<1x1x256xf32>
    %218 = vector.shape_cast %217 : vector<1x1x256xf32> to vector<1x256xf32>
    %219 = vector.broadcast %218 : vector<1x256xf32> to vector<32x256xf32>
    %220 = arith.addf %216, %219 : vector<32x256xf32>
    %cst_79 = arith.constant 5.000000e-01 : f32
    %221 = vector.broadcast %cst_79 : f32 to vector<32x256xf32>
    %222 = arith.mulf %221, %220 : vector<32x256xf32>
    %cst_80 = arith.constant 0.707106769 : f32
    %223 = vector.broadcast %cst_80 : f32 to vector<32x256xf32>
    %224 = arith.mulf %220, %223 : vector<32x256xf32>
    %225 = math.erf %224 : vector<32x256xf32>
    %cst_81 = arith.constant 1.000000e+00 : f32
    %226 = vector.broadcast %cst_81 : f32 to vector<32x256xf32>
    %227 = arith.addf %226, %225 : vector<32x256xf32>
    %228 = arith.mulf %222, %227 : vector<32x256xf32>
    %229 = arith.truncf %228 : vector<32x256xf32> to vector<32x256xbf16>
    %c0_82 = arith.constant 0 : index
    %c0_83 = arith.constant 0 : index
    %c0_84 = arith.constant 0 : index
    %230 = vector.load %arg20[%c0_82, %c0_83, %c0_84] : memref<1x256x128xbf16, #tpu.memory_space<vmem>>, vector<1x256x128xbf16>
    %231 = vector.shape_cast %230 : vector<1x256x128xbf16> to vector<256x128xbf16>
    %cst_85 = arith.constant dense<0.000000e+00> : vector<32x128xf32>
    %232 = tpu.matmul %229, %231, %cst_85 {dimension_numbers = #tpu.dot_dimension_numbers<[1], [0], [0], [1], [0, 0, 1, 1], [], []>} : vector<32x256xbf16>, vector<256x128xbf16>, vector<32x128xf32> -> vector<32x128xf32>
    %c0_86 = arith.constant 0 : index
    %c0_87 = arith.constant 0 : index
    %c0_88 = arith.constant 0 : index
    %233 = vector.load %arg21[%c0_86, %c0_87, %c0_88] : memref<1x1x128xf32, #tpu.memory_space<vmem>>, vector<1x1x128xf32>
    %234 = vector.shape_cast %233 : vector<1x1x128xf32> to vector<1x128xf32>
    %235 = vector.broadcast %234 : vector<1x128xf32> to vector<32x128xf32>
    %236 = arith.addf %232, %235 : vector<32x128xf32>
    %237 = arith.addf %186, %236 : vector<32x128xf32>
    %c0_89 = arith.constant 0 : index
    %c0_90 = arith.constant 0 : index
    %238 = vector.load %arg27[%c0_89, %c0_90] : memref<32x128xf32, #tpu.memory_space<vmem>>, vector<32x128xf32>
    tpu.vector_store %arg27[%c0_89, %c0_90], %237 {strides = array<i32>} : memref<32x128xf32, #tpu.memory_space<vmem>>, vector<32x128xf32>,
    %c1_i32 = arith.constant 1 : i32
    %239 = arith.cmpi eq, %arg1, %c1_i32 : i32
    %240 = arith.extui %239 : i1 to i32
    %c0_i32_91 = arith.constant 0 : i32
    %241 = arith.cmpi ne, %240, %c0_i32_91 : i32
    scf.if %241 {
      %c0_92 = arith.constant 0 : index
      %c0_93 = arith.constant 0 : index
      %242 = vector.load %arg22[%c0_92, %c0_93] : memref<1x128xf32, #tpu.memory_space<vmem>>, vector<1x128xf32>
      %c0_94 = arith.constant 0 : index
      %c0_95 = arith.constant 0 : index
      %243 = vector.load %arg23[%c0_94, %c0_95] : memref<1x128xf32, #tpu.memory_space<vmem>>, vector<1x128xf32>
      %cst_96 = arith.constant dense<0.000000e+00> : vector<32xf32>
      %244 = vector.multi_reduction <add>, %237, %cst_96 [1] : vector<32x128xf32> to vector<32xf32>
      %245 = vector.shape_cast %244 : vector<32xf32> to vector<32x1xf32>
      %cst_97 = arith.constant 1.280000e+02 : f32
      %246 = vector.broadcast %cst_97 : f32 to vector<32x1xf32>
      %247 = arith.divf %245, %246 : vector<32x1xf32>
      %248 = vector.broadcast %247 : vector<32x1xf32> to vector<32x128xf32>
      %249 = arith.subf %237, %248 : vector<32x128xf32>
      %250 = arith.mulf %249, %249 : vector<32x128xf32>
      %cst_98 = arith.constant dense<0.000000e+00> : vector<32xf32>
      %251 = vector.multi_reduction <add>, %250, %cst_98 [1] : vector<32x128xf32> to vector<32xf32>
      %252 = vector.shape_cast %251 : vector<32xf32> to vector<32x1xf32>
      %cst_99 = arith.constant 1.280000e+02 : f32
      %253 = vector.broadcast %cst_99 : f32 to vector<32x1xf32>
      %254 = arith.divf %252, %253 : vector<32x1xf32>
      %255 = vector.broadcast %247 : vector<32x1xf32> to vector<32x128xf32>
      %256 = arith.subf %237, %255 : vector<32x128xf32>
      %cst_100 = arith.constant 9.99999974E-6 : f32
      %257 = vector.broadcast %cst_100 : f32 to vector<32x1xf32>
      %258 = arith.addf %254, %257 : vector<32x1xf32>
      %259 = math.rsqrt %258 : vector<32x1xf32>
      %260 = vector.broadcast %259 : vector<32x1xf32> to vector<32x128xf32>
      %261 = arith.mulf %256, %260 : vector<32x128xf32>
      %262 = vector.broadcast %242 : vector<1x128xf32> to vector<32x128xf32>
      %263 = arith.mulf %261, %262 : vector<32x128xf32>
      %264 = vector.broadcast %243 : vector<1x128xf32> to vector<32x128xf32>
      %265 = arith.addf %263, %264 : vector<32x128xf32>
      %266 = vector.extract_strided_slice %265 {offsets = [0, 0], sizes = [16, 128], strides = [1, 1]} : vector<32x128xf32> to vector<16x128xf32>
      %cst_101 = arith.constant dense<0.000000e+00> : vector<128xf32>
      %267 = vector.multi_reduction <add>, %266, %cst_101 [0] : vector<16x128xf32> to vector<128xf32>
      %268 = vector.shape_cast %267 : vector<128xf32> to vector<1x128xf32>
      %cst_102 = arith.constant 1.600000e+01 : f32
      %269 = vector.broadcast %cst_102 : f32 to vector<1x128xf32>
      %270 = arith.divf %268, %269 : vector<1x128xf32>
      %271 = vector.extract_strided_slice %265 {offsets = [16, 0], sizes = [16, 128], strides = [1, 1]} : vector<32x128xf32> to vector<16x128xf32>
      %cst_103 = arith.constant dense<0.000000e+00> : vector<128xf32>
      %272 = vector.multi_reduction <add>, %271, %cst_103 [0] : vector<16x128xf32> to vector<128xf32>
      %273 = vector.shape_cast %272 : vector<128xf32> to vector<1x128xf32>
      %cst_104 = arith.constant 1.600000e+01 : f32
      %274 = vector.broadcast %cst_104 : f32 to vector<1x128xf32>
      %275 = arith.divf %273, %274 : vector<1x128xf32>
      %276 = tpu.concatenate %270, %275 in 0 : vector<1x128xf32>, vector<1x128xf32> -> vector<2x128xf32>
      %277 = arith.truncf %276 : vector<2x128xf32> to vector<2x128xbf16>
      %c0_105 = arith.constant 0 : index
      %c0_106 = arith.constant 0 : index
      %278 = vector.load %arg24[%c0_105, %c0_106] : memref<128x10xbf16, #tpu.memory_space<vmem>>, vector<128x10xbf16>
      %cst_107 = arith.constant dense<0.000000e+00> : vector<2x10xf32>
      %279 = tpu.matmul %277, %278, %cst_107 {dimension_numbers = #tpu.dot_dimension_numbers<[1], [0], [0], [1], [0, 0, 1, 1], [], []>} : vector<2x128xbf16>, vector<128x10xbf16>, vector<2x10xf32> -> vector<2x10xf32>
      %c0_108 = arith.constant 0 : index
      %c0_109 = arith.constant 0 : index
      %280 = vector.load %arg25[%c0_108, %c0_109] : memref<1x10xf32, #tpu.memory_space<vmem>>, vector<1x10xf32>
      %281 = vector.broadcast %280 : vector<1x10xf32> to vector<2x10xf32>
      %282 = arith.addf %279, %281 : vector<2x10xf32>
      %c0_110 = arith.constant 0 : index
      %c0_111 = arith.constant 0 : index
      %c0_112 = arith.constant 0 : index
      %283 = vector.load %arg26[%c0_110, %c0_111, %c0_112] : memref<1x2x10xf32, #tpu.memory_space<vmem>>, vector<1x2x10xf32>
      %284 = vector.shape_cast %283 : vector<1x2x10xf32> to vector<2x10xf32>
      %285 = vector.shape_cast %282 : vector<2x10xf32> to vector<1x2x10xf32>
      tpu.vector_store %arg26[%c0_110, %c0_111, %c0_112], %285 {strides = array<i32>} : memref<1x2x10xf32, #tpu.memory_space<vmem>>, vector<1x2x10xf32>,
    } else {
    }
    return
  }
  func.func @transform_0(%arg0: i32, %arg1: i32) -> (i32, i32) {
    %c0_i32 = arith.constant 0 : i32
    %c0_i32_0 = arith.constant 0 : i32
    return %arg0, %c0_i32 : i32, i32
  }
  func.func @transform_1(%arg0: i32, %arg1: i32) -> (i32, i32) {
    %c0_i32 = arith.constant 0 : i32
    %c0_i32_0 = arith.constant 0 : i32
    %c0_i32_1 = arith.constant 0 : i32
    return %c0_i32, %c0_i32_0 : i32, i32
  }
  func.func @transform_2(%arg0: i32, %arg1: i32) -> (i32, i32) {
    %c0_i32 = arith.constant 0 : i32
    %c0_i32_0 = arith.constant 0 : i32
    %c0_i32_1 = arith.constant 0 : i32
    return %c0_i32, %c0_i32_0 : i32, i32
  }
  func.func @transform_3(%arg0: i32, %arg1: i32) -> (i32, i32) {
    %c0_i32 = arith.constant 0 : i32
    %c0_i32_0 = arith.constant 0 : i32
    %c0_i32_1 = arith.constant 0 : i32
    return %c0_i32, %c0_i32_0 : i32, i32
  }
  func.func @transform_4(%arg0: i32, %arg1: i32) -> (i32, i32) {
    %c0_i32 = arith.constant 0 : i32
    %c0_i32_0 = arith.constant 0 : i32
    %c0_i32_1 = arith.constant 0 : i32
    return %c0_i32, %c0_i32_0 : i32, i32
  }
  func.func @transform_5(%arg0: i32, %arg1: i32) -> (i32, i32) {
    %c0_i32 = arith.constant 0 : i32
    %c0_i32_0 = arith.constant 0 : i32
    %c0_i32_1 = arith.constant 0 : i32
    return %c0_i32, %c0_i32_0 : i32, i32
  }
  func.func @transform_6(%arg0: i32, %arg1: i32) -> (i32, i32) {
    %c0_i32 = arith.constant 0 : i32
    %c0_i32_0 = arith.constant 0 : i32
    %c0_i32_1 = arith.constant 0 : i32
    return %c0_i32, %c0_i32_0 : i32, i32
  }
  func.func @transform_7(%arg0: i32, %arg1: i32) -> (i32, i32) {
    %c0_i32 = arith.constant 0 : i32
    %c0_i32_0 = arith.constant 0 : i32
    %c0_i32_1 = arith.constant 0 : i32
    return %c0_i32, %c0_i32_0 : i32, i32
  }
  func.func @transform_8(%arg0: i32, %arg1: i32) -> (i32, i32, i32) {
    %c0_i32 = arith.constant 0 : i32
    %c0_i32_0 = arith.constant 0 : i32
    %c0_i32_1 = arith.constant 0 : i32
    return %arg1, %c0_i32, %c0_i32_0 : i32, i32, i32
  }
  func.func @transform_9(%arg0: i32, %arg1: i32) -> (i32, i32, i32) {
    %c0_i32 = arith.constant 0 : i32
    %c0_i32_0 = arith.constant 0 : i32
    %c0_i32_1 = arith.constant 0 : i32
    return %arg1, %c0_i32, %c0_i32_0 : i32, i32, i32
  }
  func.func @transform_10(%arg0: i32, %arg1: i32) -> (i32, i32, i32) {
    %c0_i32 = arith.constant 0 : i32
    %c0_i32_0 = arith.constant 0 : i32
    %c0_i32_1 = arith.constant 0 : i32
    return %arg1, %c0_i32, %c0_i32_0 : i32, i32, i32
  }
  func.func @transform_11(%arg0: i32, %arg1: i32) -> (i32, i32, i32) {
    %c0_i32 = arith.constant 0 : i32
    %c0_i32_0 = arith.constant 0 : i32
    %c0_i32_1 = arith.constant 0 : i32
    return %arg1, %c0_i32, %c0_i32_0 : i32, i32, i32
  }
  func.func @transform_12(%arg0: i32, %arg1: i32) -> (i32, i32, i32) {
    %c0_i32 = arith.constant 0 : i32
    %c0_i32_0 = arith.constant 0 : i32
    %c0_i32_1 = arith.constant 0 : i32
    return %arg1, %c0_i32, %c0_i32_0 : i32, i32, i32
  }
  func.func @transform_13(%arg0: i32, %arg1: i32) -> (i32, i32, i32) {
    %c0_i32 = arith.constant 0 : i32
    %c0_i32_0 = arith.constant 0 : i32
    %c0_i32_1 = arith.constant 0 : i32
    return %arg1, %c0_i32, %c0_i32_0 : i32, i32, i32
  }
  func.func @transform_14(%arg0: i32, %arg1: i32) -> (i32, i32, i32) {
    %c0_i32 = arith.constant 0 : i32
    %c0_i32_0 = arith.constant 0 : i32
    %c0_i32_1 = arith.constant 0 : i32
    return %arg1, %c0_i32, %c0_i32_0 : i32, i32, i32
  }
  func.func @transform_15(%arg0: i32, %arg1: i32) -> (i32, i32, i32) {
    %c0_i32 = arith.constant 0 : i32
    %c0_i32_0 = arith.constant 0 : i32
    %c0_i32_1 = arith.constant 0 : i32
    return %arg1, %c0_i32, %c0_i32_0 : i32, i32, i32
  }
  func.func @transform_16(%arg0: i32, %arg1: i32) -> (i32, i32, i32) {
    %c0_i32 = arith.constant 0 : i32
    %c0_i32_0 = arith.constant 0 : i32
    %c0_i32_1 = arith.constant 0 : i32
    return %arg1, %c0_i32, %c0_i32_0 : i32, i32, i32
  }
  func.func @transform_17(%arg0: i32, %arg1: i32) -> (i32, i32, i32) {
    %c0_i32 = arith.constant 0 : i32
    %c0_i32_0 = arith.constant 0 : i32
    %c0_i32_1 = arith.constant 0 : i32
    return %arg1, %c0_i32, %c0_i32_0 : i32, i32, i32
  }
  func.func @transform_18(%arg0: i32, %arg1: i32) -> (i32, i32, i32) {
    %c0_i32 = arith.constant 0 : i32
    %c0_i32_0 = arith.constant 0 : i32
    %c0_i32_1 = arith.constant 0 : i32
    return %arg1, %c0_i32, %c0_i32_0 : i32, i32, i32
  }
  func.func @transform_19(%arg0: i32, %arg1: i32) -> (i32, i32, i32) {
    %c0_i32 = arith.constant 0 : i32
    %c0_i32_0 = arith.constant 0 : i32
    %c0_i32_1 = arith.constant 0 : i32
    return %arg1, %c0_i32, %c0_i32_0 : i32, i32, i32
  }
  func.func @transform_20(%arg0: i32, %arg1: i32) -> (i32, i32) {
    %c0_i32 = arith.constant 0 : i32
    %c0_i32_0 = arith.constant 0 : i32
    %c0_i32_1 = arith.constant 0 : i32
    return %c0_i32, %c0_i32_0 : i32, i32
  }
  func.func @transform_21(%arg0: i32, %arg1: i32) -> (i32, i32) {
    %c0_i32 = arith.constant 0 : i32
    %c0_i32_0 = arith.constant 0 : i32
    %c0_i32_1 = arith.constant 0 : i32
    return %c0_i32, %c0_i32_0 : i32, i32
  }
  func.func @transform_22(%arg0: i32, %arg1: i32) -> (i32, i32) {
    %c0_i32 = arith.constant 0 : i32
    %c0_i32_0 = arith.constant 0 : i32
    %c0_i32_1 = arith.constant 0 : i32
    return %c0_i32, %c0_i32_0 : i32, i32
  }
  func.func @transform_23(%arg0: i32, %arg1: i32) -> (i32, i32) {
    %c0_i32 = arith.constant 0 : i32
    %c0_i32_0 = arith.constant 0 : i32
    %c0_i32_1 = arith.constant 0 : i32
    return %c0_i32, %c0_i32_0 : i32, i32
  }
  func.func @transform_24(%arg0: i32, %arg1: i32) -> (i32, i32, i32) {
    %c0_i32 = arith.constant 0 : i32
    %c0_i32_0 = arith.constant 0 : i32
    %c0_i32_1 = arith.constant 0 : i32
    return %arg0, %c0_i32, %c0_i32_0 : i32, i32, i32
  }
}

</mosaic_0001>

<bundles_post_ra>
// kernel: vit_forward.1
= control target key start
LH: loop header
LB: loop body
LE: loop exit
PB: predicated region body
PF: predicated region fallthrough
CT: control target
= control target key end

     0   :  { %s5367_s0 = inlined_call_operand.vmem [shape: bf16[64,48], index: 0, kind: input, shape index: {}]   ;;  %s5368_s1 = inlined_call_operand.vmem [shape: f32[32,128], index: 1, kind: input, shape index: {}]   ;;  %s5369_s2 = inlined_call_operand.vmem [shape: f32[1,48], index: 2, kind: input, shape index: {}]   ;;  %s5370_s3 = inlined_call_operand.vmem [shape: f32[1,48], index: 3, kind: input, shape index: {}]   ;;  %s5371_s4 = inlined_call_operand.vmem [shape: bf16[48,128], index: 4, kind: input, shape index: {}]   ;;  %s5372_s5 = inlined_call_operand.vmem [shape: f32[1,128], index: 5, kind: input, shape index: {}]   ;;  %s5373_s6 = inlined_call_operand.vmem [shape: f32[1,128], index: 6, kind: input, shape index: {}]   ;;  %s5374_s7 = inlined_call_operand.vmem [shape: f32[1,128], index: 7, kind: input, shape index: {}]   ;;  %s5375_s8 = inlined_call_operand.vmem [shape: f32[2,1,128], index: 8, kind: input, shape index: {}]   ;;  %s5376_s9 = inlined_call_operand.vmem [shape: f32[2,1,128], index: 9, kind: input, shape index: {}]   ;;  %s5377_s10 = inlined_call_operand.vmem [shape: bf16[2,128,128], index: 10, kind: input, shape index: {}]   ;;  %s5378_s11 = inlined_call_operand.vmem [shape: bf16[2,128,128], index: 11, kind: input, shape index: {}]   ;;  %s5379_s12 = inlined_call_operand.vmem [shape: bf16[2,128,128], index: 12, kind: input, shape index: {}]   ;;  %s5380_s13 = inlined_call_operand.vmem [shape: bf16[2,128,128], index: 13, kind: input, shape index: {}]   ;;  %s5381_s14 = inlined_call_operand.vmem [shape: f32[2,1,128], index: 14, kind: input, shape index: {}]   ;;  %s5382_s15 = inlined_call_operand.vmem [shape: f32[2,1,128], index: 15, kind: input, shape index: {}]   ;;  %s5383_s16 = inlined_call_operand.vmem [shape: bf16[2,128,256], index: 16, kind: input, shape index: {}]   ;;  %s5384_s17 = inlined_call_operand.vmem [shape: f32[2,1,256], index: 17, kind: input, shape index: {}]   ;;  %s5385_s18 = inlined_call_operand.vmem [shape: bf16[2,256,128], index: 18, kind: input, shape index: {}]   ;;  %s5386_s19 = inlined_call_operand.vmem [shape: f32[2,1,128], index: 19, kind: input, shape index: {}]   ;;  %s5387_s20 = inlined_call_operand.vmem [shape: f32[1,128], index: 20, kind: input, shape index: {}]   ;;  %s5388_s21 = inlined_call_operand.vmem [shape: f32[1,128], index: 21, kind: input, shape index: {}]   ;;  %s5389_s22 = inlined_call_operand.vmem [shape: bf16[128,10], index: 22, kind: input, shape index: {}]   ;;  %s5390_s23 = inlined_call_operand.vmem [shape: f32[1,10], index: 23, kind: input, shape index: {}]   ;;  %s5391_s24 = inlined_call_operand.hbm [shape: f32[2,2,10], index: 24, kind: output, shape index: {}]  }
   0x1   :  { %5410 = sst [smem:[#allocation19_spill]] %s5367_s0 }
   0x2   :  { %5411 = sst [smem:[#allocation20_spill]] %s5368_s1 }
   0x3   :  { %5412 = sst [smem:[#allocation21_spill]] %s5369_s2 }
   0x4   :  { %5413 = sst [smem:[#allocation22_spill]] %s5370_s3 }
   0x5   :  { %5414 = sst [smem:[#allocation23_spill]] %s5371_s4 }
   0x6   :  { %5415 = sst [smem:[#allocation24_spill]] %s5372_s5 }
   0x7   :  { %5416 = sst [smem:[#allocation25_spill]] %s5373_s6 }
   0x8   :  { %5417 = sst [smem:[#allocation26_spill]] %s5374_s7 }
   0x9   :  { %5418 = sst [smem:[#allocation27_spill]] %s5375_s8 }
   0xa   :  { %5419 = sst [smem:[#allocation28_spill]] %s5377_s10 }
   0xb   :  { %5420 = sst [smem:[#allocation29_spill]] %s5378_s11 }
   0xc   :  { %5421 = sst [smem:[#allocation30_spill]] %s5379_s12 }
   0xd   :  { %5422 = sst [smem:[#allocation31_spill]] %s5387_s20 }
   0xe   :  { %5423 = sst [smem:[#allocation32_spill]] %s5388_s21 }
   0xf   :  { %5424 = sst [smem:[#allocation33_spill]] %s5389_s22 }
  0x10   :  { %5425 = sst [smem:[#allocation34_spill]] %s5390_s23 }
  0x11   :  { %5426 = sst [smem:[#allocation35_spill]] %s5391_s24 }
  0x12   :  { %29 = vsyncpa [#allocation4], 0 }
  0x13   :  { %31 = vsyncpa [#allocation4 + $0x1], 0  ;;  %s4673_s5 = smov 0   ;;  %s4675_s26 = smov 0  }
  0x14   :  { %s4677_s27 = smov 0   ;;  %s4679_s28 = smov 0  }
  0x15   :  { %s4681_s6 = smov 0   ;;  %s4683_s2 = smov 0  }
  0x16   :  { %s4685_s29 = smov 0   ;;  %s4687_s0 = smov 0  }
  0x17 LB: > { %5427 = sst [smem:[#allocation6_spill]] %s4509_s5  ;;  %s3659_s7 = sadd.s32 4294967295, %s4537_s0   ;;  %s4537_s0 = sphi %s4687_s0, %s37_s0   ;;  %s4533_s29 = sphi %s4685_s29, %s5480_s29   ;;  %s4529_s2 = sphi %s4683_s2, %s5479_s2   ;;  %s4525_s6 = sphi %s4681_s6, %s5478_s6   ;;  %s4521_s28 = sphi %s4679_s28, %s5477_s28   ;;  %s4517_s27 = sphi %s4677_s27, %s5476_s27   ;;  %s4513_s26 = sphi %s4675_s26, %s5475_s26   ;;  %s4509_s5 = sphi %s4673_s5, %s5474_s5  }
  0x18   : > { %5428 = sst [smem:[#allocation7_spill]] %s4513_s26  ;;  %s3660_s30 = sadd.s32 4294967294, %s4537_s0  }
  0x19   : > { %5429 = sst [smem:[#allocation8_spill]] %s4517_s27  ;;  %s46_s3 = sadd.s32 1, %s4529_s2 }
  0x1a   : > { %5430 = sst [smem:[#allocation9_spill]] %s4521_s28  ;;  %p47_p0 = scmp.ge.s32.totalorder %s46_s3, 2 }
  0x1b   : > { %5431 = sst [smem:[#allocation10_spill]] %s4525_s6  ;;  %s49_s25 = sadd.s32 1, %s4533_s29 }
  0x1c   : > { %5432 = sst [smem:[#allocation11_spill]] %s4529_s2  ;;  %p635_p1 = scmp.ne.s32.totalorder %s4517_s27, %s4513_s26 }
  0x1d   : > { %5433 = sst [smem:[#allocation12_spill]] %s4533_s29  ;;  %p636_p2 = scmp.eq.s32.totalorder %s3659_s7, 3 }
  0x1e   : > { %5434 = sst [smem:[#allocation13_spill]] %s4537_s0  ;;  %s5482_s3 = smov (%p47_p0, %s46_s3), 0 }
  0x1f   : > { %5435 = sst [smem:[#allocation14_spill]] %s5482_s3  ;;  %s5484_s25 = smov (!%p47_p0, %s49_s25), %s4533_s29 }
  0x20   : > { %p4722_p3 = por %p636_p2, %p635_p1  ;;  %p641_p4 = scmp.ne.s32.totalorder %s4513_s26, %s4509_s5 }
  0x21   : > { %p51_p5 = scmp.ge.s32.totalorder %s5484_s25, 2  ;;  %p642_p6 = scmp.eq.s32.totalorder %s3660_s30, 3 }
  0x22   : > { %s5436_s8 = scalar_select %p4722_p3, 1, 0 }
  0x23   : > { %p3663_p7 = scmp.ge.s32.totalorder %s4537_s0, 1  ;;  %p787_p8 = scmp.lt.s32.totalorder %s4537_s0, 5 }
  0x24   : > { %5437 = sst [smem:[#allocation15_spill]] %s5436_s8  ;;  %s5486_s25 = smov (%p51_p5, %s5484_s25), 0 }
  0x25   : > { %5438 = sst [smem:[#allocation16_spill]] %s5486_s25  ;;  %p4732_p9 = por %p642_p6, %p641_p4 }
  0x26   : > { %p788_p10 = pnand %p3663_p7, %p787_p8  ;;  %s622_s1 = ssub.s32 %s4533_s29, %s5486_s25 }
  0x27   : > { %s5439_s4 = scalar_select %p4732_p9, 1, 0 }
  0x28   : > { %s625_s7 = sadd.s32 1, %s4517_s27  ;;  %p623_p11 = scmp.eq.s32.totalorder %s622_s1, 0 }
  0x29   : > { %5440 = sst [smem:[#allocation17_spill]] %s5439_s4  ;;  %791 = sbr.rel (%p788_p10) target bundleno = 5568 (0x15c0), region = 116 }
  0x2a   : > { %s4740_s3 = scalar_select %p623_p11, %s4517_s27, %s625_s7  }
  0x2b   : > { %s5399_s30 = sand.u32 (!%p788_p10), 1, %s4513_s26   ;;  %s3665_s2 = sshll.u32 (!%p788_p10), %s4525_s6, 2 }
  0x2c   : > { %5441 = sst [smem:[#allocation18_spill]] %s4740_s3  ;;  %s4746_s5 = sshll.u32 (!%p788_p10), %s5399_s30, 1 }
  0x2d   : > { %p903_p12 = scmp.lt.s32.totalorder (!%p788_p10), %s3665_s2, 7  ;;  %p908_p13 = scmp.lt.s32.totalorder (!%p788_p10), %s4521_s28, 1 }
  0x2e   : > { %s5442_s29 = sld [smem:[#allocation19_spill]] (!%p788_p10)  ;;  %s5444_s10 = sld [smem:[#allocation28_spill]] (!%p788_p10) }
  0x2f   : > { %s5445_s11 = sld [smem:[#allocation29_spill]] (!%p788_p10)  ;;  %s5446_s12 = sld [smem:[#allocation30_spill]] (!%p788_p10) }
  0x30   : > { %s5488_s2 = smov (!%p903_p12, %s3665_s2), 7  ;;  %s5447_s20 = sld [smem:[#allocation9_spill]] }
  0x31   : > { %s4750_s4 = scalar_select %p908_p13, %s4521_s28, 1 }
  0x32   : > { %s3666_s1 = sshll.u32 %s5488_s2, 2  ;;  %s901_s28 = scalar_lea.vmem [#allocation3], %s4746_s5 }
  0x33   : > { %s3792_s23 = sshll.u32 %s4750_s4, 6  ;;  %s3796_s2 = sshll.u32 %s4750_s4, 7 }
  0x34   : > { %s906_s3 = scalar_lea.vmem %s5442_s29, %s3666_s1  ;;  %s4767_s22 = scalar_lea.vmem %s5444_s10, %s3792_s23 }
  0x35   : > { %s4772_s25 = scalar_lea.vmem %s5445_s11, %s3792_s23  ;;  %s4777_s27 = scalar_lea.vmem %s5446_s12, %s3792_s23 }
  0x36   : > { %s4782_s26 = scalar_lea.vmem %s5380_s13, %s3792_s23  ;;  %s3677_s24 = sshll.u32 %s4750_s4, 1 }
  0x37   : > { %s4797_s29 = scalar_lea.vmem %s5383_s16, %s3796_s2  ;;  %s4802_s23 = scalar_lea.vmem %s5384_s17, %s3677_s24 }
  0x38   : > { %s4807_s8 = scalar_lea.vmem %s5385_s18, %s3796_s2  ;;  %s956_s21 = scalar_lea.vmem %s5386_s19, %s4750_s4 }
  0x39   : > { %p3680_p0 = scmp.ne.s32.totalorder %s5447_s20, 0 }
  0x3a   : > { %v3799_v0 = vld [vmem:[%s906_s3] sm:$0xff] (!%p3680_p0)   ;;  %vm972_vm0 = vcmask (!%p3680_p0), 392192   ;;  %v3806_v1 = vld [vmem:[%s906_s3 + $0x8] sm:$0xff] (!%p3680_p0)   ;;  %s5448_s12 = sld [smem:[#allocation23_spill]] (!%p3680_p0)  ;;  %s5449_s30 = sld [smem:[#allocation21_spill]] (!%p3680_p0) }
  0x3b   : > { %961 = sbr.rel (%p3680_p0) target bundleno = 919 (0x397), region = 120  ;;  %v3800_v2 = vunpack.c.l.bf16 (!%p3680_p0), %v3799_v0  ;;  %v3804_v3 = vunpack.c.l.bf16 (!%p3680_p0), %v3806_v1  ;;  %v3801_v4 = vunpack.c.h.bf16 (!%p3680_p0), %v3799_v0  ;;  %v3805_v5 = vunpack.c.h.bf16 (!%p3680_p0), %v3806_v1  ;;  %s5450_s10 = sld [smem:[#allocation22_spill]] (!%p3680_p0) }
  0x3c   : > { %s5451_s3 = sld [smem:[#allocation24_spill]] (!%p3680_p0)  ;;  %s5452_s1 = sld [smem:[#allocation25_spill]] (!%p3680_p0) }
  0x3d   : > { %v973_v6 = vsel (!%p3680_p0), %vm972_vm0, %v3800_v2, 0.0  ;;  %v979_v7 = vsel (!%p3680_p0), %vm972_vm0, %v3804_v3, 0.0  ;;  %v976_v8 = vsel (!%p3680_p0), %vm972_vm0, %v3801_v4, 0.0  ;;  %v982_v9 = vsel (!%p3680_p0), %vm972_vm0, %v3805_v5, 0.0  ;;  %s5453_s7 = sld [smem:[#allocation26_spill]] (!%p3680_p0)  ;;  %s5454_s11 = sld [smem:[#allocation20_spill]] (!%p3680_p0) }
  0x3e   : > { %974 = vadd.xlane.f32.xlu0 (!%p3680_p0), %v973_v6  ;;  %980 = vadd.xlane.f32.xlu1 (!%p3680_p0), %v979_v7 }
  0x40   : > { %v4206_v30 = vld [vmem:[%s5448_s12] sm:$0xff] (!%p3680_p0)   ;;  %v4207_v31 = vld [vmem:[%s5448_s12 + $0x8] sm:$0xff] (!%p3680_p0)   ;;  %v4208_v32 = vld [vmem:[%s5448_s12 + $0x10] sm:$0xff] (!%p3680_p0)  }
  0x41   : > { %3921 = vmatprep.subr.bf16.mxu0 (!%p3680_p0), %v4206_v30  ;;  %v3681_v47 = vld [vmem:[%s5449_s30] ss:$0 sm:$0xff] (!%p3680_p0) }
  0x42   : > { %977 = vadd.xlane.f32.xlu0 %v976_v8  ;;  %983 = vadd.xlane.f32.xlu1 %v982_v9  ;;  %v3682_v53 = vld [vmem:[%s5450_s10] ss:$0 sm:$0xff] }
  0x43   : > { %3922 = vmatpush3.bf16.msra.mxu0 %v4206_v30  ;;  %v3683_v1 = vld [vmem:[%s5451_s3] ss:$0 sm:$0xff] }
  0x44   : > { %3923 = vmatprep.subr.bf16.mxu0 %v4207_v31 }
  0x47   : > { %3924 = vmatpush3.bf16.msra.mxu0 %v4207_v31 }
  0x48   : > { %3925 = vmatprep.subr.bf16.mxu0 %v4208_v32 }
  0x4b   : > { %3926 = vmatpush3.bf16.msra.mxu0 %v4208_v32 }
  0xcb   : > { %v975_v10 = vpop.xlane.xlu0 %974  ;;  %v981_v11 = vpop.xlane.xlu1 %980 }
  0xcc   : > { %v986_v12 = vmul.f32 0.020833334, %v975_v10  ;;  %v988_v13 = vmul.f32 0.020833334, %v981_v11 }
  0xce   : > { %v990_v14 = vsub.f32 %v3800_v2, %v986_v12  ;;  %v992_v15 = vsub.f32 %v3804_v3, %v988_v13 }
  0xcf   : > { %v978_v16 = vpop.xlane.xlu0 %977  ;;  %v984_v17 = vpop.xlane.xlu1 %983 }
  0xd0   : > { %v987_v18 = vmul.f32 0.020833334, %v978_v16  ;;  %v989_v19 = vmul.f32 0.020833334, %v984_v17  ;;  %v994_v20 = vmul.f32 %v990_v14, %v990_v14  ;;  %v996_v21 = vmul.f32 %v992_v15, %v992_v15 }
  0xd2   : > { %v991_v22 = vsub.f32 %v3801_v4, %v987_v18  ;;  %v993_v23 = vsub.f32 %v3805_v5, %v989_v19  ;;  %v998_v24 = vsel %vm972_vm0, %v994_v20, 0.0  ;;  %v1004_v25 = vsel %vm972_vm0, %v996_v21, 0.0 }
  0xd3   : > { %999 = vadd.xlane.f32.xlu0 %v998_v24 }
  0xd4   : > { %v995_v26 = vmul.f32 %v991_v22, %v991_v22  ;;  %v997_v27 = vmul.f32 %v993_v23, %v993_v23 }
  0xd6   : > { %v1001_v28 = vsel %vm972_vm0, %v995_v26, 0.0  ;;  %v1007_v29 = vsel %vm972_vm0, %v997_v27, 0.0 }
  0xd7   : > { %1005 = vadd.xlane.f32.xlu0 %v1004_v25  ;;  %1002 = vadd.xlane.f32.xlu1 %v1001_v28 }
  0xdb   : > { %1008 = vadd.xlane.f32.xlu1 %v1007_v29 }
 0x160   : > { %v1000_v33 = vpop.xlane.xlu0 %999 }
 0x161   : > { %v1010_v34 = vmul.f32 0.020833334, %v1000_v33 }
 0x163   : > { %v1014_v35 = vadd.f32 1e-05, %v1010_v34 }
 0x164   : > { %v1003_v36 = vpop.xlane.xlu1 %1002  ;;  %v1006_v37 = vpop.xlane.xlu0 %1005 }
 0x165   : > { %4209 = vrsqrt.f32 %v1014_v35  ;;  %v1011_v38 = vmul.f32 0.020833334, %v1003_v36  ;;  %v1012_v39 = vmul.f32 0.020833334, %v1006_v37 }
 0x167   : > { %v1015_v40 = vadd.f32 1e-05, %v1011_v38  ;;  %v1016_v41 = vadd.f32 1e-05, %v1012_v39  ;;  %v3689_v39 = vld [vmem:[%s5452_s1] ss:$0 sm:$0xff] }
 0x168   : > { %v1009_v42 = vpop.xlane.xlu1 %1008 }
 0x169   : > { %4211 = vrsqrt.f32 %v1015_v40  ;;  %v1013_v43 = vmul.f32 0.020833334, %v1009_v42  ;;  %v3690_v42 = vld [vmem:[%s5453_s7] ss:$0 sm:$0xff] }
 0x16a   : > { %4213 = vrsqrt.f32 %v1016_v41 }
 0x16b   : > { %v1017_v44 = vadd.f32 1e-05, %v1013_v43 }
 0x16d   : > { %4215 = vrsqrt.f32 %v1017_v44 }
 0x16f   : > { %v4210_v45 = vpop.eup %4209 }
 0x170   : > { %v1022_v46 = vmul.f32 %v4210_v45, %v990_v14 }
 0x172   : > { %v1032_v51 = vmul.f32 %v3681_v47, %v1022_v46  ;;  %v1201_v46 = vld [vmem:[%s5454_s11] sm:$0xff] }
 0x173   : > { %v4212_v48 = vpop.eup %4211 }
 0x174   : > { %v4214_v49 = vpop.eup %4213  ;;  %v1023_v50 = vmul.f32 %v4212_v48, %v991_v22  ;;  %v1042_v57 = vadd.f32 %v3682_v53, %v1032_v51  ;;  %v1202_v51 = vld [vmem:[%s5454_s11 + $0x8] sm:$0xff] }
 0x175   : > { %v1024_v52 = vmul.f32 %v4214_v49, %v992_v15 }
 0x176   : > { %v1033_v54 = vmul.f32 %v3681_v47, %v1023_v50 }
 0x177   : > { %v4216_v55 = vpop.eup %4215  ;;  %v1034_v59 = vmul.f32 %v3681_v47, %v1024_v52 }
 0x178   : > { %v1025_v56 = vmul.f32 %v4216_v55, %v993_v23  ;;  %v1043_v58 = vadd.f32 %v3682_v53, %v1033_v54 }
 0x179   : > { %v1044_v62 = vadd.f32 %v3682_v53, %v1034_v59 }
 0x17a   : > { %v1046_v60 = vpack.c.bf16 %v1043_v58, %v1042_v57  ;;  %v1035_v61 = vmul.f32 %v3681_v47, %v1025_v56  ;;  %v1203_v56 = vld [vmem:[%s5454_s11 + $0x10] sm:$0xff] }
 0x17c   : > { %3927 = vmatprep.mubr.msk.bf16.mxu0 %vm972_vm0, %v1046_v60  ;;  %v1045_v63 = vadd.f32 %v3682_v53, %v1035_v61  ;;  %v1204_v60 = vld [vmem:[%s5454_s11 + $0x18] sm:$0xff] }
 0x17e   : > { %v1047_v0 = vpack.c.bf16 %v1045_v63, %v1044_v62 }
 0x180   : > { %3928 = vmatmul.mubr.msk.bf16.vlgmr.msra.gmra.mrb[0].mxu0 %vm972_vm0, %v1047_v0 }
 0x253   : > { %v3929_v2 = vpop.f32.mrb[0].mxu0 }
 0x254   : > { %v1119_v3 = vpop.f32.mrb[1].mxu0  ;;  %v1128_v8 = vadd.f32 %v3929_v2, %v3683_v1 }
 0x255   : > { %v1120_v4 = vadd.f32 %v3683_v1, %v1119_v3  ;;  %v3930_v5 = vpop.f32.mrb[2].mxu0 }
 0x256   : > { %v1122_v6 = vpop.f32.mrb[3].mxu0  ;;  %v1131_v9 = vadd.f32 %v3930_v5, %v3683_v1 }
 0x257   : > { %v1123_v7 = vadd.f32 %v3683_v1, %v1122_v6  ;;  %1136 = vadd.xlane.f32.xlu0 %v1120_v4 }
 0x259   : > { %1138 = vadd.xlane.f32.xlu1 %v1123_v7 }
 0x25b   : > { %1140 = vadd.xlane.f32.xlu0 %v1128_v8 }
 0x25d   : > { %1142 = vadd.xlane.f32.xlu1 %v1131_v9 }
 0x2e4   : > { %v1137_v10 = vpop.xlane.xlu0 %1136 }
 0x2e5   : > { %v1145_v11 = vmul.f32 0.0078125, %v1137_v10 }
 0x2e6   : > { %v1139_v12 = vpop.xlane.xlu1 %1138 }
 0x2e7   : > { %v1149_v13 = vsub.f32 %v1120_v4, %v1145_v11  ;;  %v1146_v14 = vmul.f32 0.0078125, %v1139_v12 }
 0x2e8   : > { %v1141_v15 = vpop.xlane.xlu0 %1140 }
 0x2e9   : > { %v1150_v16 = vsub.f32 %v1123_v7, %v1146_v14  ;;  %v1147_v17 = vmul.f32 0.0078125, %v1141_v15  ;;  %v1153_v18 = vmul.f32 %v1149_v13, %v1149_v13 }
 0x2ea   : > { %v1143_v19 = vpop.xlane.xlu1 %1142 }
 0x2eb   : > { %v1151_v20 = vsub.f32 %v1128_v8, %v1147_v17  ;;  %v1148_v21 = vmul.f32 0.0078125, %v1143_v19  ;;  %1157 = vadd.xlane.f32.xlu0 %v1153_v18  ;;  %v1154_v22 = vmul.f32 %v1150_v16, %v1150_v16 }
 0x2ed   : > { %v1152_v23 = vsub.f32 %v1131_v9, %v1148_v21  ;;  %1159 = vadd.xlane.f32.xlu1 %v1154_v22  ;;  %v1155_v24 = vmul.f32 %v1151_v20, %v1151_v20 }
 0x2ef   : > { %1161 = vadd.xlane.f32.xlu0 %v1155_v24  ;;  %v1156_v25 = vmul.f32 %v1152_v23, %v1152_v23 }
 0x2f1   : > { %1163 = vadd.xlane.f32.xlu1 %v1156_v25 }
 0x378   : > { %v1158_v26 = vpop.xlane.xlu0 %1157 }
 0x379   : > { %v1165_v27 = vmul.f32 0.0078125, %v1158_v26 }
 0x37a   : > { %v1160_v28 = vpop.xlane.xlu1 %1159 }
 0x37b   : > { %v1169_v29 = vadd.f32 1e-05, %v1165_v27  ;;  %v1166_v30 = vmul.f32 0.0078125, %v1160_v28 }
 0x37c   : > { %v1162_v31 = vpop.xlane.xlu0 %1161 }
 0x37d   : > { %4217 = vrsqrt.f32 %v1169_v29  ;;  %v1170_v32 = vadd.f32 1e-05, %v1166_v30  ;;  %v1167_v33 = vmul.f32 0.0078125, %v1162_v31 }
 0x37e   : > { %v1164_v34 = vpop.xlane.xlu1 %1163 }
 0x37f   : > { %4219 = vrsqrt.f32 %v1170_v32  ;;  %v1171_v35 = vadd.f32 1e-05, %v1167_v33  ;;  %v1168_v36 = vmul.f32 0.0078125, %v1164_v34 }
 0x381   : > { %4221 = vrsqrt.f32 %v1171_v35  ;;  %v1172_v37 = vadd.f32 1e-05, %v1168_v36 }
 0x383   : > { %4223 = vrsqrt.f32 %v1172_v37 }
 0x387   : > { %v4218_v38 = vpop.eup %4217 }
 0x388   : > { %v1177_v40 = vmul.f32 %v4218_v38, %v1149_v13 }
 0x389   : > { %v4220_v41 = vpop.eup %4219 }
 0x38a   : > { %v1187_v43 = vmul.f32 %v3689_v39, %v1177_v40  ;;  %v1178_v44 = vmul.f32 %v4220_v41, %v1150_v16 }
 0x38b   : > { %v4222_v45 = vpop.eup %4221 }
 0x38c   : > { %v1197_v47 = vadd.f32 %v3690_v42, %v1187_v43  ;;  %v1188_v48 = vmul.f32 %v3689_v39, %v1178_v44  ;;  %v1179_v49 = vmul.f32 %v4222_v45, %v1151_v20 }
 0x38d   : > { %v4224_v50 = vpop.eup %4223 }
 0x38e   : > { %v1205_v52 = vadd.f32 %v1201_v46, %v1197_v47  ;;  %v1198_v53 = vadd.f32 %v3690_v42, %v1188_v48  ;;  %v1189_v54 = vmul.f32 %v3689_v39, %v1179_v49  ;;  %v1180_v55 = vmul.f32 %v4224_v50, %v1152_v23 }
 0x390   : > { %1209 = vst [vmem:[#allocation2] sm:$0xff] %v1205_v52  ;;  %v1206_v57 = vadd.f32 %v1202_v51, %v1198_v53  ;;  %v1199_v58 = vadd.f32 %v3690_v42, %v1189_v54  ;;  %v1190_v59 = vmul.f32 %v3689_v39, %v1180_v55 }
 0x392   : > { %1210 = vst [vmem:[#allocation2 + $0x8] sm:$0xff] %v1206_v57  ;;  %v1207_v61 = vadd.f32 %v1203_v56, %v1199_v58  ;;  %v1200_v62 = vadd.f32 %v3690_v42, %v1190_v59 }
 0x394   : > { %1211 = vst [vmem:[#allocation2 + $0x10] sm:$0xff] %v1207_v61  ;;  %v1208_v63 = vadd.f32 %v1204_v60, %v1200_v62 }
 0x396   : > { %1212 = vst [vmem:[#allocation2 + $0x18] sm:$0xff] %v1208_v63 }
 0x397 PF: > { %v1213_v0 = vld [vmem:[#allocation2] sm:$0xff]  ;;  %v4257_v22 = vld [vmem:[%s4767_s22 + $0x8] sm:$0xff]   ;;  %v4259_v24 = vld [vmem:[%s4767_s22 + $0x10] sm:$0xff]   ;;  %s5455_s30 = sld [smem:[#allocation27_spill]]  ;;  %s5457_s24 = scalar_lea.vmem %s5376_s9, %s4750_s4  ;;  %vm4540_vm1 = vmmov 0   ;;  %vm1635_vm2 = vcmask 261120  }
 0x398   : > { %1219 = vadd.xlane.f32.xlu0 %v1213_v0  ;;  %v4255_v4 = vld [vmem:[%s4767_s22] sm:$0xff]   ;;  %v4258_v23 = vld [vmem:[%s4772_s25 + $0x8] sm:$0xff]   ;;  %v4260_v25 = vld [vmem:[%s4772_s25 + $0x10] sm:$0xff]   ;;  %vm1683_vm3 = vcmask 130048   ;;  %s4542_s3 = smov 64   ;;  %s4543_s20 = smov 32  }
 0x399   : > { %v1214_v2 = vld [vmem:[#allocation2 + $0x8] sm:$0xff]  ;;  %v4256_v5 = vld [vmem:[%s4772_s25] sm:$0xff]   ;;  %3931 = vmatprep.subr.bf16.mxu0 %v4255_v4  ;;  %v4261_v26 = vld [vmem:[%s4767_s22 + $0x18] sm:$0xff]   ;;  %vm2143_vm4 = vcmask 523264   ;;  %vm2146_vm5 = vcmask 785408   ;;  %s5458_s2 = scalar_lea.vmem %s5381_s14, %s4750_s4 }
 0x39a   : > { %3951 = vmatprep.subr.bf16.mxu1 %v4256_v5  ;;  %3932 = vmatpush3.bf16.msra.mxu0 %v4255_v4  ;;  %v4262_v27 = vld [vmem:[%s4772_s25 + $0x18] sm:$0xff]   ;;  %v4263_v28 = vld [vmem:[%s4767_s22 + $0x20] sm:$0xff]   ;;  %v4265_v30 = vld [vmem:[%s4767_s22 + $0x28] sm:$0xff]  }
 0x39b   : > { %v1215_v1 = vld [vmem:[#allocation2 + $0x10] sm:$0xff]  ;;  %3952 = vmatpush3.bf16.msra.mxu1 %v4256_v5  ;;  %3933 = vmatprep.subr.bf16.mxu0 %v4257_v22  ;;  %v4264_v29 = vld [vmem:[%s4772_s25 + $0x20] sm:$0xff]   ;;  %v4266_v31 = vld [vmem:[%s4772_s25 + $0x28] sm:$0xff]  }
 0x39c   : > { %1223 = vadd.xlane.f32.xlu1 %v1215_v1  ;;  %1221 = vadd.xlane.f32.xlu0 %v1214_v2  ;;  %v4267_v32 = vld [vmem:[%s4767_s22 + $0x30] sm:$0xff]   ;;  %v4269_v34 = vld [vmem:[%s4767_s22 + $0x38] sm:$0xff]   ;;  %v4271_v36 = vld [vmem:[%s4777_s27] sm:$0xff]   ;;  %s5459_s22 = scalar_lea.vmem %s5382_s15, %s4750_s4 }
 0x39d   : > { %v1216_v3 = vld [vmem:[#allocation2 + $0x18] sm:$0xff]  ;;  %3953 = vmatprep.subr.bf16.mxu1 %v4258_v23  ;;  %v4268_v33 = vld [vmem:[%s4772_s25 + $0x30] sm:$0xff]   ;;  %s5456_s7 = scalar_lea.vmem %s5455_s30, %s4750_s4  ;;  %v3692_v56 = vld [vmem:[%s5457_s24] ss:$0 sm:$0xff]  ;;  %s5460_s4 = sld [smem:[#allocation9_spill]] }
 0x39e   : > { %3934 = vmatpush3.bf16.msra.mxu0 %v4257_v22  ;;  %v4270_v35 = vld [vmem:[%s4772_s25 + $0x38] sm:$0xff]   ;;  %v3691_v51 = vld [vmem:[%s5456_s7] ss:$0 sm:$0xff]  ;;  %v4272_v5 = vld [vmem:[%s4777_s27 + $0x8] sm:$0xff]  }
 0x39f   : > { %3954 = vmatpush3.bf16.msra.mxu1 %v4258_v23  ;;  %3935 = vmatprep.subr.bf16.mxu0 %v4259_v24 }
 0x3a0   : > { %1225 = vadd.xlane.f32.xlu1 %v1216_v3  ;;  %3955 = vmatprep.subr.bf16.mxu1 %v4260_v25 }
 0x3a2   : > { %3936 = vmatpush3.bf16.msra.mxu0 %v4259_v24 }
 0x3a3   : > { %3956 = vmatpush3.bf16.msra.mxu1 %v4260_v25  ;;  %3937 = vmatprep.subr.bf16.mxu0 %v4261_v26  ;;  %p3776_p1 = scmp.ne.s32.totalorder %s5460_s4, 1 }
 0x3a4   : > { %3957 = vmatprep.subr.bf16.mxu1 %v4262_v27  ;;  %s5461_s30 = sld [smem:[#allocation33_spill]] (!%p3776_p1)  ;;  %vm4546_vm6 = vmmov (!%p3776_p1), 0   ;;  %s5463_s6 = sld [smem:[#allocation32_spill]] (!%p3776_p1)  ;;  %vm3330_vm7 = vcmask (!%p3776_p1), 1040384   ;;  %vm3444_vm8 = vcmask (!%p3776_p1), 74752  }
 0x3a6   : > { %3938 = vmatpush3.bf16.msra.mxu0 %v4261_v26 }
 0x3a7   : > { %3958 = vmatpush3.bf16.msra.mxu1 %v4262_v27  ;;  %3939 = vmatprep.subr.bf16.mxu0 %v4263_v28 }
 0x3a8   : > { %3959 = vmatprep.subr.bf16.mxu1 %v4264_v29 }
 0x3aa   : > { %3940 = vmatpush3.bf16.msra.mxu0 %v4263_v28 }
 0x3ab   : > { %3960 = vmatpush3.bf16.msra.mxu1 %v4264_v29  ;;  %3941 = vmatprep.subr.bf16.mxu0 %v4265_v30 }
 0x3ac   : > { %3961 = vmatprep.subr.bf16.mxu1 %v4266_v31 }
 0x3ae   : > { %3942 = vmatpush3.bf16.msra.mxu0 %v4265_v30 }
 0x3af   : > { %3962 = vmatpush3.bf16.msra.mxu1 %v4266_v31  ;;  %3943 = vmatprep.subr.bf16.mxu0 %v4267_v32 }
 0x3b0   : > { %3963 = vmatprep.subr.bf16.mxu1 %v4268_v33 }
 0x3b2   : > { %3944 = vmatpush3.bf16.msra.mxu0 %v4267_v32 }
 0x3b3   : > { %3964 = vmatpush3.bf16.msra.mxu1 %v4268_v33  ;;  %3945 = vmatprep.subr.bf16.mxu0 %v4269_v34 }
 0x3b4   : > { %3965 = vmatprep.subr.bf16.mxu1 %v4270_v35 }
 0x3b6   : > { %3946 = vmatpush3.bf16.msra.mxu0 %v4269_v34 }
 0x3b7   : > { %3966 = vmatpush3.bf16.msra.mxu1 %v4270_v35  ;;  %3971 = vmatprep.subr.bf16.mxu0 %v4271_v36 }
 0x425   : > { %v1220_v6 = vpop.xlane.xlu0 %1219 }
 0x426   : > { %v1228_v8 = vmul.f32 0.0078125, %v1220_v6  ;;  %v4273_v6 = vld [vmem:[%s4777_s27 + $0x10] sm:$0xff]  }
 0x428   : > { %v4863_v10 = vsub.f32 %v1213_v0, %v1228_v8  ;;  %v4275_v8 = vld [vmem:[%s4777_s27 + $0x20] sm:$0xff]  }
 0x429   : > { %v1224_v7 = vpop.xlane.xlu1 %1223  ;;  %v1222_v12 = vpop.xlane.xlu0 %1221 }
 0x42a   : > { %v1230_v9 = vmul.f32 0.0078125, %v1224_v7  ;;  %v1229_v14 = vmul.f32 0.0078125, %v1222_v12  ;;  %v1236_v15 = vmul.f32 %v4863_v10, %v4863_v10  ;;  %v4274_v7 = vld [vmem:[%s4777_s27 + $0x18] sm:$0xff]   ;;  %v4539_v12 = vmov 0.0  }
 0x42b   : > { %3991 = vmatprep.subr.bf16.mxu1 %v4539_v12 }
 0x42c   : > { %v4865_v11 = vsub.f32 %v1215_v1, %v1230_v9  ;;  %v4869_v17 = vsub.f32 %v1214_v2, %v1229_v14  ;;  %1240 = vadd.xlane.f32.xlu0 %v1236_v15  ;;  %v4276_v9 = vld [vmem:[%s4777_s27 + $0x28] sm:$0xff]  }
 0x42d   : > { %v1226_v13 = vpop.xlane.xlu1 %1225 }
 0x42e   : > { %v1231_v16 = vmul.f32 0.0078125, %v1226_v13  ;;  %v1238_v19 = vmul.f32 %v4865_v11, %v4865_v11  ;;  %v1237_v20 = vmul.f32 %v4869_v17, %v4869_v17 }
 0x430   : > { %v4871_v18 = vsub.f32 %v1216_v3, %v1231_v16  ;;  %1244 = vadd.xlane.f32.xlu0 %v1238_v19  ;;  %1242 = vadd.xlane.f32.xlu1 %v1237_v20 }
 0x432   : > { %v1239_v21 = vmul.f32 %v4871_v18, %v4871_v18 }
 0x434   : > { %1246 = vadd.xlane.f32.xlu1 %v1239_v21 }
 0x4b9   : > { %v1241_v37 = vpop.xlane.xlu0 %1240 }
 0x4ba   : > { %v1248_v38 = vmul.f32 0.0078125, %v1241_v37 }
 0x4bc   : > { %v1252_v39 = vadd.f32 1e-05, %v1248_v38 }
 0x4bd   : > { %v1243_v40 = vpop.xlane.xlu1 %1242  ;;  %v1245_v41 = vpop.xlane.xlu0 %1244 }
 0x4be   : > { %4327 = vrsqrt.f32 %v1252_v39  ;;  %v1249_v42 = vmul.f32 0.0078125, %v1243_v40  ;;  %v1250_v43 = vmul.f32 0.0078125, %v1245_v41 }
 0x4c0   : > { %v1253_v44 = vadd.f32 1e-05, %v1249_v42  ;;  %v1254_v45 = vadd.f32 1e-05, %v1250_v43 }
 0x4c1   : > { %v1247_v46 = vpop.xlane.xlu1 %1246 }
 0x4c2   : > { %4329 = vrsqrt.f32 %v1253_v44  ;;  %v1251_v47 = vmul.f32 0.0078125, %v1247_v46 }
 0x4c3   : > { %4331 = vrsqrt.f32 %v1254_v45 }
 0x4c4   : > { %v1255_v48 = vadd.f32 1e-05, %v1251_v47 }
 0x4c6   : > { %4333 = vrsqrt.f32 %v1255_v48 }
 0x4c8   : > { %v4328_v49 = vpop.eup %4327 }
 0x4c9   : > { %v1260_v50 = vmul.f32 %v4328_v49, %v4863_v10  ;;  %v4277_v10 = vld [vmem:[%s4777_s27 + $0x30] sm:$0xff]  }
 0x4cb   : > { %v1270_v55 = vmul.f32 %v3691_v51, %v1260_v50 }
 0x4cc   : > { %v4330_v52 = vpop.eup %4329 }
 0x4cd   : > { %v4332_v53 = vpop.eup %4331  ;;  %v1261_v54 = vmul.f32 %v4330_v52, %v4869_v17  ;;  %v1280_v60 = vadd.f32 %v3692_v56, %v1270_v55 }
 0x4ce   : > { %v1262_v57 = vmul.f32 %v4332_v53, %v4865_v11  ;;  %v4278_v11 = vld [vmem:[%s4777_s27 + $0x38] sm:$0xff]   ;;  %s4541_s27 = smov 96  }
 0x4cf   : > { %v1271_v58 = vmul.f32 %v3691_v51, %v1261_v54 }
 0x4d0   : > { %v4334_v59 = vpop.eup %4333  ;;  %v1272_v63 = vmul.f32 %v3691_v51, %v1262_v57 }
 0x4d1   : > { %v1281_v61 = vadd.f32 %v3692_v56, %v1271_v58  ;;  %v1263_v62 = vmul.f32 %v4334_v59, %v4871_v18 }
 0x4d2   : > { %v1282_v2 = vadd.f32 %v3692_v56, %v1272_v63 }
 0x4d3   : > { %v1284_v0 = vpack.c.bf16 %v1281_v61, %v1280_v60  ;;  %v1273_v1 = vmul.f32 %v3691_v51, %v1263_v62 }
 0x4d5   : > { %3947 = vmatprep.mubr.bf16.mxu0 %v1284_v0  ;;  %3967 = vmatprep.mubr.bf16.mxu1 %v1284_v0  ;;  %v1283_v3 = vadd.f32 %v3692_v56, %v1273_v1 }
 0x4d7   : > { %v1285_v4 = vpack.c.bf16 %v1283_v3, %v1282_v2 }
 0x4d9   : > { %3948 = vmatmul.mubr.bf16.vlgmr.msra.gmra.mrb[0].mxu0 %v1285_v4  ;;  %3968 = vmatmul.mubr.bf16.vlgmr.msra.gmra.mrb[0].mxu1 %v1285_v4 }
 0x4da   : > { %3972 = vmatpush3.bf16.msra.mxu0 %v4271_v36  ;;  %3987 = vmatprep.mubr.bf16.mxu0 %v1284_v0 }
 0x4db   : > { %3973 = vmatprep.subr.bf16.mxu0 %v4272_v5  ;;  %3993 = vmatprep.mubr.msk.bf16.mxu1 %vm4540_vm1, %v4539_v12 }
 0x4de   : > { %3974 = vmatpush3.bf16.msra.mxu0 %v4272_v5 }
 0x4df   : > { %3975 = vmatprep.subr.bf16.mxu0 %v4273_v6 }
 0x4e2   : > { %3976 = vmatpush3.bf16.msra.mxu0 %v4273_v6 }
 0x4e3   : > { %3977 = vmatprep.subr.bf16.mxu0 %v4274_v7 }
 0x4e6   : > { %3978 = vmatpush3.bf16.msra.mxu0 %v4274_v7 }
 0x4e7   : > { %3979 = vmatprep.subr.bf16.mxu0 %v4275_v8 }
 0x4ea   : > { %3980 = vmatpush3.bf16.msra.mxu0 %v4275_v8 }
 0x4eb   : > { %3981 = vmatprep.subr.bf16.mxu0 %v4276_v9 }
 0x4ee   : > { %3982 = vmatpush3.bf16.msra.mxu0 %v4276_v9 }
 0x4ef   : > { %3983 = vmatprep.subr.bf16.mxu0 %v4277_v10 }
 0x4f2   : > { %3984 = vmatpush3.bf16.msra.mxu0 %v4277_v10 }
 0x4f3   : > { %3985 = vmatprep.subr.bf16.mxu0 %v4278_v11 }
 0x4f6   : > { %3986 = vmatpush3.bf16.msra.mxu0 %v4278_v11 }
 0x4f7   : > { %4039 = vmatprep.subr.bf16.mxu0 %v4539_v12 }
 0x4f9   : > { %3988 = vmatmul.mubr.bf16.vlgmr.msra.gmra.mrb[4].mxu0 %v1285_v4 }
 0x4fa   : > { %4041 = vmatprep.mubr.msk.bf16.mxu0 %vm4540_vm1, %v4539_v12 }
 0x5ac   : > { %v3949_v13 = vpop.f32.mrb[0].mxu0  ;;  %v3969_v14 = vpop.f32.mrb[0].mxu1 }
 0x5ad   : > { %v1384_v15 = vpop.f32.mrb[1].mxu0  ;;  %v1497_v16 = vpop.f32.mrb[1].mxu1  ;;  %v1627_v19 = vmul.f32 0.17677669, %v3949_v13 }
 0x5ae   : > { %v3950_v17 = vpop.f32.mrb[2].mxu0  ;;  %v3970_v18 = vpop.f32.mrb[2].mxu1  ;;  %v1625_v24 = vmul.f32 0.17677669, %v1384_v15 }
 0x5af   : > { %v1628_v20 = vmul.f32 0.17677669, %v3950_v17  ;;  %v4921_v21 = vpack.c.bf16 %v3970_v18, %v3969_v14  ;;  %v1387_v22 = vpop.f32.mrb[3].mxu0  ;;  %v1500_v23 = vpop.f32.mrb[3].mxu1 }
 0x5b0   : > { %v1626_v25 = vmul.f32 0.17677669, %v1387_v22  ;;  %v4923_v26 = vpack.c.bf16 %v1500_v23, %v1497_v16 }
 0x5b1   : > { %v4925_v27 = vpack.c.bf16 %v1628_v20, %v1627_v19  ;;  %v2153_v28 = vsel %vm1635_vm2, %v4921_v21, 0 }
 0x5b2   : > { %v4929_v29 = vpack.c.bf16 %v1626_v25, %v1625_v24  ;;  %4040 = vmatpush3.bf16.xpose.msra.mxu0 %v2153_v28  ;;  %v1640_v30 = vsel %vm1635_vm2, %v4923_v26, 0 }
 0x5b3   : > { %3992 = vmatpush3.bf16.xpose.msra.mxu1 %v1640_v30  ;;  %4051 = vmatprep.subr.bf16.mxu0 %v4539_v12 }
 0x5b4   : > { %3997 = vmatprep.subr.bf16.mxu1 %v4539_v12 }
 0x5b9   : > { %4042 = vmatmul.mubr.msk.bf16.vlgmr.msra.gmra.mrb[8].mxu0 %vm1635_vm2, %v4925_v27 }
 0x5ba   : > { %3994 = vmatmul.mubr.msk.bf16.vlgmr.msra.gmra.mrb[4].mxu1 %vm1635_vm2, %v4929_v29  ;;  %4053 = vmatprep.mubr.msk.bf16.mxu0 %vm4540_vm1, %v4539_v12 }
 0x5bb   : > { %3999 = vmatprep.mubr.msk.bf16.mxu1 %vm4540_vm1, %v4539_v12 }
 0x5cc   : > { %v3989_v31 = vpop.f32.mrb[4].mxu0 }
 0x5cd   : > { %v1610_v32 = vpop.f32.mrb[5].mxu0 }
 0x5ce   : > { %v3990_v33 = vpop.f32.mrb[6].mxu0 }
 0x5cf   : > { %v4943_v34 = vpack.c.bf16 %v3990_v33, %v3989_v31  ;;  %v1613_v35 = vpop.f32.mrb[7].mxu0 }
 0x5d0   : > { %v4945_v36 = vpack.c.bf16 %v1613_v35, %v1610_v32 }
 0x5d2   : > { %3998 = vmatpush3.bf16.msra.mxu1 %v4945_v36 }
 0x5d3   : > { %4003 = vmatprep.subr.bf16.mxu1 %v4539_v12 }
 0x68c   : > { %v4949_v37 = vpop.f32.mrb[8].mxu0 }
 0x68d   : > { %v1676_v38 = vpop.f32.mrb[4].mxu1  ;;  %v4043_v39 = vpop.f32.mrb[9].mxu0 }
 0x68e   : > { %v3995_v40 = vpop.f32.mrb[5].mxu1  ;;  %v4951_v41 = vpop.f32.mrb[10].mxu0  ;;  %v1684_v42 = vsel %vm1683_vm3, %v1676_v38, -inf }
 0x68f   : > { %1685 = vmax.xlane.f32.xlu0 %v1684_v42  ;;  %v1679_v43 = vpop.f32.mrb[6].mxu1  ;;  %v4044_v44 = vpop.f32.mrb[11].mxu0 }
 0x690   : > { %v3996_v45 = vpop.f32.mrb[7].mxu1  ;;  %v1687_v46 = vsel %vm1683_vm3, %v1679_v43, -inf }
 0x691   : > { %1688 = vmax.xlane.f32.xlu1 %v1687_v46 }
 0x71c   : > { %v1686_v47 = vpop.xlane.xlu0 %1685 }
 0x71d   : > { %v1690_v48 = vsub.f32 %v1676_v38, %v1686_v47 }
 0x71e   : > { %v1689_v49 = vpop.xlane.xlu1 %1688 }
 0x71f   : > { %v1692_v50 = vmul.f32 1.442695, %v1690_v48  ;;  %v1691_v51 = vsub.f32 %v1679_v43, %v1689_v49 }
 0x721   : > { %4335 = vpow2.f32 %v1692_v50  ;;  %v1694_v52 = vmul.f32 1.442695, %v1691_v51 }
 0x723   : > { %4337 = vpow2.f32 %v1694_v52 }
 0x72b   : > { %v4336_v53 = vpop.eup %4335 }
 0x72c   : > { %v1696_v54 = vsel %vm1683_vm3, %v4336_v53, 0.0 }
 0x72d   : > { %v4338_v55 = vpop.eup %4337  ;;  %1697 = vadd.xlane.f32.xlu0 %v1696_v54 }
 0x72e   : > { %v1699_v56 = vsel %vm1683_vm3, %v4338_v55, 0.0 }
 0x72f   : > { %1700 = vadd.xlane.f32.xlu1 %v1699_v56 }
 0x740   : > { %1752 = vrot.lane.b32.xlu1 %v4929_v29, %s4541_s27 }
 0x743   : > { %1755 = vrot.lane.b32.xlu0 %v4923_v26, %s4541_s27 }
 0x7ba   : > { %v1698_v57 = vpop.xlane.xlu0 %1697 }
 0x7bb   : > { %4339 = vrcp.f32 %v1698_v57 }
 0x7bc   : > { %v1701_v58 = vpop.xlane.xlu1 %1700 }
 0x7bd   : > { %4341 = vrcp.f32 %v1701_v58 }
 0x7be   : > { %v1756_v63 = vpop.permute.xlu0 %1755 }
 0x7bf   : > { %v1761_v1 = vsel %vm1635_vm2, %v1756_v63, 0 }
 0x7c0   : > { %v1753_v2 = vpop.permute.xlu1 %1752 }
 0x7c5   : > { %v4340_v59 = vpop.eup %4339 }
 0x7c6   : > { %v1704_v61 = vmul.f32 %v4340_v59, %v4336_v53 }
 0x7c7   : > { %v4342_v60 = vpop.eup %4341 }
 0x7c8   : > { %v1705_v62 = vmul.f32 %v4342_v60, %v4338_v55 }
 0x7ca   : > { %v1706_v0 = vpack.c.bf16 %v1705_v62, %v1704_v61 }
 0x7cc   : > { %4000 = vmatmul.mubr.msk.bf16.vlgmr.msra.gmra.mrb[8].mxu1 %vm1683_vm3, %v1706_v0 }
 0x7cd   : > { %4004 = vmatpush3.bf16.xpose.msra.mxu1 %v1761_v1  ;;  %4005 = vmatprep.mubr.msk.bf16.mxu1 %vm4540_vm1, %v4539_v12 }
 0x7ce   : > { %4009 = vmatprep.subr.bf16.mxu1 %v4539_v12 }
 0x7d4   : > { %4006 = vmatmul.mubr.msk.bf16.vlgmr.msra.gmra.mrb[12].mxu1 %vm1635_vm2, %v1753_v2 }
 0x7d5   : > { %4011 = vmatprep.mubr.msk.bf16.mxu1 %vm4540_vm1, %v4539_v12 }
 0x89f   : > { %v4969_v3 = vpop.f32.mrb[8].mxu1 }
 0x8a0   : > { %v4001_v4 = vpop.f32.mrb[9].mxu1 }
 0x8a1   : > { %v4971_v5 = vpop.f32.mrb[10].mxu1 }
 0x8a2   : > { %v4002_v6 = vpop.f32.mrb[11].mxu1 }
 0x8a7   : > { %v1797_v7 = vpop.f32.mrb[12].mxu1 }
 0x8a8   : > { %v4007_v8 = vpop.f32.mrb[13].mxu1  ;;  %v1804_v9 = vsel %vm1683_vm3, %v1797_v7, -inf }
 0x8a9   : > { %1805 = vmax.xlane.f32.xlu1 %v1804_v9  ;;  %v1800_v10 = vpop.f32.mrb[14].mxu1 }
 0x8aa   : > { %v4008_v11 = vpop.f32.mrb[15].mxu1  ;;  %v1807_v13 = vsel %vm1683_vm3, %v1800_v10, -inf }
 0x8ab   : > { %1808 = vmax.xlane.f32.xlu0 %v1807_v13 }
 0x936   : > { %v1806_v14 = vpop.xlane.xlu1 %1805 }
 0x937   : > { %v1810_v15 = vsub.f32 %v1797_v7, %v1806_v14 }
 0x938   : > { %v1809_v16 = vpop.xlane.xlu0 %1808 }
 0x939   : > { %v1812_v17 = vmul.f32 1.442695, %v1810_v15  ;;  %v1811_v18 = vsub.f32 %v1800_v10, %v1809_v16 }
 0x93b   : > { %4343 = vpow2.f32 %v1812_v17  ;;  %v1814_v19 = vmul.f32 1.442695, %v1811_v18 }
 0x93d   : > { %4345 = vpow2.f32 %v1814_v19 }
 0x945   : > { %v4344_v20 = vpop.eup %4343 }
 0x946   : > { %v1816_v22 = vsel %vm1683_vm3, %v4344_v20, 0.0 }
 0x947   : > { %v4346_v23 = vpop.eup %4345  ;;  %1817 = vadd.xlane.f32.xlu0 %v1816_v22 }
 0x948   : > { %v1819_v24 = vsel %vm1683_vm3, %v4346_v23, 0.0 }
 0x949   : > { %1820 = vadd.xlane.f32.xlu1 %v1819_v24 }
 0x95a   : > { %1877 = vrot.lane.b32.xlu1 %v4923_v26, %s4542_s3 }
 0x95d   : > { %1828 = vrot.lane.b32.xlu0 %v4945_v36, %s4541_s27 }
 0x95e   : > { %1875 = vrot.lane.b32.xlu1 %v4929_v29, %s4542_s3 }
 0x9d4   : > { %v1818_v25 = vpop.xlane.xlu0 %1817 }
 0x9d5   : > { %4347 = vrcp.f32 %v1818_v25 }
 0x9d6   : > { %v1821_v28 = vpop.xlane.xlu1 %1820 }
 0x9d7   : > { %4349 = vrcp.f32 %v1821_v28 }
 0x9d8   : > { %v1829_v30 = vpop.permute.xlu0 %1828 }
 0x9d9   : > { %4010 = vmatpush3.bf16.msra.mxu1 %v1829_v30 }
 0x9da   : > { %4015 = vmatprep.subr.bf16.mxu1 %v4539_v12  ;;  %v1878_v38 = vpop.permute.xlu1 %1877 }
 0x9db   : > { %v1883_v40 = vsel %vm1635_vm2, %v1878_v38, 0 }
 0x9de   : > { %v1876_v42 = vpop.permute.xlu1 %1875 }
 0x9df   : > { %v4348_v31 = vpop.eup %4347 }
 0x9e0   : > { %v1824_v33 = vmul.f32 %v4348_v31, %v4344_v20 }
 0x9e1   : > { %v4350_v32 = vpop.eup %4349 }
 0x9e2   : > { %v1825_v35 = vmul.f32 %v4350_v32, %v4346_v23 }
 0x9e4   : > { %v1826_v39 = vpack.c.bf16 %v1825_v35, %v1824_v33 }
 0x9e6   : > { %4012 = vmatmul.mubr.msk.bf16.vlgmr.msra.gmra.mrb[16].mxu1 %vm1683_vm3, %v1826_v39 }
 0x9e7   : > { %4016 = vmatpush3.bf16.xpose.msra.mxu1 %v1883_v40  ;;  %4017 = vmatprep.mubr.msk.bf16.mxu1 %vm4540_vm1, %v4539_v12 }
 0x9e8   : > { %4021 = vmatprep.subr.bf16.mxu1 %v4539_v12 }
 0x9ee   : > { %4018 = vmatmul.mubr.msk.bf16.vlgmr.msra.gmra.mrb[20].mxu1 %vm1635_vm2, %v1876_v42 }
 0x9ef   : > { %4023 = vmatprep.mubr.msk.bf16.mxu1 %vm4540_vm1, %v4539_v12 }
 0xab9   : > { %v4992_v43 = vpop.f32.mrb[16].mxu1 }
 0xaba   : > { %v4013_v44 = vpop.f32.mrb[17].mxu1 }
 0xabb   : > { %v4994_v45 = vpop.f32.mrb[18].mxu1 }
 0xabc   : > { %v4225_v46 = vpack.i.bf16 %v4994_v45, %v4992_v43  ;;  %v4014_v47 = vpop.f32.mrb[19].mxu1 }
 0xac1   : > { %v1919_v48 = vpop.f32.mrb[20].mxu1 }
 0xac2   : > { %v4019_v49 = vpop.f32.mrb[21].mxu1  ;;  %v1926_v50 = vsel %vm1683_vm3, %v1919_v48, -inf }
 0xac3   : > { %1927 = vmax.xlane.f32.xlu1 %v1926_v50  ;;  %v1922_v51 = vpop.f32.mrb[22].mxu1 }
 0xac4   : > { %v4020_v52 = vpop.f32.mrb[23].mxu1  ;;  %v1929_v53 = vsel %vm1683_vm3, %v1922_v51, -inf }
 0xac5   : > { %1930 = vmax.xlane.f32.xlu0 %v1929_v53  ;;  %v2196_v53 = vsel %vm1683_vm3, %v4949_v37, -inf }
 0xad4   : > { %1949 = vrot.lane.b32.xlu1 %v4945_v36, %s4542_s3 }
 0xad8   : > { %1996 = vrot.lane.b32.xlu1 %v4929_v29, %s4543_s20 }
 0xadc   : > { %2267 = vrot.lane.b32.xlu1 %v4921_v21, %s4541_s27 }
 0xae0   : > { %2264 = vrot.lane.b32.xlu1 %v4925_v27, %s4541_s27 }
 0xae4   : > { %2387 = vrot.lane.b32.xlu1 %v4925_v27, %s4542_s3 }
 0xae8   : > { %2508 = vrot.lane.b32.xlu1 %v4925_v27, %s4543_s20 }
 0xb50   : > { %v1928_v54 = vpop.xlane.xlu1 %1927 }
 0xb51   : > { %v1932_v55 = vsub.f32 %v1919_v48, %v1928_v54 }
 0xb52   : > { %v1931_v56 = vpop.xlane.xlu0 %1930 }
 0xb53   : > { %v1934_v57 = vmul.f32 1.442695, %v1932_v55  ;;  %v1933_v58 = vsub.f32 %v1922_v51, %v1931_v56  ;;  %v2199_v55 = vsel %vm1683_vm3, %v4951_v41, -inf }
 0xb54   : > { %v1950_v59 = vpop.permute.xlu1 %1949 }
 0xb55   : > { %4351 = vpow2.f32 %v1934_v57  ;;  %v1936_v29 = vmul.f32 1.442695, %v1933_v58  ;;  %4022 = vmatpush3.bf16.msra.mxu1 %v1950_v59 }
 0xb56   : > { %4027 = vmatprep.subr.bf16.mxu1 %v4539_v12 }
 0xb57   : > { %4353 = vpow2.f32 %v1936_v29 }
 0xb58   : > { %v1997_v60 = vpop.permute.xlu1 %1996 }
 0xb5c   : > { %v2268_v61 = vpop.permute.xlu1 %2267 }
 0xb5d   : > { %v2273_v62 = vsel %vm1635_vm2, %v2268_v61, 0 }
 0xb5e   : > { %4052 = vmatpush3.bf16.xpose.msra.mxu0 %v2273_v62 }
 0xb5f   : > { %v4352_v63 = vpop.eup %4351  ;;  %4063 = vmatprep.subr.bf16.mxu0 %v4539_v12 }
 0xb60   : > { %v1938_v27 = vsel %vm1683_vm3, %v4352_v63, 0.0  ;;  %v2265_v1 = vpop.permute.xlu1 %2264 }
 0xb61   : > { %v4354_v0 = vpop.eup %4353  ;;  %1939 = vadd.xlane.f32.xlu0 %v1938_v27 }
 0xb62   : > { %v1941_v2 = vsel %vm1683_vm3, %v4354_v0, 0.0 }
 0xb64   : > { %v2388_v16 = vpop.permute.xlu1 %2387 }
 0xb65   : > { %4054 = vmatmul.mubr.msk.bf16.vlgmr.msra.gmra.mrb[12].mxu0 %vm1635_vm2, %v2265_v1  ;;  %1942 = vadd.xlane.f32.xlu0 %v1941_v2 }
 0xb66   : > { %4065 = vmatprep.mubr.msk.bf16.mxu0 %vm4540_vm1, %v4539_v12 }
 0xb68   : > { %v2509_v18 = vpop.permute.xlu1 %2508 }
 0xb7b   : > { %1998 = vrot.lane.b32.xlu0 %v4923_v26, %s4543_s20 }
 0xb7f   : > { %2389 = vrot.lane.b32.xlu0 %v4921_v21, %s4542_s3 }
 0xb83   : > { %2510 = vrot.lane.b32.xlu0 %v4921_v21, %s4543_s20 }
 0xbee   : > { %v1940_v4 = vpop.xlane.xlu0 %1939 }
 0xbef   : > { %4355 = vrcp.f32 %v1940_v4 }
 0xbf2   : > { %v1943_v6 = vpop.xlane.xlu0 %1942 }
 0xbf3   : > { %4357 = vrcp.f32 %v1943_v6 }
 0xbf6   : > { %v1999_v7 = vpop.permute.xlu0 %1998 }
 0xbf7   : > { %v2004_v21 = vsel %vm1635_vm2, %v1999_v7, 0 }
 0xbf9   : > { %v4356_v9 = vpop.eup %4355 }
 0xbfa   : > { %v2390_v8 = vpop.permute.xlu0 %2389  ;;  %v1946_v26 = vmul.f32 %v4356_v9, %v4352_v63 }
 0xbfb   : > { %v2395_v10 = vsel %vm1635_vm2, %v2390_v8, 0 }
 0xbfc   : > { %4064 = vmatpush3.bf16.xpose.msra.mxu0 %v2395_v10 }
 0xbfd   : > { %v4358_v11 = vpop.eup %4357  ;;  %4075 = vmatprep.subr.bf16.mxu0 %v4539_v12 }
 0xbfe   : > { %v1947_v13 = vmul.f32 %v4358_v11, %v4354_v0  ;;  %v2511_v14 = vpop.permute.xlu0 %2510 }
 0xbff   : > { %v2516_v17 = vsel %vm1635_vm2, %v2511_v14, 0 }
 0xc00   : > { %v1948_v15 = vpack.c.bf16 %v1947_v13, %v1946_v26 }
 0xc02   : > { %4024 = vmatmul.mubr.msk.bf16.vlgmr.msra.gmra.mrb[24].mxu1 %vm1683_vm3, %v1948_v15 }
 0xc03   : > { %4028 = vmatpush3.bf16.xpose.msra.mxu1 %v2004_v21  ;;  %4066 = vmatmul.mubr.msk.bf16.vlgmr.msra.gmra.mrb[16].mxu0 %vm1635_vm2, %v2388_v16 }
 0xc04   : > { %4076 = vmatpush3.bf16.xpose.msra.mxu0 %v2516_v17  ;;  %4029 = vmatprep.mubr.msk.bf16.mxu1 %vm4540_vm1, %v4539_v12 }
 0xc05   : > { %4077 = vmatprep.mubr.msk.bf16.mxu0 %vm4540_vm1, %v4539_v12  ;;  %4033 = vmatprep.subr.bf16.mxu1 %v4539_v12 }
 0xc0a   : > { %4030 = vmatmul.mubr.msk.bf16.vlgmr.msra.gmra.mrb[28].mxu1 %vm1635_vm2, %v1997_v60 }
 0xc0b   : > { %4078 = vmatmul.mubr.msk.bf16.vlgmr.msra.gmra.mrb[20].mxu0 %vm1635_vm2, %v2509_v18  ;;  %4035 = vmatprep.mubr.msk.bf16.mxu1 %vm4540_vm1, %v4539_v12 }
 0xc38   : > { %v2309_v19 = vpop.f32.mrb[12].mxu0 }
 0xc39   : > { %v4055_v20 = vpop.f32.mrb[13].mxu0  ;;  %v2316_v57 = vsel %vm1683_vm3, %v2309_v19, -inf }
 0xc3a   : > { %v2312_v22 = vpop.f32.mrb[14].mxu0 }
 0xc3b   : > { %v4056_v23 = vpop.f32.mrb[15].mxu0  ;;  %v2319_v54 = vsel %vm1683_vm3, %v2312_v22, -inf }
 0xcd5   : > { %v5041_v24 = vpop.f32.mrb[24].mxu1 }
 0xcd6   : > { %v4025_v25 = vpop.f32.mrb[25].mxu1  ;;  %v5043_v28 = vpop.f32.mrb[16].mxu0 }
 0xcd7   : > { %v5045_v30 = vpop.f32.mrb[26].mxu1  ;;  %v4067_v31 = vpop.f32.mrb[17].mxu0  ;;  %v2438_v59 = vsel %vm1683_vm3, %v5043_v28, -inf }
 0xcd8   : > { %v4230_v32 = vpack.i.bf16 %v5045_v30, %v5041_v24  ;;  %v4026_v33 = vpop.f32.mrb[27].mxu1  ;;  %v2434_v35 = vpop.f32.mrb[18].mxu0 }
 0xcd9   : > { %v4068_v38 = vpop.f32.mrb[19].mxu0  ;;  %v2441_v56 = vsel %vm1683_vm3, %v2434_v35, -inf }
 0xcdd   : > { %v2040_v39 = vpop.f32.mrb[28].mxu1 }
 0xcde   : > { %v4031_v40 = vpop.f32.mrb[29].mxu1  ;;  %v5049_v42 = vpop.f32.mrb[20].mxu0  ;;  %v2047_v44 = vsel %vm1683_vm3, %v2040_v39, -inf }
 0xcdf   : > { %v4079_v47 = vpop.f32.mrb[21].mxu0  ;;  %2048 = vmax.xlane.f32.xlu0 %v2047_v44  ;;  %v2043_v48 = vpop.f32.mrb[30].mxu1  ;;  %v2559_v29 = vsel %vm1683_vm3, %v5049_v42, -inf }
 0xce0   : > { %v4032_v49 = vpop.f32.mrb[31].mxu1  ;;  %v5052_v50 = vpop.f32.mrb[22].mxu0  ;;  %v2050_v51 = vsel %vm1683_vm3, %v2043_v48, -inf }
 0xce1   : > { %v4080_v52 = vpop.f32.mrb[23].mxu0  ;;  %2051 = vmax.xlane.f32.xlu1 %v2050_v51  ;;  %v2562_v58 = vsel %vm1683_vm3, %v5052_v50, -inf }
 0xce3   : > { %2197 = vmax.xlane.f32.xlu0 %v2196_v53 }
 0xce5   : > { %2320 = vmax.xlane.f32.xlu1 %v2319_v54 }
 0xce7   : > { %2200 = vmax.xlane.f32.xlu0 %v2199_v55 }
 0xce9   : > { %2442 = vmax.xlane.f32.xlu1 %v2441_v56 }
 0xceb   : > { %2317 = vmax.xlane.f32.xlu0 %v2316_v57 }
 0xced   : > { %2563 = vmax.xlane.f32.xlu1 %v2562_v58 }
 0xcef   : > { %2439 = vmax.xlane.f32.xlu0 %v2438_v59 }
 0xcf3   : > { %2560 = vmax.xlane.f32.xlu0 %v2559_v29 }
 0xd6c   : > { %v2049_v60 = vpop.xlane.xlu0 %2048 }
 0xd6d   : > { %v2053_v26 = vsub.f32 %v2040_v39, %v2049_v60 }
 0xd6e   : > { %v2052_v61 = vpop.xlane.xlu1 %2051 }
 0xd6f   : > { %v2054_v13 = vsub.f32 %v2043_v48, %v2052_v61  ;;  %v2055_v21 = vmul.f32 1.442695, %v2053_v26 }
 0xd70   : > { %v2198_v62 = vpop.xlane.xlu0 %2197 }
 0xd71   : > { %v2202_v63 = vsub.f32 %v4949_v37, %v2198_v62 }
 0xd72   : > { %v2321_v27 = vpop.xlane.xlu1 %2320 }
 0xd73   : > { %v2204_v0 = vmul.f32 1.442695, %v2202_v63  ;;  %v2323_v1 = vsub.f32 %v2312_v22, %v2321_v27 }
 0xd74   : > { %v2201_v2 = vpop.xlane.xlu0 %2200 }
 0xd75   : > { %4359 = vpow2.f32 %v2204_v0  ;;  %v2203_v4 = vsub.f32 %v4951_v41, %v2201_v2  ;;  %v2326_v7 = vmul.f32 1.442695, %v2323_v1  ;;  %v2057_v41 = vmul.f32 1.442695, %v2054_v13 }
 0xd76   : > { %v2443_v6 = vpop.xlane.xlu1 %2442 }
 0xd77   : > { %v2206_v8 = vmul.f32 1.442695, %v2203_v4  ;;  %v2445_v9 = vsub.f32 %v2434_v35, %v2443_v6 }
 0xd78   : > { %v2318_v10 = vpop.xlane.xlu0 %2317 }
 0xd79   : > { %4361 = vpow2.f32 %v2206_v8  ;;  %v2322_v11 = vsub.f32 %v2309_v19, %v2318_v10  ;;  %v2448_v14 = vmul.f32 1.442695, %v2445_v9 }
 0xd7a   : > { %4363 = vpow2.f32 %v2326_v7  ;;  %v2564_v20 = vpop.xlane.xlu1 %2563 }
 0xd7b   : > { %v2324_v15 = vmul.f32 1.442695, %v2322_v11 }
 0xd7c   : > { %v2440_v37 = vpop.xlane.xlu0 %2439 }
 0xd7d   : > { %4365 = vpow2.f32 %v2324_v15  ;;  %v2444_v16 = vsub.f32 %v5043_v28, %v2440_v37  ;;  %v2566_v28 = vsub.f32 %v5052_v50, %v2564_v20 }
 0xd7e   : > { %4367 = vpow2.f32 %v2448_v14 }
 0xd7f   : > { %v5071_v17 = vpop.eup %4359  ;;  %v2446_v18 = vmul.f32 1.442695, %v2444_v16  ;;  %v2569_v39 = vmul.f32 1.442695, %v2566_v28  ;;  %v4281_v28 = vld [vmem:[%s4782_s26 + $0x10] sm:$0xff]  }
 0xd80   : > { %v2561_v22 = vpop.xlane.xlu0 %2560  ;;  %v2208_v19 = vsel %vm1683_vm3, %v5071_v17, 0.0 }
 0xd81   : > { %4369 = vpow2.f32 %v2446_v18  ;;  %v2565_v23 = vsub.f32 %v5049_v42, %v2561_v22  ;;  %2209 = vadd.xlane.f32.xlu0 %v2208_v19 }
 0xd82   : > { %4371 = vpow2.f32 %v2055_v21 }
 0xd83   : > { %v5076_v25 = vpop.eup %4361  ;;  %4373 = vpow2.f32 %v2057_v41  ;;  %v2567_v31 = vmul.f32 1.442695, %v2565_v23  ;;  %v4279_v23 = vld [vmem:[%s4782_s26] sm:$0xff]  }
 0xd84   : > { %v2211_v33 = vsel %vm1683_vm3, %v5076_v25, 0.0  ;;  %v5081_v35 = vpop.eup %4363  ;;  %4087 = vmatprep.subr.bf16.mxu0 %v4279_v23 }
 0xd85   : > { %2212 = vadd.xlane.f32.xlu1 %v2211_v33  ;;  %4375 = vpow2.f32 %v2567_v31  ;;  %v2331_v42 = vsel %vm1683_vm3, %v5081_v35, 0.0  ;;  %4088 = vmatpush3.bf16.msra.mxu0 %v4279_v23 }
 0xd86   : > { %4377 = vpow2.f32 %v2569_v39 }
 0xd87   : > { %v5083_v38 = vpop.eup %4365 }
 0xd88   : > { %v2328_v40 = vsel %vm1683_vm3, %v5083_v38, 0.0  ;;  %v5089_v44 = vpop.eup %4367 }
 0xd89   : > { %2329 = vadd.xlane.f32.xlu0 %v2328_v40  ;;  %2332 = vadd.xlane.f32.xlu1 %v2331_v42  ;;  %v2453_v50 = vsel %vm1683_vm3, %v5089_v44, 0.0  ;;  %v4282_v40 = vld [vmem:[%s4782_s26 + $0x18] sm:$0xff]  }
 0xd8b   : > { %v5091_v47 = vpop.eup %4369 }
 0xd8c   : > { %v4372_v48 = vpop.eup %4371  ;;  %v2450_v49 = vsel %vm1683_vm3, %v5091_v47, 0.0 }
 0xd8d   : > { %v4374_v51 = vpop.eup %4373  ;;  %2451 = vadd.xlane.f32.xlu0 %v2450_v49  ;;  %2454 = vadd.xlane.f32.xlu1 %v2453_v50  ;;  %v2059_v52 = vsel %vm1683_vm3, %v4372_v48, 0.0  ;;  %v4284_v50 = vld [vmem:[%s4782_s26 + $0x28] sm:$0xff]  }
 0xd8e   : > { %v2062_v53 = vsel %vm1683_vm3, %v4374_v51, 0.0 }
 0xd8f   : > { %v5099_v54 = vpop.eup %4375 }
 0xd90   : > { %v2571_v55 = vsel %vm1683_vm3, %v5099_v54, 0.0  ;;  %v5103_v56 = vpop.eup %4377 }
 0xd91   : > { %2060 = vadd.xlane.f32.xlu0 %v2059_v52  ;;  %2063 = vadd.xlane.f32.xlu1 %v2062_v53  ;;  %v2574_v57 = vsel %vm1683_vm3, %v5103_v56, 0.0  ;;  %v4285_v53 = vld [vmem:[%s4782_s26 + $0x30] sm:$0xff]  }
 0xd95   : > { %2572 = vadd.xlane.f32.xlu1 %v2571_v55 }
 0xd99   : > { %2575 = vadd.xlane.f32.xlu1 %v2574_v57  ;;  %v4286_v57 = vld [vmem:[%s4782_s26 + $0x38] sm:$0xff]  }
 0xda7   : > { %2070 = vrot.lane.b32.xlu0 %v4945_v36, %s4543_s20 }
 0xdaa   : > { %2340 = vrot.lane.b32.xlu1 %v4943_v34, %s4541_s27 }
 0xdab   : > { %2461 = vrot.lane.b32.xlu0 %v4943_v34, %s4542_s3 }
 0xdae   : > { %2582 = vrot.lane.b32.xlu1 %v4943_v34, %s4543_s20 }
 0xdaf   : > { %4226 = vrot.lane.b32.xlu0 %v4225_v46, %s4543_s20 }
 0xdb2   : > { %4231 = vrot.lane.b32.xlu1 %v4230_v32, %s4542_s3 }
 0xe0e   : > { %v2210_v36 = vpop.xlane.xlu0 %2209 }
 0xe12   : > { %v2213_v58 = vpop.xlane.xlu1 %2212 }
 0xe16   : > { %v2330_v59 = vpop.xlane.xlu0 %2329  ;;  %v2333_v29 = vpop.xlane.xlu1 %2332 }
 0xe1a   : > { %v2452_v60 = vpop.xlane.xlu0 %2451  ;;  %v2455_v61 = vpop.xlane.xlu1 %2454 }
 0xe1e   : > { %v2061_v62 = vpop.xlane.xlu0 %2060  ;;  %v2064_v63 = vpop.xlane.xlu1 %2063 }
 0xe1f   : > { %4379 = vrcp.f32 %v2061_v62 }
 0xe20   : > { %4381 = vrcp.f32 %v2064_v63 }
 0xe21   : > { %4383 = vrcp.f32 %v2213_v58 }
 0xe22   : > { %v2071_v27 = vpop.permute.xlu0 %2070  ;;  %4385 = vrcp.f32 %v2210_v36  ;;  %v2573_v30 = vpop.xlane.xlu1 %2572 }
 0xe23   : > { %4034 = vmatpush3.bf16.msra.mxu1 %v2071_v27  ;;  %4387 = vrcp.f32 %v2330_v59 }
 0xe24   : > { %4045 = vmatprep.subr.bf16.mxu1 %v4539_v12  ;;  %4389 = vrcp.f32 %v2333_v29 }
 0xe25   : > { %4391 = vrcp.f32 %v2452_v60 }
 0xe26   : > { %v2576_v4 = vpop.xlane.xlu1 %2575  ;;  %4393 = vrcp.f32 %v2455_v61  ;;  %v2462_v15 = vpop.permute.xlu0 %2461 }
 0xe27   : > { %4395 = vrcp.f32 %v2576_v4 }
 0xe28   : > { %4397 = vrcp.f32 %v2573_v30 }
 0xe29   : > { %v4380_v43 = vpop.eup %4379 }
 0xe2a   : > { %v4382_v45 = vpop.eup %4381  ;;  %v2067_v46 = vmul.f32 %v4380_v43, %v4372_v48  ;;  %v2341_v10 = vpop.permute.xlu1 %2340 }
 0xe2b   : > { %v2068_v24 = vmul.f32 %v4382_v45, %v4374_v51  ;;  %v4384_v0 = vpop.eup %4383  ;;  %v4227_v43 = vpop.permute.xlu0 %4226 }
 0xe2c   : > { %v4386_v1 = vpop.eup %4385  ;;  %v2217_v2 = vmul.f32 %v4384_v0, %v5076_v25  ;;  %v4280_v25 = vld [vmem:[%s4782_s26 + $0x8] sm:$0xff]  }
 0xe2d   : > { %v2069_v32 = vpack.c.bf16 %v2068_v24, %v2067_v46  ;;  %v2216_v6 = vmul.f32 %v4386_v1, %v5071_v17  ;;  %v4388_v7 = vpop.eup %4387  ;;  %4089 = vmatprep.subr.bf16.mxu0 %v4280_v25  ;;  %v4229_v46 = vunpack.i.h.bf16 %v4227_v43  ;;  %v4228_v24 = vunpack.i.l.bf16 %v4227_v43  ;;  %v4295_v43 = vld [vmem:[%s4797_s29 + $0x24] ss:$8 sps:$4 sm:$0xff]  }
 0xe2e   : > { %v4390_v9 = vpop.eup %4389  ;;  %v2583_v41 = vpop.permute.xlu1 %2582  ;;  %4090 = vmatpush3.bf16.msra.mxu0 %v4280_v25 }
 0xe2f   : > { %4036 = vmatmul.mubr.msk.bf16.vlgmr.msra.gmra.mrb[32].mxu1 %vm1683_vm3, %v2069_v32  ;;  %v2218_v8 = vpack.c.bf16 %v2217_v2, %v2216_v6  ;;  %v2337_v11 = vmul.f32 %v4390_v9, %v5081_v35  ;;  %v4392_v26 = vpop.eup %4391  ;;  %4091 = vmatprep.subr.bf16.mxu0 %v4281_v28  ;;  %v2142_v1 = vsel %vm1635_vm2, %v4971_v5, %v4229_v46  ;;  %v4298_v46 = vld [vmem:[%s4797_s29 + $0x34] ss:$8 sps:$4 sm:$0xff]  }
 0xe30   : > { %4046 = vmatpush3.bf16.msra.mxu1 %v4943_v34  ;;  %4047 = vmatprep.mubr.msk.bf16.mxu1 %vm4540_vm1, %v4539_v12  ;;  %v2336_v34 = vmul.f32 %v4388_v7, %v5083_v38  ;;  %v4394_v14 = vpop.eup %4393  ;;  %v2458_v37 = vmul.f32 %v4392_v26, %v5091_v47  ;;  %v4283_v47 = vld [vmem:[%s4782_s26 + $0x20] sm:$0xff]   ;;  %v2141_v2 = vsel %vm1635_vm2, %v4969_v3, %v4228_v24  ;;  %v4296_v24 = vld [vmem:[%s4797_s29 + $0x30] ss:$8 sps:$4 sm:$0xff]  }
 0xe31   : > { %4057 = vmatprep.subr.bf16.mxu1 %v4539_v12  ;;  %v2459_v16 = vmul.f32 %v4394_v14, %v5089_v44  ;;  %v4396_v17 = vpop.eup %4395 }
 0xe32   : > { %v2338_v13 = vpack.c.bf16 %v2337_v11, %v2336_v34  ;;  %v4398_v18 = vpop.eup %4397  ;;  %v2580_v20 = vmul.f32 %v4396_v17, %v5103_v56  ;;  %4092 = vmatpush3.bf16.msra.mxu0 %v4281_v28  ;;  %v4232_v45 = vpop.permute.xlu1 %4231  ;;  %v4423_v28 = vld [vmem:[#allocation2] sm:$0xff] }
 0xe33   : > { %v2460_v21 = vpack.c.bf16 %v2459_v16, %v2458_v37  ;;  %v2579_v22 = vmul.f32 %v4398_v18, %v5099_v54  ;;  %4093 = vmatprep.subr.bf16.mxu0 %v4282_v40  ;;  %v4234_v30 = vunpack.i.h.bf16 %v4232_v45  ;;  %v4233_v32 = vunpack.i.l.bf16 %v4232_v45  ;;  %v4293_v45 = vld [vmem:[%s4797_s29 + $0x20] ss:$8 sps:$4 sm:$0xff]  }
 0xe35   : > { %v2581_v19 = vpack.c.bf16 %v2580_v20, %v2579_v22  ;;  %v2145_v7 = vsel %vm2143_vm4, %v2142_v1, %v4234_v30  ;;  %v4301_v30 = vld [vmem:[%s4797_s29 + $0x44] ss:$8 sps:$4 sm:$0xff]   ;;  %v4302_v1 = vld [vmem:[%s4797_s29 + $0x50] ss:$8 sps:$4 sm:$0xff]  }
 0xe36   : > { %4094 = vmatpush3.bf16.msra.mxu0 %v4282_v40 }
 0xe37   : > { %4048 = vmatmul.mubr.msk.bf16.vlgmr.msra.gmra.mrb[36].mxu1 %vm1683_vm3, %v2218_v8  ;;  %4095 = vmatprep.subr.bf16.mxu0 %v4283_v47  ;;  %v2144_v8 = vsel %vm2143_vm4, %v2141_v2, %v4233_v32  ;;  %v4299_v32 = vld [vmem:[%s4797_s29 + $0x40] ss:$8 sps:$4 sm:$0xff]   ;;  %v4307_v2 = vld [vmem:[%s4797_s29 + $0x64] ss:$8 sps:$4 sm:$0xff]  }
 0xe38   : > { %4058 = vmatpush3.bf16.msra.mxu1 %v2341_v10  ;;  %4059 = vmatprep.mubr.msk.bf16.mxu1 %vm4540_vm1, %v4539_v12 }
 0xe39   : > { %4069 = vmatprep.subr.bf16.mxu1 %v4539_v12 }
 0xe3a   : > { %4096 = vmatpush3.bf16.msra.mxu0 %v4283_v47  ;;  %v4287_v47 = vld [vmem:[%s4797_s29] ss:$8 sps:$4 sm:$0xff]  }
 0xe3b   : > { %4097 = vmatprep.subr.bf16.mxu0 %v4284_v50 }
 0xe3e   : > { %4098 = vmatpush3.bf16.msra.mxu0 %v4284_v50  ;;  %v4290_v50 = vld [vmem:[%s4797_s29 + $0x10] ss:$8 sps:$4 sm:$0xff]  }
 0xe3f   : > { %4060 = vmatmul.mubr.msk.bf16.vlgmr.msra.gmra.mrb[40].mxu1 %vm1683_vm3, %v2338_v13  ;;  %4099 = vmatprep.subr.bf16.mxu0 %v4285_v53 }
 0xe40   : > { %4070 = vmatpush3.bf16.msra.mxu1 %v2462_v15  ;;  %4071 = vmatprep.mubr.msk.bf16.mxu1 %vm4540_vm1, %v4539_v12 }
 0xe41   : > { %4081 = vmatprep.subr.bf16.mxu1 %v4539_v12 }
 0xe42   : > { %4100 = vmatpush3.bf16.msra.mxu0 %v4285_v53 }
 0xe43   : > { %4101 = vmatprep.subr.bf16.mxu0 %v4286_v57 }
 0xe46   : > { %4102 = vmatpush3.bf16.msra.mxu0 %v4286_v57 }
 0xe47   : > { %4072 = vmatmul.mubr.msk.bf16.vlgmr.msra.gmra.mrb[44].mxu1 %vm1683_vm3, %v2460_v21 }
 0xe48   : > { %4082 = vmatpush3.bf16.msra.mxu1 %v2583_v41  ;;  %4083 = vmatprep.mubr.msk.bf16.mxu1 %vm4540_vm1, %v4539_v12 }
 0xe4f   : > { %4084 = vmatmul.mubr.msk.bf16.vlgmr.msra.gmra.mrb[48].mxu1 %vm1683_vm3, %v2581_v19 }
 0xf02   : > { %v2110_v31 = vpop.f32.mrb[32].mxu1 }
 0xf03   : > { %v4037_v33 = vpop.f32.mrb[33].mxu1 }
 0xf04   : > { %v2113_v12 = vpop.f32.mrb[34].mxu1 }
 0xf05   : > { %v4235_v35 = vpack.i.bf16 %v2113_v12, %v2110_v31  ;;  %v4038_v38 = vpop.f32.mrb[35].mxu1 }
 0xf07   : > { %4236 = vrot.lane.b32.xlu1 %v4235_v35, %s4541_s27  ;;  %v4424_v35 = vld [vmem:[#allocation2 + $0x8] sm:$0xff] }
 0xf0a   : > { %v5153_v39 = vpop.f32.mrb[36].mxu1 }
 0xf0b   : > { %v4049_v42 = vpop.f32.mrb[37].mxu1 }
 0xf0c   : > { %v2259_v44 = vpop.f32.mrb[38].mxu1  ;;  %v4426_v42 = vld [vmem:[#allocation2 + $0x18] sm:$0xff] }
 0xf0d   : > { %v4050_v48 = vpop.f32.mrb[39].mxu1 }
 0xf0e   : > { %v4289_v48 = vld [vmem:[%s4797_s29 + $0x4] ss:$8 sps:$4 sm:$0xff]  }
 0xf0f   : > { %2954 = vmatprep.subr.bf16.mxu1 %v4289_v48 }
 0xf10   : > { %2955 = vmatpush1.bf16.msra.mxu1 %v4287_v47 }
 0xf12   : > { %v2380_v49 = vpop.f32.mrb[40].mxu1 }
 0xf13   : > { %v4061_v51 = vpop.f32.mrb[41].mxu1 }
 0xf14   : > { %v2383_v52 = vpop.f32.mrb[42].mxu1 }
 0xf15   : > { %v4240_v54 = vpack.i.bf16 %v2383_v52, %v2380_v49  ;;  %v4062_v55 = vpop.f32.mrb[43].mxu1  ;;  %v4292_v49 = vld [vmem:[%s4797_s29 + $0x14] ss:$8 sps:$4 sm:$0xff]  }
 0xf16   : > { %2956 = vmatprep.subr.bf16.mxu1 %v4292_v49 }
 0xf17   : > { %4241 = vrot.lane.b32.xlu0 %v4240_v54, %s4543_s20  ;;  %2957 = vmatpush1.bf16.msra.mxu1 %v4290_v50 }
 0xf18   : > { %2958 = vmatprep.subr.bf16.mxu1 %v4295_v43  ;;  %v4326_v43 = vld [vmem:[%s4807_s8 + $0x38] sm:$0xff]  }
 0xf1a   : > { %v2501_v56 = vpop.f32.mrb[44].mxu1 }
 0xf1b   : > { %v4073_v36 = vpop.f32.mrb[45].mxu1  ;;  %2959 = vmatpush1.bf16.msra.mxu1 %v4293_v45  ;;  %v2864_v45 = vlaneseq }
 0xf1c   : > { %v2504_v58 = vpop.f32.mrb[46].mxu1  ;;  %2960 = vmatprep.subr.bf16.mxu1 %v4298_v46 }
 0xf1d   : > { %v4245_v59 = vpack.i.bf16 %v2504_v58, %v2501_v56  ;;  %v4074_v29 = vpop.f32.mrb[47].mxu1  ;;  %v2865_v46 = vshrl.u32 %v2864_v45, 7 }
 0xf1f   : > { %4246 = vrot.lane.b32.xlu0 %v4245_v59, %s4542_s3  ;;  %2961 = vmatpush1.bf16.msra.mxu1 %v4296_v24  ;;  %v2866_v24 = vsub.s32 0, %v2865_v46 }
 0xf20   : > { %2962 = vmatprep.subr.bf16.mxu1 %v4301_v30  ;;  %v2862_v30 = vld [vmem:[%s4802_s23] sm:$0x3] }
 0xf22   : > { %v2622_v60 = vpop.f32.mrb[48].mxu1 }
 0xf23   : > { %v4085_v61 = vpop.f32.mrb[49].mxu1  ;;  %2963 = vmatpush1.bf16.msra.mxu1 %v4299_v32  ;;  %v2870_v32 = vsub.s32 1, %v2865_v46 }
 0xf24   : > { %v2625_v62 = vpop.f32.mrb[50].mxu1 }
 0xf25   : > { %v4250_v63 = vpack.i.bf16 %v2625_v62, %v2622_v60  ;;  %v4086_v27 = vpop.f32.mrb[51].mxu1 }
 0xf27   : > { %4251 = vrot.lane.b32.xlu1 %v4250_v63, %s4541_s27  ;;  %s5464_s27 = sld [smem:[#allocation34_spill]] (!%p3776_p1) }
 0xf79   : > { %v4237_v0 = vpop.permute.xlu1 %4236 }
 0xf7a   : > { %v4239_v4 = vunpack.i.h.bf16 %v4237_v0  ;;  %v4238_v6 = vunpack.i.l.bf16 %v4237_v0  ;;  %v4304_v0 = vld [vmem:[%s4797_s29 + $0x54] ss:$8 sps:$4 sm:$0xff]  }
 0xf7b   : > { %2964 = vmatprep.subr.bf16.mxu1 %v4304_v0  ;;  %v2867_v0 = vrot.slane %v2862_v30, %v2866_v24 }
 0xf7c   : > { %v2147_v9 = vsel %vm2146_vm5, %v2144_v8, %v4238_v6  ;;  %v2148_v10 = vsel %vm2146_vm5, %v2145_v7, %v4239_v4  ;;  %2965 = vmatpush1.bf16.msra.mxu1 %v4302_v1  ;;  %v4305_v4 = vld [vmem:[%s4797_s29 + $0x60] ss:$8 sps:$4 sm:$0xff]   ;;  %v4310_v6 = vld [vmem:[%s4797_s29 + $0x74] ss:$8 sps:$4 sm:$0xff]   ;;  %v4308_v7 = vld [vmem:[%s4797_s29 + $0x70] ss:$8 sps:$4 sm:$0xff]   ;;  %v2871_v1 = vrot.slane %v2862_v30, %v2870_v32 }
 0xf7d   : > { %v2659_v34 = vpack.c.bf16 %v2148_v10, %v2147_v9  ;;  %2966 = vmatprep.subr.bf16.mxu1 %v4307_v2  ;;  %v4544_v8 = vmov 0   ;;  %v4311_v9 = vld [vmem:[%s4807_s8 + $0x40] sm:$0xff]  }
 0xf7e   : > { %2986 = vmatprep.mubr.bf16.mxu1 %v4544_v8  ;;  %v4312_v10 = vld [vmem:[%s4807_s8] sm:$0xff]   ;;  %3884 = vmatprep.subr.bf16.mxu0 %v4311_v9 }
 0xf7f   : > { %4103 = vmatprep.mubr.bf16.mxu0 %v2659_v34  ;;  %v4313_v34 = vld [vmem:[%s4807_s8 + $0x48] sm:$0xff]  }
 0xf80   : > { %2967 = vmatpush1.bf16.msra.mxu1 %v4305_v4 }
 0xf81   : > { %2968 = vmatprep.subr.bf16.mxu1 %v4310_v6 }
 0xf84   : > { %2969 = vmatpush1.bf16.msra.mxu1 %v4308_v7 }
 0xf89   : > { %v4242_v11 = vpop.permute.xlu0 %4241 }
 0xf8a   : > { %v4244_v13 = vunpack.i.h.bf16 %v4242_v11  ;;  %v4243_v14 = vunpack.i.l.bf16 %v4242_v11  ;;  %v4314_v11 = vld [vmem:[%s4807_s8 + $0x8] sm:$0xff]  }
 0xf8c   : > { %v2654_v3 = vsel %vm1635_vm2, %v2259_v44, %v4244_v13  ;;  %v2653_v16 = vsel %vm1635_vm2, %v5153_v39, %v4243_v14  ;;  %v4425_v39 = vld [vmem:[#allocation2 + $0x10] sm:$0xff] }
 0xf91   : > { %v4247_v26 = vpop.permute.xlu0 %4246 }
 0xf92   : > { %v4249_v5 = vunpack.i.h.bf16 %v4247_v26  ;;  %v4248_v15 = vunpack.i.l.bf16 %v4247_v26 }
 0xf94   : > { %v2656_v41 = vsel %vm2143_vm4, %v2654_v3, %v4249_v5  ;;  %v2655_v18 = vsel %vm2143_vm4, %v2653_v16, %v4248_v15 }
 0xf99   : > { %v4252_v37 = vpop.permute.xlu1 %4251 }
 0xf9a   : > { %v4254_v21 = vunpack.i.h.bf16 %v4252_v37  ;;  %v4253_v17 = vunpack.i.l.bf16 %v4252_v37 }
 0xf9c   : > { %v2658_v20 = vsel %vm2146_vm5, %v2656_v41, %v4254_v21  ;;  %v2657_v22 = vsel %vm2146_vm5, %v2655_v18, %v4253_v17 }
 0xf9d   : > { %v2660_v19 = vpack.c.bf16 %v2658_v20, %v2657_v22  ;;  %v3741_v22 = vld [vmem:[%s5458_s2] ss:$0 sm:$0xff] }
 0xf9f   : > { %4104 = vmatmul.mubr.bf16.vlgmr.msra.gmra.mrb[24].mxu0 %v2660_v19 }
 0xfa0   : > { %3885 = vmatpush3.bf16.msra.mxu0 %v4312_v10 }
 0xfa1   : > { %3886 = vmatprep.subr.bf16.mxu0 %v4313_v34 }
 0xfa4   : > { %3887 = vmatpush3.bf16.msra.mxu0 %v4314_v11 }
0x1072   : > { %v4105_v23 = vpop.f32.mrb[24].mxu0 }
0x1073   : > { %v2759_v25 = vpop.f32.mrb[25].mxu0  ;;  %v5183_v40 = vadd.f32 %v4425_v39, %v4105_v23 }
0x1074   : > { %v5178_v31 = vadd.f32 %v4423_v28, %v2759_v25  ;;  %v4106_v33 = vpop.f32.mrb[26].mxu0 }
0x1075   : > { %v2762_v12 = vpop.f32.mrb[27].mxu0  ;;  %v5187_v44 = vadd.f32 %v4426_v42, %v4106_v33 }
0x1076   : > { %v5180_v38 = vadd.f32 %v4424_v35, %v2762_v12  ;;  %2780 = vadd.xlane.f32.xlu0 %v5178_v31  ;;  %v3742_v12 = vld [vmem:[%s5459_s22] ss:$0 sm:$0xff] }
0x1078   : > { %2782 = vadd.xlane.f32.xlu1 %v5180_v38 }
0x107a   : > { %2784 = vadd.xlane.f32.xlu0 %v5183_v40 }
0x107e   : > { %2786 = vadd.xlane.f32.xlu0 %v5187_v44 }
0x1103   : > { %v2781_v51 = vpop.xlane.xlu0 %2780 }
0x1104   : > { %v2788_v52 = vmul.f32 0.0078125, %v2781_v51 }
0x1105   : > { %v2783_v53 = vpop.xlane.xlu1 %2782 }
0x1106   : > { %v5195_v54 = vsub.f32 %v5178_v31, %v2788_v52  ;;  %v2789_v55 = vmul.f32 0.0078125, %v2783_v53 }
0x1107   : > { %v2785_v56 = vpop.xlane.xlu0 %2784 }
0x1108   : > { %v5198_v57 = vsub.f32 %v5180_v38, %v2789_v55  ;;  %v2790_v36 = vmul.f32 0.0078125, %v2785_v56  ;;  %v2796_v58 = vmul.f32 %v5195_v54, %v5195_v54  ;;  %v4315_v56 = vld [vmem:[%s4807_s8 + $0x50] sm:$0xff]  }
0x1109   : > { %3888 = vmatprep.subr.bf16.mxu0 %v4315_v56 }
0x110a   : > { %v5203_v59 = vsub.f32 %v5183_v40, %v2790_v36  ;;  %2800 = vadd.xlane.f32.xlu0 %v2796_v58  ;;  %v2797_v29 = vmul.f32 %v5198_v57, %v5198_v57  ;;  %v4317_v36 = vld [vmem:[%s4807_s8 + $0x58] sm:$0xff]  }
0x110b   : > { %v2787_v60 = vpop.xlane.xlu0 %2786  ;;  %v4318_v58 = vld [vmem:[%s4807_s8 + $0x18] sm:$0xff]  }
0x110c   : > { %v2791_v61 = vmul.f32 0.0078125, %v2787_v60  ;;  %2802 = vadd.xlane.f32.xlu1 %v2797_v29  ;;  %v2798_v62 = vmul.f32 %v5203_v59, %v5203_v59  ;;  %v4320_v29 = vld [vmem:[%s4807_s8 + $0x20] sm:$0xff]   ;;  %v4321_v60 = vld [vmem:[%s4807_s8 + $0x68] sm:$0xff]  }
0x110e   : > { %v5210_v63 = vsub.f32 %v5187_v44, %v2791_v61  ;;  %2804 = vadd.xlane.f32.xlu0 %v2798_v62  ;;  %v4322_v61 = vld [vmem:[%s4807_s8 + $0x28] sm:$0xff]   ;;  %v4323_v62 = vld [vmem:[%s4807_s8 + $0x70] sm:$0xff]  }
0x1110   : > { %v2799_v27 = vmul.f32 %v5210_v63, %v5210_v63 }
0x1112   : > { %2806 = vadd.xlane.f32.xlu1 %v2799_v27  ;;  %v4325_v27 = vld [vmem:[%s4807_s8 + $0x78] sm:$0xff]  }
0x1197   : > { %v2801_v26 = vpop.xlane.xlu0 %2800 }
0x1198   : > { %v2808_v13 = vmul.f32 0.0078125, %v2801_v26 }
0x1199   : > { %v2803_v14 = vpop.xlane.xlu1 %2802 }
0x119a   : > { %v2812_v5 = vadd.f32 1e-05, %v2808_v13  ;;  %v2809_v15 = vmul.f32 0.0078125, %v2803_v14 }
0x119b   : > { %v2805_v37 = vpop.xlane.xlu0 %2804 }
0x119c   : > { %4399 = vrsqrt.f32 %v2812_v5  ;;  %v2813_v3 = vadd.f32 1e-05, %v2809_v15  ;;  %v2810_v16 = vmul.f32 0.0078125, %v2805_v37 }
0x119e   : > { %4401 = vrsqrt.f32 %v2813_v3  ;;  %v2814_v21 = vadd.f32 1e-05, %v2810_v16 }
0x119f   : > { %v2807_v17 = vpop.xlane.xlu1 %2806 }
0x11a0   : > { %4403 = vrsqrt.f32 %v2814_v21  ;;  %v2811_v41 = vmul.f32 0.0078125, %v2807_v17 }
0x11a2   : > { %v2815_v18 = vadd.f32 1e-05, %v2811_v41 }
0x11a4   : > { %4405 = vrsqrt.f32 %v2815_v18 }
0x11a6   : > { %v4400_v20 = vpop.eup %4399 }
0x11a7   : > { %v2820_v19 = vmul.f32 %v4400_v20, %v5195_v54 }
0x11a8   : > { %v4402_v23 = vpop.eup %4401 }
0x11a9   : > { %v2821_v25 = vmul.f32 %v4402_v23, %v5198_v57  ;;  %v2830_v28 = vmul.f32 %v3741_v22, %v2820_v19  ;;  %v4316_v57 = vld [vmem:[%s4807_s8 + $0x10] sm:$0xff]  }
0x11aa   : > { %v4404_v33 = vpop.eup %4403  ;;  %3889 = vmatpush3.bf16.msra.mxu0 %v4316_v57 }
0x11ab   : > { %v2831_v35 = vmul.f32 %v3741_v22, %v2821_v25  ;;  %v2840_v39 = vadd.f32 %v3742_v12, %v2830_v28  ;;  %v2822_v47 = vmul.f32 %v4404_v33, %v5203_v59  ;;  %3890 = vmatprep.subr.bf16.mxu0 %v4317_v36  ;;  %v4319_v59 = vld [vmem:[%s4807_s8 + $0x60] sm:$0xff]  }
0x11ad   : > { %v2841_v42 = vadd.f32 %v3742_v12, %v2831_v35  ;;  %v2832_v51 = vmul.f32 %v3741_v22, %v2822_v47 }
0x11ae   : > { %v4406_v48 = vpop.eup %4405  ;;  %3891 = vmatpush3.bf16.msra.mxu0 %v4318_v58 }
0x11af   : > { %v2844_v49 = vpack.c.bf16 %v2841_v42, %v2840_v39  ;;  %v2823_v50 = vmul.f32 %v4406_v48, %v5210_v63  ;;  %v2842_v54 = vadd.f32 %v3742_v12, %v2832_v51  ;;  %3892 = vmatprep.subr.bf16.mxu0 %v4319_v59  ;;  %v4324_v63 = vld [vmem:[%s4807_s8 + $0x30] sm:$0xff]  }
0x11b1   : > { %2987 = vmatmul.mubr.bf16.vlgmr.msra.gmra.mrb[52].mxu1 %v2844_v49  ;;  %v2833_v52 = vmul.f32 %v3741_v22, %v2823_v50 }
0x11b2   : > { %2996 = vmatprep.mubr.bf16.mxu1 %v4544_v8  ;;  %3893 = vmatpush3.bf16.msra.mxu0 %v4320_v29 }
0x11b3   : > { %v2843_v53 = vadd.f32 %v3742_v12, %v2833_v52  ;;  %3894 = vmatprep.subr.bf16.mxu0 %v4321_v60 }
0x11b5   : > { %v2845_v55 = vpack.c.bf16 %v2843_v53, %v2842_v54 }
0x11b6   : > { %3895 = vmatpush3.bf16.msra.mxu0 %v4322_v61 }
0x11b7   : > { %3896 = vmatprep.subr.bf16.mxu0 %v4323_v62 }
0x11b9   : > { %2997 = vmatmul.mubr.bf16.gmra.mrb[56].mxu1 %v2845_v55 }
0x11ba   : > { %3897 = vmatpush3.bf16.msra.mxu0 %v4324_v63 }
0x11bb   : > { %3898 = vmatprep.subr.bf16.mxu0 %v4325_v27 }
0x11be   : > { %3899 = vmatpush3.bf16.msra.mxu0 %v4326_v43 }
0x1284   : > { %v2988_v2 = vpop.f32.mrb[52].mxu1 }
0x1285   : > { %v2989_v4 = vadd.f32 %v2988_v2, %v2867_v0  ;;  %v2990_v6 = vpop.f32.mrb[53].mxu1 }
0x1286   : > { %v2991_v7 = vadd.f32 %v2990_v6, %v2871_v1  ;;  %v2992_v8 = vpop.f32.mrb[54].mxu1 }
0x1287   : > { %v3015_v9 = vmul.f32 0.70710677, %v2989_v4  ;;  %v2993_v10 = vadd.f32 %v2992_v8, %v2867_v0  ;;  %v2994_v34 = vpop.f32.mrb[55].mxu1  ;;  %v3007_v39 = vmul.f32 0.5, %v2989_v4  ;;  %v3759_v4 = vld [vmem:[%s956_s21] ss:$0 sm:$0xff] }
0x1288   : > { %v3016_v11 = vmul.f32 0.70710677, %v2991_v7  ;;  %v2995_v26 = vadd.f32 %v2994_v34, %v2871_v1  ;;  %v3008_v48 = vmul.f32 0.5, %v2991_v7  ;;  %s5462_s21 = sld [smem:[#allocation31_spill]] (!%p3776_p1) }
0x1289   : > { %4407 = verf.f32 %v3015_v9  ;;  %v3017_v13 = vmul.f32 0.70710677, %v2993_v10  ;;  %v3009_v42 = vmul.f32 0.5, %v2993_v10 }
0x128a   : > { %4409 = verf.f32 %v3016_v11  ;;  %v3018_v14 = vmul.f32 0.70710677, %v2995_v26  ;;  %v3010_v49 = vmul.f32 0.5, %v2995_v26 }
0x128b   : > { %4411 = verf.f32 %v3017_v13 }
0x128c   : > { %4413 = verf.f32 %v3018_v14  ;;  %v2998_v5 = vpop.f32.mrb[56].mxu1 }
0x128d   : > { %v2999_v15 = vadd.f32 %v2998_v5, %v2867_v0  ;;  %v3000_v37 = vpop.f32.mrb[57].mxu1 }
0x128e   : > { %v3001_v3 = vadd.f32 %v3000_v37, %v2871_v1  ;;  %v3002_v16 = vpop.f32.mrb[58].mxu1 }
0x128f   : > { %v3019_v21 = vmul.f32 0.70710677, %v2999_v15  ;;  %v3003_v17 = vadd.f32 %v3002_v16, %v2867_v0  ;;  %v3004_v41 = vpop.f32.mrb[59].mxu1  ;;  %v3011_v61 = vmul.f32 0.5, %v2999_v15 }
0x1290   : > { %v3020_v18 = vmul.f32 0.70710677, %v3001_v3  ;;  %v3005_v20 = vadd.f32 %v3004_v41, %v2871_v1  ;;  %v3012_v27 = vmul.f32 0.5, %v3001_v3 }
0x1291   : > { %4415 = verf.f32 %v3019_v21  ;;  %v3021_v22 = vmul.f32 0.70710677, %v3003_v17  ;;  %v3013_v62 = vmul.f32 0.5, %v3003_v17 }
0x1292   : > { %4417 = verf.f32 %v3020_v18  ;;  %v3022_v19 = vmul.f32 0.70710677, %v3005_v20  ;;  %v3014_v43 = vmul.f32 0.5, %v3005_v20 }
0x1293   : > { %v4408_v23 = vpop.eup %4407  ;;  %4419 = verf.f32 %v3021_v22 }
0x1294   : > { %v4410_v25 = vpop.eup %4409  ;;  %v3031_v28 = vadd.f32 1.0, %v4408_v23  ;;  %4421 = verf.f32 %v3022_v19 }
0x1295   : > { %v4412_v33 = vpop.eup %4411  ;;  %v3032_v12 = vadd.f32 1.0, %v4410_v25 }
0x1296   : > { %v4414_v35 = vpop.eup %4413  ;;  %v3033_v47 = vadd.f32 1.0, %v4412_v33  ;;  %v3039_v51 = vmul.f32 %v3031_v28, %v3007_v39 }
0x1297   : > { %v3034_v50 = vadd.f32 1.0, %v4414_v35  ;;  %v3040_v53 = vmul.f32 %v3032_v12, %v3008_v48  ;;  %v4427_v48 = vld [vmem:[%s5461_s30] sm:$0xff] (!%p3776_p1)  }
0x1298   : > { %v3041_v52 = vmul.f32 %v3033_v47, %v3009_v42 }
0x1299   : > { %v3042_v54 = vmul.f32 %v3034_v50, %v3010_v49  ;;  %v4545_v49 = vmov (!%p3776_p1), 0.0   ;;  %v4428_v50 = vld [vmem:[%s5461_s30 + $0x8] sm:$0xff] (!%p3776_p1)  }
0x129a   : > { %v3047_v55 = vpack.c.bf16 %v3041_v52, %v3039_v51  ;;  %4107 = vmatprep.subr.bf16.mxu0 (!%p3776_p1), %v4545_v49  ;;  %v4429_v51 = vld [vmem:[%s5461_s30 + $0x10] sm:$0xff] (!%p3776_p1)   ;;  %v4430_v52 = vld [vmem:[%s5461_s30 + $0x18] sm:$0xff] (!%p3776_p1)  }
0x129b   : > { %v4416_v56 = vpop.eup %4415  ;;  %v3048_v57 = vpack.c.bf16 %v3042_v54, %v3040_v53  ;;  %v4431_v53 = vld [vmem:[%s5461_s30 + $0x20] sm:$0xff] (!%p3776_p1)   ;;  %v4432_v54 = vld [vmem:[%s5461_s30 + $0x28] sm:$0xff] (!%p3776_p1)  }
0x129c   : > { %v4418_v36 = vpop.eup %4417  ;;  %v3035_v58 = vadd.f32 1.0, %v4416_v56  ;;  %v4434_v56 = vld [vmem:[%s5461_s30 + $0x38] sm:$0xff] (!%p3776_p1)  }
0x129d   : > { %v4420_v59 = vpop.eup %4419  ;;  %v3036_v29 = vadd.f32 1.0, %v4418_v36  ;;  %3218 = vmatprep.mubr.bf16.mxu0 %v3048_v57 }
0x129e   : > { %v4422_v60 = vpop.eup %4421  ;;  %v3037_v63 = vadd.f32 1.0, %v4420_v59  ;;  %3219 = vmatmul.mubr.bf16.vlgmr.msra.gmra.mrb[28].mxu0 %v3047_v55  ;;  %v3043_v46 = vmul.f32 %v3035_v58, %v3011_v61  ;;  %v4433_v55 = vld [vmem:[%s5461_s30 + $0x30] sm:$0xff] (!%p3776_p1)  }
0x129f   : > { %v3038_v45 = vadd.f32 1.0, %v4422_v60  ;;  %v3044_v30 = vmul.f32 %v3036_v29, %v3012_v27  ;;  %4108 = vmatpush3.bf16.msra.mxu0 (!%p3776_p1), %v4427_v48 }
0x12a0   : > { %v3045_v24 = vmul.f32 %v3037_v63, %v3013_v62  ;;  %4109 = vmatprep.subr.bf16.mxu0 (!%p3776_p1), %v4545_v49 }
0x12a1   : > { %v3046_v32 = vmul.f32 %v3038_v45, %v3014_v43 }
0x12a2   : > { %v3049_v0 = vpack.c.bf16 %v3045_v24, %v3043_v46 }
0x12a3   : > { %v3050_v1 = vpack.c.bf16 %v3046_v32, %v3044_v30  ;;  %4110 = vmatpush3.bf16.msra.mxu0 (!%p3776_p1), %v4428_v50  ;;  %v3777_v30 = vld [vmem:[%s5462_s21] ss:$0 sm:$0xff] (!%p3776_p1) }
0x12a4   : > { %4111 = vmatprep.subr.bf16.mxu0 (!%p3776_p1), %v4545_v49 }
0x12a5   : > { %3226 = vmatprep.mubr.bf16.mxu0 %v3050_v1 }
0x12a6   : > { %3227 = vmatmul.mubr.bf16.gmra.mrb[32].mxu0 %v3049_v0 }
0x12a7   : > { %4112 = vmatpush3.bf16.msra.mxu0 (!%p3776_p1), %v4429_v51  ;;  %4123 = vmatprep.mubr.msk.bf16.mxu0 (!%p3776_p1), %vm4546_vm6, %v4545_v49 }
0x12a8   : > { %4113 = vmatprep.subr.bf16.mxu0 (!%p3776_p1), %v4545_v49 }
0x12ab   : > { %4114 = vmatpush3.bf16.msra.mxu0 (!%p3776_p1), %v4430_v52 }
0x12ac   : > { %4115 = vmatprep.subr.bf16.mxu0 (!%p3776_p1), %v4545_v49 }
0x12af   : > { %4116 = vmatpush3.bf16.msra.mxu0 (!%p3776_p1), %v4431_v53 }
0x12b0   : > { %4117 = vmatprep.subr.bf16.mxu0 (!%p3776_p1), %v4545_v49 }
0x12b3   : > { %4118 = vmatpush3.bf16.msra.mxu0 (!%p3776_p1), %v4432_v54 }
0x12b4   : > { %4119 = vmatprep.subr.bf16.mxu0 (!%p3776_p1), %v4545_v49 }
0x12b7   : > { %4120 = vmatpush3.bf16.msra.mxu0 (!%p3776_p1), %v4433_v55 }
0x12b8   : > { %4121 = vmatprep.subr.bf16.mxu0 (!%p3776_p1), %v4545_v49 }
0x12bb   : > { %4122 = vmatpush3.bf16.msra.mxu0 (!%p3776_p1), %v4434_v56 }
0x1371   : > { %v3900_v2 = vpop.f32.mrb[28].mxu0 }
0x1372   : > { %v3901_v6 = vpop.f32.mrb[29].mxu0 }
0x1373   : > { %v3902_v7 = vadd.f32 %v3901_v6, %v3900_v2  ;;  %v3903_v8 = vpop.f32.mrb[30].mxu0 }
0x1374   : > { %v3904_v9 = vpop.f32.mrb[31].mxu0 }
0x1375   : > { %v3221_v10 = vadd.f32 %v3902_v7, %v3759_v4  ;;  %v3905_v34 = vadd.f32 %v3904_v9, %v3903_v8 }
0x1377   : > { %v3235_v11 = vadd.f32 %v3221_v10, %v5178_v31  ;;  %v3224_v26 = vadd.f32 %v3905_v34, %v3759_v4 }
0x1379   : > { %3239 = vst [vmem:[#allocation2] sm:$0xff] %v3235_v11  ;;  %v3236_v13 = vadd.f32 %v3224_v26, %v5180_v38  ;;  %v3906_v14 = vpop.f32.mrb[32].mxu0  ;;  %3249 = vadd.xlane.f32.xlu0 (!%p3776_p1), %v3235_v11 }
0x137a   : > { %v3907_v5 = vpop.f32.mrb[33].mxu0 }
0x137b   : > { %3240 = vst [vmem:[#allocation2 + $0x8] sm:$0xff] %v3236_v13  ;;  %v3908_v15 = vadd.f32 %v3907_v5, %v3906_v14  ;;  %v3909_v37 = vpop.f32.mrb[34].mxu0 }
0x137c   : > { %v3910_v3 = vpop.f32.mrb[35].mxu0 }
0x137d   : > { %v3229_v16 = vadd.f32 %v3908_v15, %v3759_v4  ;;  %v3911_v21 = vadd.f32 %v3910_v3, %v3909_v37  ;;  %3246 = sbr.rel (%p3776_p1) target bundleno = 5542 (0x15a6), region = 124  ;;  %3251 = vadd.xlane.f32.xlu0 (!%p3776_p1), %v3236_v13 }
0x137f   : > { %v3237_v17 = vadd.f32 %v3229_v16, %v5183_v40  ;;  %v3232_v41 = vadd.f32 %v3911_v21, %v3759_v4  ;;  %v3778_v4 = vld [vmem:[%s5463_s6] ss:$0 sm:$0xff] (!%p3776_p1) }
0x1381   : > { %3241 = vst [vmem:[#allocation2 + $0x10] sm:$0xff] %v3237_v17  ;;  %v3238_v18 = vadd.f32 %v3232_v41, %v5187_v44  ;;  %3253 = vadd.xlane.f32.xlu1 (!%p3776_p1), %v3237_v17 }
0x1383   : > { %3242 = vst [vmem:[#allocation2 + $0x18] sm:$0xff] %v3238_v18 }
0x1385   : > { %3255 = vadd.xlane.f32.xlu1 %v3238_v18 }
0x1406   : > { %v3250_v31 = vpop.xlane.xlu0 %3249 }
0x1407   : > { %v3257_v20 = vmul.f32 0.0078125, %v3250_v31 }
0x1409   : > { %v3261_v19 = vsub.f32 %v3235_v11, %v3257_v20 }
0x140a   : > { %v3252_v40 = vpop.xlane.xlu0 %3251 }
0x140b   : > { %v3258_v28 = vmul.f32 0.0078125, %v3252_v40  ;;  %v3265_v33 = vmul.f32 %v3261_v19, %v3261_v19 }
0x140d   : > { %v3262_v12 = vsub.f32 %v3236_v13, %v3258_v28  ;;  %3269 = vadd.xlane.f32.xlu0 %v3265_v33  ;;  %v3779_v33 = vld [vmem:[%s5464_s27] ss:$0 sm:$0xff] }
0x140e   : > { %v3254_v38 = vpop.xlane.xlu1 %3253 }
0x140f   : > { %v3259_v22 = vmul.f32 0.0078125, %v3254_v38  ;;  %v3266_v42 = vmul.f32 %v3262_v12, %v3262_v12 }
0x1411   : > { %v5267_v23 = vsub.f32 %v3237_v17, %v3259_v22  ;;  %3271 = vadd.xlane.f32.xlu1 %v3266_v42 }
0x1412   : > { %v3256_v25 = vpop.xlane.xlu1 %3255 }
0x1413   : > { %v3260_v44 = vmul.f32 0.0078125, %v3256_v25  ;;  %v3267_v39 = vmul.f32 %v5267_v23, %v5267_v23 }
0x1415   : > { %v5269_v35 = vsub.f32 %v3238_v18, %v3260_v44  ;;  %3273 = vadd.xlane.f32.xlu0 %v3267_v39 }
0x1417   : > { %v3268_v47 = vmul.f32 %v5269_v35, %v5269_v35 }
0x1419   : > { %3275 = vadd.xlane.f32.xlu1 %v3268_v47 }
0x149a   : > { %v3270_v57 = vpop.xlane.xlu0 %3269 }
0x149b   : > { %v3277_v36 = vmul.f32 0.0078125, %v3270_v57 }
0x149d   : > { %v3281_v58 = vadd.f32 1e-05, %v3277_v36 }
0x149e   : > { %v3272_v59 = vpop.xlane.xlu1 %3271 }
0x149f   : > { %4435 = vrsqrt.f32 %v3281_v58  ;;  %v3278_v60 = vmul.f32 0.0078125, %v3272_v59 }
0x14a1   : > { %v3282_v62 = vadd.f32 1e-05, %v3278_v60 }
0x14a2   : > { %v3274_v29 = vpop.xlane.xlu0 %3273 }
0x14a3   : > { %v3279_v61 = vmul.f32 0.0078125, %v3274_v29  ;;  %4437 = vrsqrt.f32 %v3282_v62 }
0x14a5   : > { %v3283_v63 = vadd.f32 1e-05, %v3279_v61 }
0x14a6   : > { %v3276_v27 = vpop.xlane.xlu1 %3275 }
0x14a7   : > { %v3280_v43 = vmul.f32 0.0078125, %v3276_v27  ;;  %4439 = vrsqrt.f32 %v3283_v63 }
0x14a9   : > { %v3284_v45 = vadd.f32 1e-05, %v3280_v43  ;;  %v4436_v46 = vpop.eup %4435 }
0x14aa   : > { %v3289_v24 = vmul.f32 %v4436_v46, %v3261_v19 }
0x14ab   : > { %4441 = vrsqrt.f32 %v3284_v45 }
0x14ac   : > { %v3299_v1 = vmul.f32 %v3777_v30, %v3289_v24 }
0x14ad   : > { %v4438_v32 = vpop.eup %4437 }
0x14ae   : > { %v3290_v2 = vmul.f32 %v4438_v32, %v3262_v12  ;;  %v3309_v9 = vadd.f32 %v3778_v4, %v3299_v1 }
0x14b0   : > { %v3300_v7 = vmul.f32 %v3777_v30, %v3290_v2 }
0x14b1   : > { %v4440_v0 = vpop.eup %4439 }
0x14b2   : > { %v3291_v6 = vmul.f32 %v4440_v0, %v5267_v23  ;;  %v3310_v10 = vadd.f32 %v3778_v4, %v3300_v7 }
0x14b4   : > { %v3301_v34 = vmul.f32 %v3777_v30, %v3291_v6  ;;  %v3313_v13 = vadd.f32 %v3310_v10, %v3309_v9 }
0x14b5   : > { %v4442_v8 = vpop.eup %4441 }
0x14b6   : > { %v3292_v11 = vmul.f32 %v4442_v8, %v5269_v35  ;;  %v3311_v14 = vadd.f32 %v3778_v4, %v3301_v34  ;;  %v3314_v15 = vrot.slane %v3313_v13, 4 }
0x14b8   : > { %v3302_v26 = vmul.f32 %v3777_v30, %v3292_v11  ;;  %v3315_v37 = vadd.f32 %v3314_v15, %v3313_v13 }
0x14ba   : > { %v3312_v5 = vadd.f32 %v3778_v4, %v3302_v26  ;;  %v3316_v16 = vrot.slane %v3315_v37, 2 }
0x14bc   : > { %v3322_v3 = vadd.f32 %v3312_v5, %v3311_v14  ;;  %v3317_v17 = vadd.f32 %v3316_v16, %v3315_v37 }
0x14be   : > { %v3323_v21 = vrot.slane %v3322_v3, 4  ;;  %v3318_v18 = vrot.slane %v3317_v17, 1 }
0x14c0   : > { %v3324_v41 = vadd.f32 %v3323_v21, %v3322_v3  ;;  %v3319_v20 = vadd.f32 %v3318_v18, %v3317_v17 }
0x14c2   : > { %v3325_v31 = vrot.slane %v3324_v41, 2  ;;  %v3321_v23 = vmul.f32 0.0625, %v3319_v20 }
0x14c4   : > { %v3326_v38 = vadd.f32 %v3325_v31, %v3324_v41 }
0x14c6   : > { %v3327_v22 = vrot.slane %v3326_v38, 1 }
0x14c8   : > { %v3328_v19 = vadd.f32 %v3327_v22, %v3326_v38 }
0x14ca   : > { %v3329_v40 = vmul.f32 0.0625, %v3328_v19 }
0x14cc   : > { %v3331_v25 = vsel %vm3330_vm7, %v3321_v23, %v3329_v40 }
0x14cd   : > { %v3332_v28 = vpack.c.bf16 %v3331_v25, %v3331_v25 }
0x14cf   : > { %4124 = vmatmul.mubr.bf16.vlgmr.msra.gmra.mrb[0].mxu0 %v3332_v28 }
0x15a2   : > { %v3438_v44 = vpop.f32.mrb[0].mxu0 }
0x15a3   : > { %v3439_v12 = vadd.f32 %v3779_v33, %v3438_v44  ;;  %v4125_v35 = vpop.f32.mrb[1].mxu0 }
0x15a4   : > { %v3441_v39 = vpop.f32.mrb[2].mxu0 }
0x15a5   : > { %3445 = vst.msk [vmem:[%s901_s28] sm:$0x3] %vm3444_vm8, %v3439_v12  ;;  %v4126_v42 = vpop.f32.mrb[3].mxu0 }
0x15a6 PF: > { %s5465_s3 = sld [smem:[#allocation10_spill]]  ;;  %s5466_s20 = sld [smem:[#allocation7_spill]] }
0x15a7   : > { %s5468_s0 = sld [smem:[#allocation35_spill]]  ;;  %s3460_s8 = sshll.u32 %s901_s28, 4  ;;  %s3461_s8 = int_to_ptr.vmem [resolvable:$true] %s3460_s8 }
0x15a8   : > { %s4443_s25 = scalar_lea.vmem %s3461_s8, 32  ;;  %s4547_s7 = smov [#allocation3]  }
0x15a9   : > { %p4444_p2 = scmp.ne.s32.totalorder %s3461_s8, %s4443_s25  ;;  %s4447_s6 = sshll.u32 %s4547_s7, 4  ;;  %s4448_s6 = int_to_ptr.vmem [resolvable:$false] %s4447_s6 }
0x15aa   : > { %s4449_s10 = scalar_lea.vmem %s4448_s6, 64  ;;  %p4450_p6 = scmp.lt.s32.totalorder %s3461_s8, %s4448_s6 }
0x15ab   : > { %p4445_p4 = pnand %p4444_p2, %p4722_p3  ;;  %p4451_p7 = scmp.lt.s32.totalorder %s4449_s10, %s4443_s25 }
0x15ac   : > { %s3789_s29 = sshll.u32 %s5465_s3, 5  ;;  %s5470_s4 = sand.u32 1, %s5466_s20  }
0x15ad   : > { %s5469_s22 = smov %s5468_s0  ;;  %s5316_s23 = scalar_lea.hbm %s5468_s0, %s3789_s29 }
0x15ae   : > { %s3447_s21 = scalar_lea.sflag [#allocation4], %s5470_s4  ;;  %p4446_p5 = pneg %p4445_p4 }
0x15af   : > { %p4452_p8 = por %p4451_p7, %p4450_p6 }
0x15b1   : > { %p4453_p10 = pnand %p4452_p8, %p4446_p5 }
0x15b3   : > { %4456 = shalt.err (!%p4453_p10)
}
0x15b4   : > { %s4457_s5 = scalar_lea.hbm %s5316_s23, 32  ;;  %s4461_s27 = scalar_lea.hbm %s5469_s22, 64 }
0x15b5   : > { %p4458_p11 = scmp.ne.s32.totalorder %s5316_s23, %s4457_s5  ;;  %p4462_p0 = scmp.lt.u32.totalorder %s5316_s23, %s5469_s22 }
0x15b6   : > { %p4463_p1 = scmp.lt.u32.totalorder %s4461_s27, %s4457_s5  ;;  %p4465_p4 = scmp.lt.u32.totalorder %s4457_s5, %s5316_s23 }
0x15b7   : > { %p4459_p12 = pnand %p4458_p11, %p4722_p3 }
0x15b8   : > { %p4464_p2 = por %p4463_p1, %p4462_p0 }
0x15b9   : > { %p4460_p13 = pneg %p4459_p12 }
0x15ba   : > { %p4466_p5 = por %p4465_p4, %p4464_p2 }
0x15bc   : > { %p4467_p6 = pnand %p4466_p5, %p4460_p13 }
0x15be   : > { %4470 = shalt.err (!%p4467_p6)
}
0x15bf   : > { %4127 = dma.vmem_to_hbm [thread:$0]  (%p4722_p3), %s3461_s8, 32, %s5316_s23, %s3447_s21  }
0x15c0 PF: > { %s5471_s29 = sld [smem:[#allocation13_spill]]  ;;  %s5472_s2 = sld [smem:[#allocation6_spill]] }
0x15c6   : > { %p4133_p7 = scmp.ge.s32.totalorder %s5471_s29, 2  ;;  %s3472_s0 = sand.u32 1, %s5472_s2  }
0x15c7   : > { %s3473_s4 = scalar_lea.sflag [#allocation4], %s3472_s0 }
0x15c8   : > { %p4130_p8 = pnand %p4133_p7, %p4732_p9 }
0x15ca   : > { %4504 = dma.done.wait (!%p4130_p8), %s3473_s4, 32  }
0x15cb   : > { %4506 = vsyncadd (!%p4130_p8), %s3473_s4, 4294967264  ;;  %s37_s0 = sadd.s32 1, %s5471_s29   ;;  %s5474_s5 = sld [smem:[#allocation7_spill]] }
0x15cc   : > { %p34_p10 = scmp.ge.s32.totalorder %s37_s0, 6   ;;  %s5475_s26 = sld [smem:[#allocation8_spill]] }
0x15cd   : > { %s5476_s27 = sld [smem:[#allocation18_spill]]  ;;  %s5477_s28 = sld [smem:[#allocation11_spill]] }
0x15ce   : > { %s5478_s6 = sld [smem:[#allocation12_spill]]  ;;  %s5479_s2 = sld [smem:[#allocation14_spill]] }
0x15cf   : > { %s5480_s29 = sld [smem:[#allocation16_spill]]  ;;  %36 = sbr.rel (!%p34_p10) target bundleno = 23 (0x17), region = 195 }
0x15d6   :  { %3478 = vsyncpa [#allocation4], 1 }
0x15d7   :  { %3480 = vsyncpa [#allocation4 + $0x1], 1 }

</bundles_post_ra>
